<compile_context>
chip_gen: v6e
topology: v6e:2x2x1
jax: 0.10.0
libtpu: 0.0.40
codegen_flags: <defaults>
</compile_context>

<pallas_src>
import math

import jax
import jax.numpy as jnp
from jax.experimental import pallas as pl
from jax.experimental.pallas import tpu as pltpu

# ----------------------------- config (small shapes) ------------------------
VOCAB_SIZE = 32
MAX_SEQ_LEN = 16
EMB_SIZE = 16
DIM_M = 32
N_HEADS = 4
HEAD_DIM = DIM_M // N_HEADS
DIM_I = 64
N_LAYERS = 2
INITIAL_IDX = 2
NEG_INF = -1e30

# Canonical flattening order of per-layer weights (wrapper & kernel agree).
ENC_KEYS = ('wqkv', 'bqkv', 'wo', 'bo', 'g1', 'be1',
            'w1', 'bf1', 'w2', 'bf2', 'g2', 'be2')
DEC_KEYS = ('wqkv', 'bqkv', 'wo_s', 'bo_s', 'g1', 'be1',
            'wq_c', 'bq_c', 'wkv_c', 'bkv_c', 'wo_c', 'bo_c', 'g2', 'be2',
            'w1', 'bf1', 'w2', 'bf2', 'g3', 'be3')
# Weights that feed the MXU un-sliced are passed as bf16; the o-proj weights
# are kept f32 so the per-head row slice stays (8,128)-tile aligned.
_BF16_LAYER_KEYS = ('wqkv', 'w1', 'w2', 'wq_c', 'wkv_c')


# ----------------------------- fused kernel --------------------------------
def _fused_forward_kernel(*refs):
    o_ref = refs[-1]
    src_ref, tgt_ref, pes_ref, pet_ref = refs[:4]
    wit = iter(refs[4:-1])
    w_embp = next(wit)
    b_embp = next(wit)
    enc = {k: next(wit) for k in ENC_KEYS}
    dec = {k: next(wit) for k in DEC_KEYS}
    w_out = next(wit)
    b_out = next(wit)

    scale = 1.0 / math.sqrt(HEAD_DIM)

    def mm(a, w):  # bf16 MXU operands, f32 accumulation
        return jnp.dot(a.astype(jnp.bfloat16), w,
                       preferred_element_type=jnp.float32)

    def layernorm(x, g, b):
        mu = jnp.mean(x, axis=-1, keepdims=True)
        var = jnp.mean(jnp.square(x - mu), axis=-1, keepdims=True)
        return (x - mu) * jax.lax.rsqrt(var + 1e-5) * g + b

    def softmax(s):
        s = s - jnp.max(s, axis=-1, keepdims=True)
        p = jnp.exp(s)
        return p * pl.reciprocal(jnp.sum(p, axis=-1, keepdims=True),
                                 approx=True)

    def attention(q, k, v, wo, causal):
        # q: (Sq, DIM_M); k, v: (Sk, DIM_M) f32; wo: (DIM_M, DIM_M) f32.
        sq, sk = q.shape[0], k.shape[0]
        bias = None
        if causal:
            row = jax.lax.broadcasted_iota(jnp.int32, (sq, sk), 0)
            col = jax.lax.broadcasted_iota(jnp.int32, (sq, sk), 1)
            bias = jnp.where(col <= row, 0.0, NEG_INF)
        out = None
        for h in range(N_HEADS):
            lo, hi = h * HEAD_DIM, (h + 1) * HEAD_DIM
            qh = q[:, lo:hi].astype(jnp.bfloat16)
            kh = k[:, lo:hi].astype(jnp.bfloat16)
            vh = v[:, lo:hi].astype(jnp.bfloat16)
            # q @ k^T without materializing a transpose of k.
            s = jax.lax.dot_general(
                qh, kh, (((1,), (1,)), ((), ())),
                preferred_element_type=jnp.float32) * scale
            if bias is not None:
                s = s + bias
            p = softmax(s)
            oh = jnp.dot(p.astype(jnp.bfloat16), vh,
                         preferred_element_type=jnp.float32)
            # concat_h(oh) @ Wo == sum_h oh @ Wo[h*d:(h+1)*d, :]
            # (folds the o-projection per head, no concat / transpose needed).
            contrib = jnp.dot(oh.astype(jnp.bfloat16),
                              wo[lo:hi, :].astype(jnp.bfloat16),
                              preferred_element_type=jnp.float32)
            out = contrib if out is None else out + contrib
        return out

    # ----------------------------- encoder ---------------------------------
    x = mm(src_ref[0], w_embp[...]) + b_embp[...] + pes_ref[...]
    for l in range(N_LAYERS):
        qkv = mm(x, enc['wqkv'][l]) + enc['bqkv'][l]
        q = qkv[:, :DIM_M]
        k = qkv[:, DIM_M:2 * DIM_M]
        v = qkv[:, 2 * DIM_M:]
        a = attention(q, k, v, enc['wo'][l], causal=False) + enc['bo'][l]
        x = layernorm(x + a, enc['g1'][l], enc['be1'][l])
        h1 = jnp.maximum(mm(x, enc['w1'][l]) + enc['bf1'][l], 0.0)
        f = mm(h1, enc['w2'][l]) + enc['bf2'][l]
        x = layernorm(x + f, enc['g2'][l], enc['be2'][l])

    # ----------------------------- decoder ---------------------------------
    y = mm(tgt_ref[0], w_embp[...]) + b_embp[...] + pet_ref[...]
    for l in range(N_LAYERS):
        qkv = mm(y, dec['wqkv'][l]) + dec['bqkv'][l]
        q = qkv[:, :DIM_M]
        k = qkv[:, DIM_M:2 * DIM_M]
        v = qkv[:, 2 * DIM_M:]
        a = attention(q, k, v, dec['wo_s'][l], causal=True) + dec['bo_s'][l]
        y = layernorm(y + a, dec['g1'][l], dec['be1'][l])

        qc = mm(y, dec['wq_c'][l]) + dec['bq_c'][l]
        kv = mm(x, dec['wkv_c'][l]) + dec['bkv_c'][l]
        kc = kv[:, :DIM_M]
        vc = kv[:, DIM_M:]
        c = attention(qc, kc, vc, dec['wo_c'][l], causal=False) + dec['bo_c'][l]
        y = layernorm(y + c, dec['g2'][l], dec['be2'][l])

        h1 = jnp.maximum(mm(y, dec['w1'][l]) + dec['bf1'][l], 0.0)
        f = mm(h1, dec['w2'][l]) + dec['bf2'][l]
        y = layernorm(y + f, dec['g3'][l], dec['be3'][l])

    # -------------------- output projection + softmax ----------------------
    logits = mm(y, w_out[...]) + b_out[...]
    o_ref[0] = softmax(logits)


# ----------------------------- wrapper --------------------------------------
def _flat_weights(params):
    ws = [params['emb_proj_w'].astype(jnp.bfloat16), params['emb_proj_b']]
    for k in ENC_KEYS:
        v = params['enc'][k]
        ws.append(v.astype(jnp.bfloat16) if k in _BF16_LAYER_KEYS else v)
    for k in DEC_KEYS:
        v = params['dec'][k]
        ws.append(v.astype(jnp.bfloat16) if k in _BF16_LAYER_KEYS else v)
    ws.append(params['out_w'].astype(jnp.bfloat16))
    ws.append(params['out_b'])
    return ws


def fused_transformer(params, src_emb, tgt_emb, pe_src, pe_tgt):
    B, S, _ = src_emb.shape
    T = tgt_emb.shape[1]
    weights = _flat_weights(params)

    act_specs = [
        pl.BlockSpec((1, S, EMB_SIZE), lambda b: (b, 0, 0)),
        pl.BlockSpec((1, T, EMB_SIZE), lambda b: (b, 0, 0)),
        pl.BlockSpec((S, DIM_M), lambda b: (0, 0)),
        pl.BlockSpec((T, DIM_M), lambda b: (0, 0)),
    ]
    # Weights: same (full-array) block on every grid step -> stay in VMEM.
    w_specs = [pl.BlockSpec(w.shape, lambda b, n=w.ndim: (0,) * n)
               for w in weights]

    return pl.pallas_call(
        _fused_forward_kernel,
        out_shape=jax.ShapeDtypeStruct((B, T, VOCAB_SIZE), jnp.float32),
        grid=(B,),
        in_specs=act_specs + w_specs,
        out_specs=pl.BlockSpec((1, T, VOCAB_SIZE), lambda b: (b, 0, 0)),
        compiler_params=pltpu.CompilerParams(
            dimension_semantics=("parallel",)),  # megacore splits the batch
    )(src_emb, tgt_emb, pe_src, pe_tgt, *weights)


def transformers_forward(params, source_seq, target_seq):
    """Mirrors Transformers.forward: returns (shifted_probs, argmax)."""
    B, S = source_seq.shape
    T = target_seq.shape[1]
    src_emb = jnp.take(params['emb'], source_seq, axis=0)   # (B,S,EMB)
    tgt_emb = jnp.take(params['emb'], target_seq, axis=0)   # (B,T,EMB)
    probs = fused_transformer(params, src_emb, tgt_emb,
                              params['pe'][:S], params['pe'][:T])  # (B,T,V)
    init = params['initial_probs']                                  # (1,V)
    shifted = jnp.concatenate(
        [jnp.broadcast_to(init[None, :, :], (B, 1, VOCAB_SIZE)),
         probs[:, :-1, :]], axis=1)
    return shifted, jnp.argmax(shifted, axis=-1)


# ----------------------------- init ------------------------------------------
def positional_encoding(max_len, d):
    pos = jnp.arange(max_len, dtype=jnp.float32)[:, None]
    idx = jnp.arange(d)
    rates = jnp.power(10000.0, -(2.0 * jnp.floor(idx / 2.0)) / d)
    ang = pos * rates[None, :]
    return jnp.where((idx % 2 == 0)[None, :], jnp.sin(ang), jnp.cos(ang))


def init_params(key):
    keys = iter(jax.random.split(key, 256))

    def w(shape):
        return jax.random.normal(next(keys), shape, jnp.float32) * 0.02

    def wstack(shape):
        return jnp.stack([w(shape) for _ in range(N_LAYERS)], axis=0)

    def zeros(shape):
        return jnp.zeros(shape, jnp.float32)

    def ones(shape):
        return jnp.ones(shape, jnp.float32)

    enc = {
        'wqkv': wstack((DIM_M, 3 * DIM_M)),
        'bqkv': zeros((N_LAYERS, 1, 3 * DIM_M)),
        'wo': wstack((DIM_M, DIM_M)),
        'bo': zeros((N_LAYERS, 1, DIM_M)),
        'g1': ones((N_LAYERS, 1, DIM_M)),
        'be1': zeros((N_LAYERS, 1, DIM_M)),
        'w1': wstack((DIM_M, DIM_I)),
        'bf1': zeros((N_LAYERS, 1, DIM_I)),
        'w2': wstack((DIM_I, DIM_M)),
        'bf2': zeros((N_LAYERS, 1, DIM_M)),
        'g2': ones((N_LAYERS, 1, DIM_M)),
        'be2': zeros((N_LAYERS, 1, DIM_M)),
    }
    dec = {
        'wqkv': wstack((DIM_M, 3 * DIM_M)),
        'bqkv': zeros((N_LAYERS, 1, 3 * DIM_M)),
        'wo_s': wstack((DIM_M, DIM_M)),
        'bo_s': zeros((N_LAYERS, 1, DIM_M)),
        'g1': ones((N_LAYERS, 1, DIM_M)),
        'be1': zeros((N_LAYERS, 1, DIM_M)),
        'wq_c': wstack((DIM_M, DIM_M)),
        'bq_c': zeros((N_LAYERS, 1, DIM_M)),
        'wkv_c': wstack((DIM_M, 2 * DIM_M)),
        'bkv_c': zeros((N_LAYERS, 1, 2 * DIM_M)),
        'wo_c': wstack((DIM_M, DIM_M)),
        'bo_c': zeros((N_LAYERS, 1, DIM_M)),
        'g2': ones((N_LAYERS, 1, DIM_M)),
        'be2': zeros((N_LAYERS, 1, DIM_M)),
        'w1': wstack((DIM_M, DIM_I)),
        'bf1': zeros((N_LAYERS, 1, DIM_I)),
        'w2': wstack((DIM_I, DIM_M)),
        'bf2': zeros((N_LAYERS, 1, DIM_M)),
        'g3': ones((N_LAYERS, 1, DIM_M)),
        'be3': zeros((N_LAYERS, 1, DIM_M)),
    }
    params = {
        'emb': jax.random.normal(next(keys), (VOCAB_SIZE, EMB_SIZE),
                                 jnp.float32) * 0.02,
        'emb_proj_w': w((EMB_SIZE, DIM_M)),
        'emb_proj_b': zeros((1, DIM_M)),
        'pe': positional_encoding(MAX_SEQ_LEN, DIM_M),
        'enc': enc,
        'dec': dec,
        'out_w': w((DIM_M, VOCAB_SIZE)),
        'out_b': zeros((1, VOCAB_SIZE)),
        'initial_probs': jnp.zeros((1, VOCAB_SIZE),
                                   jnp.float32).at[0, INITIAL_IDX].set(1.0),
    }
    return params


# ----------------------------- main ------------------------------------------
if __name__ == "__main__":
    key = jax.random.PRNGKey(0)
    pkey, skey, tkey = jax.random.split(key, 3)
    params = init_params(pkey)

    B, S_SRC, S_TGT = 2, 8, 8
    src = jax.random.randint(skey, (B, S_SRC), 1, VOCAB_SIZE, dtype=jnp.int32)
    tgt = jax.random.randint(tkey, (B, S_TGT), 1, VOCAB_SIZE, dtype=jnp.int32)

    probs, seq = jax.jit(transformers_forward)(params, src, tgt)
    jax.block_until_ready((probs, seq))

    assert probs.shape == (B, S_TGT, VOCAB_SIZE)
    assert seq.shape == (B, S_TGT)
    assert int(seq[0, 0]) == INITIAL_IDX  # first token comes from initial_probs
    print("KERNEL_OK")
</pallas_src>

<mosaic_0001>
module attributes {stable_mosaic.version = 11 : i64} {
  func.func @_fused_forward_kernel(%arg0: i32, %arg1: memref<1x8x16xf32, #tpu.memory_space<vmem>>, %arg2: memref<1x8x16xf32, #tpu.memory_space<vmem>>, %arg3: memref<8x32xf32, #tpu.memory_space<vmem>>, %arg4: memref<8x32xf32, #tpu.memory_space<vmem>>, %arg5: memref<16x32xbf16, #tpu.memory_space<vmem>>, %arg6: memref<1x32xf32, #tpu.memory_space<vmem>>, %arg7: memref<2x32x96xbf16, #tpu.memory_space<vmem>>, %arg8: memref<2x1x96xf32, #tpu.memory_space<vmem>>, %arg9: memref<2x32x32xf32, #tpu.memory_space<vmem>>, %arg10: memref<2x1x32xf32, #tpu.memory_space<vmem>>, %arg11: memref<2x1x32xf32, #tpu.memory_space<vmem>>, %arg12: memref<2x1x32xf32, #tpu.memory_space<vmem>>, %arg13: memref<2x32x64xbf16, #tpu.memory_space<vmem>>, %arg14: memref<2x1x64xf32, #tpu.memory_space<vmem>>, %arg15: memref<2x64x32xbf16, #tpu.memory_space<vmem>>, %arg16: memref<2x1x32xf32, #tpu.memory_space<vmem>>, %arg17: memref<2x1x32xf32, #tpu.memory_space<vmem>>, %arg18: memref<2x1x32xf32, #tpu.memory_space<vmem>>, %arg19: memref<2x32x96xbf16, #tpu.memory_space<vmem>>, %arg20: memref<2x1x96xf32, #tpu.memory_space<vmem>>, %arg21: memref<2x32x32xf32, #tpu.memory_space<vmem>>, %arg22: memref<2x1x32xf32, #tpu.memory_space<vmem>>, %arg23: memref<2x1x32xf32, #tpu.memory_space<vmem>>, %arg24: memref<2x1x32xf32, #tpu.memory_space<vmem>>, %arg25: memref<2x32x32xbf16, #tpu.memory_space<vmem>>, %arg26: memref<2x1x32xf32, #tpu.memory_space<vmem>>, %arg27: memref<2x32x64xbf16, #tpu.memory_space<vmem>>, %arg28: memref<2x1x64xf32, #tpu.memory_space<vmem>>, %arg29: memref<2x32x32xf32, #tpu.memory_space<vmem>>, %arg30: memref<2x1x32xf32, #tpu.memory_space<vmem>>, %arg31: memref<2x1x32xf32, #tpu.memory_space<vmem>>, %arg32: memref<2x1x32xf32, #tpu.memory_space<vmem>>, %arg33: memref<2x32x64xbf16, #tpu.memory_space<vmem>>, %arg34: memref<2x1x64xf32, #tpu.memory_space<vmem>>, %arg35: memref<2x64x32xbf16, #tpu.memory_space<vmem>>, %arg36: memref<2x1x32xf32, #tpu.memory_space<vmem>>, %arg37: memref<2x1x32xf32, #tpu.memory_space<vmem>>, %arg38: memref<2x1x32xf32, #tpu.memory_space<vmem>>, %arg39: memref<32x32xbf16, #tpu.memory_space<vmem>>, %arg40: memref<1x32xf32, #tpu.memory_space<vmem>>, %arg41: memref<1x8x32xf32, #tpu.memory_space<vmem>>) attributes {dimension_semantics = [#tpu.dimension_semantics<parallel>], iteration_bounds = array<i64: 2>, scalar_prefetch = 0 : i64, scratch_operands = 0 : i64, tpu.core_type = #tpu.core_type<tc>, window_params = [{transform_indices = @transform_0, window_bounds = array<i64: 1, 8, 16>}, {transform_indices = @transform_1, window_bounds = array<i64: 1, 8, 16>}, {pipeline_mode = #tpu.pipeline_mode<synchronous>, transform_indices = @transform_2, window_bounds = array<i64: 8, 32>}, {pipeline_mode = #tpu.pipeline_mode<synchronous>, transform_indices = @transform_3, window_bounds = array<i64: 8, 32>}, {pipeline_mode = #tpu.pipeline_mode<synchronous>, transform_indices = @transform_4, window_bounds = array<i64: 16, 32>}, {pipeline_mode = #tpu.pipeline_mode<synchronous>, transform_indices = @transform_5, window_bounds = array<i64: 1, 32>}, {pipeline_mode = #tpu.pipeline_mode<synchronous>, transform_indices = @transform_6, window_bounds = array<i64: 2, 32, 96>}, {pipeline_mode = #tpu.pipeline_mode<synchronous>, transform_indices = @transform_7, window_bounds = array<i64: 2, 1, 96>}, {pipeline_mode = #tpu.pipeline_mode<synchronous>, transform_indices = @transform_8, window_bounds = array<i64: 2, 32, 32>}, {pipeline_mode = #tpu.pipeline_mode<synchronous>, transform_indices = @transform_9, window_bounds = array<i64: 2, 1, 32>}, {pipeline_mode = #tpu.pipeline_mode<synchronous>, transform_indices = @transform_10, window_bounds = array<i64: 2, 1, 32>}, {pipeline_mode = #tpu.pipeline_mode<synchronous>, transform_indices = @transform_11, window_bounds = array<i64: 2, 1, 32>}, {pipeline_mode = #tpu.pipeline_mode<synchronous>, transform_indices = @transform_12, window_bounds = array<i64: 2, 32, 64>}, {pipeline_mode = #tpu.pipeline_mode<synchronous>, transform_indices = @transform_13, window_bounds = array<i64: 2, 1, 64>}, {pipeline_mode = #tpu.pipeline_mode<synchronous>, transform_indices = @transform_14, window_bounds = array<i64: 2, 64, 32>}, {pipeline_mode = #tpu.pipeline_mode<synchronous>, transform_indices = @transform_15, window_bounds = array<i64: 2, 1, 32>}, {pipeline_mode = #tpu.pipeline_mode<synchronous>, transform_indices = @transform_16, window_bounds = array<i64: 2, 1, 32>}, {pipeline_mode = #tpu.pipeline_mode<synchronous>, transform_indices = @transform_17, window_bounds = array<i64: 2, 1, 32>}, {pipeline_mode = #tpu.pipeline_mode<synchronous>, transform_indices = @transform_18, window_bounds = array<i64: 2, 32, 96>}, {pipeline_mode = #tpu.pipeline_mode<synchronous>, transform_indices = @transform_19, window_bounds = array<i64: 2, 1, 96>}, {pipeline_mode = #tpu.pipeline_mode<synchronous>, transform_indices = @transform_20, window_bounds = array<i64: 2, 32, 32>}, {pipeline_mode = #tpu.pipeline_mode<synchronous>, transform_indices = @transform_21, window_bounds = array<i64: 2, 1, 32>}, {pipeline_mode = #tpu.pipeline_mode<synchronous>, transform_indices = @transform_22, window_bounds = array<i64: 2, 1, 32>}, {pipeline_mode = #tpu.pipeline_mode<synchronous>, transform_indices = @transform_23, window_bounds = array<i64: 2, 1, 32>}, {pipeline_mode = #tpu.pipeline_mode<synchronous>, transform_indices = @transform_24, window_bounds = array<i64: 2, 32, 32>}, {pipeline_mode = #tpu.pipeline_mode<synchronous>, transform_indices = @transform_25, window_bounds = array<i64: 2, 1, 32>}, {pipeline_mode = #tpu.pipeline_mode<synchronous>, transform_indices = @transform_26, window_bounds = array<i64: 2, 32, 64>}, {pipeline_mode = #tpu.pipeline_mode<synchronous>, transform_indices = @transform_27, window_bounds = array<i64: 2, 1, 64>}, {pipeline_mode = #tpu.pipeline_mode<synchronous>, transform_indices = @transform_28, window_bounds = array<i64: 2, 32, 32>}, {pipeline_mode = #tpu.pipeline_mode<synchronous>, transform_indices = @transform_29, window_bounds = array<i64: 2, 1, 32>}, {pipeline_mode = #tpu.pipeline_mode<synchronous>, transform_indices = @transform_30, window_bounds = array<i64: 2, 1, 32>}, {pipeline_mode = #tpu.pipeline_mode<synchronous>, transform_indices = @transform_31, window_bounds = array<i64: 2, 1, 32>}, {pipeline_mode = #tpu.pipeline_mode<synchronous>, transform_indices = @transform_32, window_bounds = array<i64: 2, 32, 64>}, {pipeline_mode = #tpu.pipeline_mode<synchronous>, transform_indices = @transform_33, window_bounds = array<i64: 2, 1, 64>}, {pipeline_mode = #tpu.pipeline_mode<synchronous>, transform_indices = @transform_34, window_bounds = array<i64: 2, 64, 32>}, {pipeline_mode = #tpu.pipeline_mode<synchronous>, transform_indices = @transform_35, window_bounds = array<i64: 2, 1, 32>}, {pipeline_mode = #tpu.pipeline_mode<synchronous>, transform_indices = @transform_36, window_bounds = array<i64: 2, 1, 32>}, {pipeline_mode = #tpu.pipeline_mode<synchronous>, transform_indices = @transform_37, window_bounds = array<i64: 2, 1, 32>}, {pipeline_mode = #tpu.pipeline_mode<synchronous>, transform_indices = @transform_38, window_bounds = array<i64: 32, 32>}, {pipeline_mode = #tpu.pipeline_mode<synchronous>, transform_indices = @transform_39, window_bounds = array<i64: 1, 32>}, {transform_indices = @transform_40, window_bounds = array<i64: 1, 8, 32>}]} {
    %c0 = arith.constant 0 : index
    %c0_0 = arith.constant 0 : index
    %c0_1 = arith.constant 0 : index
    %0 = vector.load %arg1[%c0, %c0_0, %c0_1] : memref<1x8x16xf32, #tpu.memory_space<vmem>>, vector<1x8x16xf32>
    %1 = vector.shape_cast %0 : vector<1x8x16xf32> to vector<8x16xf32>
    %c0_2 = arith.constant 0 : index
    %c0_3 = arith.constant 0 : index
    %2 = vector.load %arg5[%c0_2, %c0_3] : memref<16x32xbf16, #tpu.memory_space<vmem>>, vector<16x32xbf16>
    %3 = arith.truncf %1 : vector<8x16xf32> to vector<8x16xbf16>
    %cst = arith.constant dense<0.000000e+00> : vector<8x32xf32>
    %4 = tpu.matmul %3, %2, %cst {dimension_numbers = #tpu.dot_dimension_numbers<[1], [0], [0], [1], [0, 0, 1, 1], [], []>} : vector<8x16xbf16>, vector<16x32xbf16>, vector<8x32xf32> -> vector<8x32xf32>
    %c0_4 = arith.constant 0 : index
    %c0_5 = arith.constant 0 : index
    %5 = vector.load %arg6[%c0_4, %c0_5] : memref<1x32xf32, #tpu.memory_space<vmem>>, vector<1x32xf32>
    %6 = vector.broadcast %5 : vector<1x32xf32> to vector<8x32xf32>
    %7 = arith.addf %4, %6 : vector<8x32xf32>
    %c0_6 = arith.constant 0 : index
    %c0_7 = arith.constant 0 : index
    %8 = vector.load %arg3[%c0_6, %c0_7] : memref<8x32xf32, #tpu.memory_space<vmem>>, vector<8x32xf32>
    %9 = arith.addf %7, %8 : vector<8x32xf32>
    %c0_8 = arith.constant 0 : index
    %c0_9 = arith.constant 0 : index
    %c0_10 = arith.constant 0 : index
    %10 = vector.load %arg7[%c0_8, %c0_9, %c0_10] : memref<2x32x96xbf16, #tpu.memory_space<vmem>>, vector<1x32x96xbf16>
    %11 = vector.shape_cast %10 : vector<1x32x96xbf16> to vector<32x96xbf16>
    %12 = arith.truncf %9 : vector<8x32xf32> to vector<8x32xbf16>
    %cst_11 = arith.constant dense<0.000000e+00> : vector<8x96xf32>
    %13 = tpu.matmul %12, %11, %cst_11 {dimension_numbers = #tpu.dot_dimension_numbers<[1], [0], [0], [1], [0, 0, 1, 1], [], []>} : vector<8x32xbf16>, vector<32x96xbf16>, vector<8x96xf32> -> vector<8x96xf32>
    %c0_12 = arith.constant 0 : index
    %c0_13 = arith.constant 0 : index
    %c0_14 = arith.constant 0 : index
    %14 = vector.load %arg8[%c0_12, %c0_13, %c0_14] : memref<2x1x96xf32, #tpu.memory_space<vmem>>, vector<1x1x96xf32>
    %15 = vector.shape_cast %14 : vector<1x1x96xf32> to vector<1x96xf32>
    %16 = vector.broadcast %15 : vector<1x96xf32> to vector<8x96xf32>
    %17 = arith.addf %13, %16 : vector<8x96xf32>
    %18 = vector.extract_strided_slice %17 {offsets = [0, 0], sizes = [8, 32], strides = [1, 1]} : vector<8x96xf32> to vector<8x32xf32>
    %19 = vector.extract_strided_slice %17 {offsets = [0, 32], sizes = [8, 32], strides = [1, 1]} : vector<8x96xf32> to vector<8x32xf32>
    %20 = vector.extract_strided_slice %17 {offsets = [0, 64], sizes = [8, 32], strides = [1, 1]} : vector<8x96xf32> to vector<8x32xf32>
    %c0_15 = arith.constant 0 : index
    %c0_16 = arith.constant 0 : index
    %c0_17 = arith.constant 0 : index
    %21 = vector.load %arg9[%c0_15, %c0_16, %c0_17] : memref<2x32x32xf32, #tpu.memory_space<vmem>>, vector<1x32x32xf32>
    %22 = vector.shape_cast %21 : vector<1x32x32xf32> to vector<32x32xf32>
    %23 = vector.extract_strided_slice %18 {offsets = [0, 0], sizes = [8, 8], strides = [1, 1]} : vector<8x32xf32> to vector<8x8xf32>
    %24 = arith.truncf %23 : vector<8x8xf32> to vector<8x8xbf16>
    %25 = vector.extract_strided_slice %19 {offsets = [0, 0], sizes = [8, 8], strides = [1, 1]} : vector<8x32xf32> to vector<8x8xf32>
    %26 = arith.truncf %25 : vector<8x8xf32> to vector<8x8xbf16>
    %27 = vector.extract_strided_slice %20 {offsets = [0, 0], sizes = [8, 8], strides = [1, 1]} : vector<8x32xf32> to vector<8x8xf32>
    %28 = arith.truncf %27 : vector<8x8xf32> to vector<8x8xbf16>
    %cst_18 = arith.constant dense<0.000000e+00> : vector<8x8xf32>
    %29 = tpu.matmul %24, %26, %cst_18 {dimension_numbers = #tpu.dot_dimension_numbers<[1], [1], [0], [0], [0, 0, 1, 0], [], []>} : vector<8x8xbf16>, vector<8x8xbf16>, vector<8x8xf32> -> vector<8x8xf32>
    %cst_19 = arith.constant 0.353553385 : f32
    %30 = vector.broadcast %cst_19 : f32 to vector<8x8xf32>
    %31 = arith.mulf %29, %30 : vector<8x8xf32>
    %cst_20 = arith.constant dense<0xFF800000> : vector<8xf32>
    %32 = vector.multi_reduction <maximumf>, %31, %cst_20 [1] : vector<8x8xf32> to vector<8xf32>
    %33 = vector.shape_cast %32 : vector<8xf32> to vector<8x1xf32>
    %34 = vector.broadcast %33 : vector<8x1xf32> to vector<8x8xf32>
    %35 = arith.subf %31, %34 : vector<8x8xf32>
    %36 = math.exp %35 : vector<8x8xf32>
    %cst_21 = arith.constant dense<0.000000e+00> : vector<8xf32>
    %37 = vector.multi_reduction <add>, %36, %cst_21 [1] : vector<8x8xf32> to vector<8xf32>
    %38 = vector.shape_cast %37 : vector<8xf32> to vector<8x1xf32>
    %39 = tpu.reciprocal %38 {approx = true} : vector<8x1xf32> -> vector<8x1xf32>
    %40 = vector.broadcast %39 : vector<8x1xf32> to vector<8x8xf32>
    %41 = arith.mulf %36, %40 : vector<8x8xf32>
    %42 = arith.truncf %41 : vector<8x8xf32> to vector<8x8xbf16>
    %cst_22 = arith.constant dense<0.000000e+00> : vector<8x8xf32>
    %43 = tpu.matmul %42, %28, %cst_22 {dimension_numbers = #tpu.dot_dimension_numbers<[1], [0], [0], [1], [0, 0, 1, 1], [], []>} : vector<8x8xbf16>, vector<8x8xbf16>, vector<8x8xf32> -> vector<8x8xf32>
    %44 = arith.truncf %43 : vector<8x8xf32> to vector<8x8xbf16>
    %45 = vector.extract_strided_slice %22 {offsets = [0, 0], sizes = [8, 32], strides = [1, 1]} : vector<32x32xf32> to vector<8x32xf32>
    %46 = arith.truncf %45 : vector<8x32xf32> to vector<8x32xbf16>
    %cst_23 = arith.constant dense<0.000000e+00> : vector<8x32xf32>
    %47 = tpu.matmul %44, %46, %cst_23 {dimension_numbers = #tpu.dot_dimension_numbers<[1], [0], [0], [1], [0, 0, 1, 1], [], []>} : vector<8x8xbf16>, vector<8x32xbf16>, vector<8x32xf32> -> vector<8x32xf32>
    %48 = vector.extract_strided_slice %18 {offsets = [0, 8], sizes = [8, 8], strides = [1, 1]} : vector<8x32xf32> to vector<8x8xf32>
    %49 = arith.truncf %48 : vector<8x8xf32> to vector<8x8xbf16>
    %50 = vector.extract_strided_slice %19 {offsets = [0, 8], sizes = [8, 8], strides = [1, 1]} : vector<8x32xf32> to vector<8x8xf32>
    %51 = arith.truncf %50 : vector<8x8xf32> to vector<8x8xbf16>
    %52 = vector.extract_strided_slice %20 {offsets = [0, 8], sizes = [8, 8], strides = [1, 1]} : vector<8x32xf32> to vector<8x8xf32>
    %53 = arith.truncf %52 : vector<8x8xf32> to vector<8x8xbf16>
    %cst_24 = arith.constant dense<0.000000e+00> : vector<8x8xf32>
    %54 = tpu.matmul %49, %51, %cst_24 {dimension_numbers = #tpu.dot_dimension_numbers<[1], [1], [0], [0], [0, 0, 1, 0], [], []>} : vector<8x8xbf16>, vector<8x8xbf16>, vector<8x8xf32> -> vector<8x8xf32>
    %cst_25 = arith.constant 0.353553385 : f32
    %55 = vector.broadcast %cst_25 : f32 to vector<8x8xf32>
    %56 = arith.mulf %54, %55 : vector<8x8xf32>
    %cst_26 = arith.constant dense<0xFF800000> : vector<8xf32>
    %57 = vector.multi_reduction <maximumf>, %56, %cst_26 [1] : vector<8x8xf32> to vector<8xf32>
    %58 = vector.shape_cast %57 : vector<8xf32> to vector<8x1xf32>
    %59 = vector.broadcast %58 : vector<8x1xf32> to vector<8x8xf32>
    %60 = arith.subf %56, %59 : vector<8x8xf32>
    %61 = math.exp %60 : vector<8x8xf32>
    %cst_27 = arith.constant dense<0.000000e+00> : vector<8xf32>
    %62 = vector.multi_reduction <add>, %61, %cst_27 [1] : vector<8x8xf32> to vector<8xf32>
    %63 = vector.shape_cast %62 : vector<8xf32> to vector<8x1xf32>
    %64 = tpu.reciprocal %63 {approx = true} : vector<8x1xf32> -> vector<8x1xf32>
    %65 = vector.broadcast %64 : vector<8x1xf32> to vector<8x8xf32>
    %66 = arith.mulf %61, %65 : vector<8x8xf32>
    %67 = arith.truncf %66 : vector<8x8xf32> to vector<8x8xbf16>
    %cst_28 = arith.constant dense<0.000000e+00> : vector<8x8xf32>
    %68 = tpu.matmul %67, %53, %cst_28 {dimension_numbers = #tpu.dot_dimension_numbers<[1], [0], [0], [1], [0, 0, 1, 1], [], []>} : vector<8x8xbf16>, vector<8x8xbf16>, vector<8x8xf32> -> vector<8x8xf32>
    %69 = arith.truncf %68 : vector<8x8xf32> to vector<8x8xbf16>
    %70 = vector.extract_strided_slice %22 {offsets = [8, 0], sizes = [8, 32], strides = [1, 1]} : vector<32x32xf32> to vector<8x32xf32>
    %71 = arith.truncf %70 : vector<8x32xf32> to vector<8x32xbf16>
    %cst_29 = arith.constant dense<0.000000e+00> : vector<8x32xf32>
    %72 = tpu.matmul %69, %71, %cst_29 {dimension_numbers = #tpu.dot_dimension_numbers<[1], [0], [0], [1], [0, 0, 1, 1], [], []>} : vector<8x8xbf16>, vector<8x32xbf16>, vector<8x32xf32> -> vector<8x32xf32>
    %73 = arith.addf %47, %72 : vector<8x32xf32>
    %74 = vector.extract_strided_slice %18 {offsets = [0, 16], sizes = [8, 8], strides = [1, 1]} : vector<8x32xf32> to vector<8x8xf32>
    %75 = arith.truncf %74 : vector<8x8xf32> to vector<8x8xbf16>
    %76 = vector.extract_strided_slice %19 {offsets = [0, 16], sizes = [8, 8], strides = [1, 1]} : vector<8x32xf32> to vector<8x8xf32>
    %77 = arith.truncf %76 : vector<8x8xf32> to vector<8x8xbf16>
    %78 = vector.extract_strided_slice %20 {offsets = [0, 16], sizes = [8, 8], strides = [1, 1]} : vector<8x32xf32> to vector<8x8xf32>
    %79 = arith.truncf %78 : vector<8x8xf32> to vector<8x8xbf16>
    %cst_30 = arith.constant dense<0.000000e+00> : vector<8x8xf32>
    %80 = tpu.matmul %75, %77, %cst_30 {dimension_numbers = #tpu.dot_dimension_numbers<[1], [1], [0], [0], [0, 0, 1, 0], [], []>} : vector<8x8xbf16>, vector<8x8xbf16>, vector<8x8xf32> -> vector<8x8xf32>
    %cst_31 = arith.constant 0.353553385 : f32
    %81 = vector.broadcast %cst_31 : f32 to vector<8x8xf32>
    %82 = arith.mulf %80, %81 : vector<8x8xf32>
    %cst_32 = arith.constant dense<0xFF800000> : vector<8xf32>
    %83 = vector.multi_reduction <maximumf>, %82, %cst_32 [1] : vector<8x8xf32> to vector<8xf32>
    %84 = vector.shape_cast %83 : vector<8xf32> to vector<8x1xf32>
    %85 = vector.broadcast %84 : vector<8x1xf32> to vector<8x8xf32>
    %86 = arith.subf %82, %85 : vector<8x8xf32>
    %87 = math.exp %86 : vector<8x8xf32>
    %cst_33 = arith.constant dense<0.000000e+00> : vector<8xf32>
    %88 = vector.multi_reduction <add>, %87, %cst_33 [1] : vector<8x8xf32> to vector<8xf32>
    %89 = vector.shape_cast %88 : vector<8xf32> to vector<8x1xf32>
    %90 = tpu.reciprocal %89 {approx = true} : vector<8x1xf32> -> vector<8x1xf32>
    %91 = vector.broadcast %90 : vector<8x1xf32> to vector<8x8xf32>
    %92 = arith.mulf %87, %91 : vector<8x8xf32>
    %93 = arith.truncf %92 : vector<8x8xf32> to vector<8x8xbf16>
    %cst_34 = arith.constant dense<0.000000e+00> : vector<8x8xf32>
    %94 = tpu.matmul %93, %79, %cst_34 {dimension_numbers = #tpu.dot_dimension_numbers<[1], [0], [0], [1], [0, 0, 1, 1], [], []>} : vector<8x8xbf16>, vector<8x8xbf16>, vector<8x8xf32> -> vector<8x8xf32>
    %95 = arith.truncf %94 : vector<8x8xf32> to vector<8x8xbf16>
    %96 = vector.extract_strided_slice %22 {offsets = [16, 0], sizes = [8, 32], strides = [1, 1]} : vector<32x32xf32> to vector<8x32xf32>
    %97 = arith.truncf %96 : vector<8x32xf32> to vector<8x32xbf16>
    %cst_35 = arith.constant dense<0.000000e+00> : vector<8x32xf32>
    %98 = tpu.matmul %95, %97, %cst_35 {dimension_numbers = #tpu.dot_dimension_numbers<[1], [0], [0], [1], [0, 0, 1, 1], [], []>} : vector<8x8xbf16>, vector<8x32xbf16>, vector<8x32xf32> -> vector<8x32xf32>
    %99 = arith.addf %73, %98 : vector<8x32xf32>
    %100 = vector.extract_strided_slice %18 {offsets = [0, 24], sizes = [8, 8], strides = [1, 1]} : vector<8x32xf32> to vector<8x8xf32>
    %101 = arith.truncf %100 : vector<8x8xf32> to vector<8x8xbf16>
    %102 = vector.extract_strided_slice %19 {offsets = [0, 24], sizes = [8, 8], strides = [1, 1]} : vector<8x32xf32> to vector<8x8xf32>
    %103 = arith.truncf %102 : vector<8x8xf32> to vector<8x8xbf16>
    %104 = vector.extract_strided_slice %20 {offsets = [0, 24], sizes = [8, 8], strides = [1, 1]} : vector<8x32xf32> to vector<8x8xf32>
    %105 = arith.truncf %104 : vector<8x8xf32> to vector<8x8xbf16>
    %cst_36 = arith.constant dense<0.000000e+00> : vector<8x8xf32>
    %106 = tpu.matmul %101, %103, %cst_36 {dimension_numbers = #tpu.dot_dimension_numbers<[1], [1], [0], [0], [0, 0, 1, 0], [], []>} : vector<8x8xbf16>, vector<8x8xbf16>, vector<8x8xf32> -> vector<8x8xf32>
    %cst_37 = arith.constant 0.353553385 : f32
    %107 = vector.broadcast %cst_37 : f32 to vector<8x8xf32>
    %108 = arith.mulf %106, %107 : vector<8x8xf32>
    %cst_38 = arith.constant dense<0xFF800000> : vector<8xf32>
    %109 = vector.multi_reduction <maximumf>, %108, %cst_38 [1] : vector<8x8xf32> to vector<8xf32>
    %110 = vector.shape_cast %109 : vector<8xf32> to vector<8x1xf32>
    %111 = vector.broadcast %110 : vector<8x1xf32> to vector<8x8xf32>
    %112 = arith.subf %108, %111 : vector<8x8xf32>
    %113 = math.exp %112 : vector<8x8xf32>
    %cst_39 = arith.constant dense<0.000000e+00> : vector<8xf32>
    %114 = vector.multi_reduction <add>, %113, %cst_39 [1] : vector<8x8xf32> to vector<8xf32>
    %115 = vector.shape_cast %114 : vector<8xf32> to vector<8x1xf32>
    %116 = tpu.reciprocal %115 {approx = true} : vector<8x1xf32> -> vector<8x1xf32>
    %117 = vector.broadcast %116 : vector<8x1xf32> to vector<8x8xf32>
    %118 = arith.mulf %113, %117 : vector<8x8xf32>
    %119 = arith.truncf %118 : vector<8x8xf32> to vector<8x8xbf16>
    %cst_40 = arith.constant dense<0.000000e+00> : vector<8x8xf32>
    %120 = tpu.matmul %119, %105, %cst_40 {dimension_numbers = #tpu.dot_dimension_numbers<[1], [0], [0], [1], [0, 0, 1, 1], [], []>} : vector<8x8xbf16>, vector<8x8xbf16>, vector<8x8xf32> -> vector<8x8xf32>
    %121 = arith.truncf %120 : vector<8x8xf32> to vector<8x8xbf16>
    %122 = vector.extract_strided_slice %22 {offsets = [24, 0], sizes = [8, 32], strides = [1, 1]} : vector<32x32xf32> to vector<8x32xf32>
    %123 = arith.truncf %122 : vector<8x32xf32> to vector<8x32xbf16>
    %cst_41 = arith.constant dense<0.000000e+00> : vector<8x32xf32>
    %124 = tpu.matmul %121, %123, %cst_41 {dimension_numbers = #tpu.dot_dimension_numbers<[1], [0], [0], [1], [0, 0, 1, 1], [], []>} : vector<8x8xbf16>, vector<8x32xbf16>, vector<8x32xf32> -> vector<8x32xf32>
    %125 = arith.addf %99, %124 : vector<8x32xf32>
    %c0_42 = arith.constant 0 : index
    %c0_43 = arith.constant 0 : index
    %c0_44 = arith.constant 0 : index
    %126 = vector.load %arg10[%c0_42, %c0_43, %c0_44] : memref<2x1x32xf32, #tpu.memory_space<vmem>>, vector<1x1x32xf32>
    %127 = vector.shape_cast %126 : vector<1x1x32xf32> to vector<1x32xf32>
    %128 = vector.broadcast %127 : vector<1x32xf32> to vector<8x32xf32>
    %129 = arith.addf %125, %128 : vector<8x32xf32>
    %130 = arith.addf %9, %129 : vector<8x32xf32>
    %c0_45 = arith.constant 0 : index
    %c0_46 = arith.constant 0 : index
    %c0_47 = arith.constant 0 : index
    %131 = vector.load %arg11[%c0_45, %c0_46, %c0_47] : memref<2x1x32xf32, #tpu.memory_space<vmem>>, vector<1x1x32xf32>
    %132 = vector.shape_cast %131 : vector<1x1x32xf32> to vector<1x32xf32>
    %c0_48 = arith.constant 0 : index
    %c0_49 = arith.constant 0 : index
    %c0_50 = arith.constant 0 : index
    %133 = vector.load %arg12[%c0_48, %c0_49, %c0_50] : memref<2x1x32xf32, #tpu.memory_space<vmem>>, vector<1x1x32xf32>
    %134 = vector.shape_cast %133 : vector<1x1x32xf32> to vector<1x32xf32>
    %cst_51 = arith.constant dense<0.000000e+00> : vector<8xf32>
    %135 = vector.multi_reduction <add>, %130, %cst_51 [1] : vector<8x32xf32> to vector<8xf32>
    %136 = vector.shape_cast %135 : vector<8xf32> to vector<8x1xf32>
    %cst_52 = arith.constant 3.200000e+01 : f32
    %137 = vector.broadcast %cst_52 : f32 to vector<8x1xf32>
    %138 = arith.divf %136, %137 : vector<8x1xf32>
    %139 = vector.broadcast %138 : vector<8x1xf32> to vector<8x32xf32>
    %140 = arith.subf %130, %139 : vector<8x32xf32>
    %141 = arith.mulf %140, %140 : vector<8x32xf32>
    %cst_53 = arith.constant dense<0.000000e+00> : vector<8xf32>
    %142 = vector.multi_reduction <add>, %141, %cst_53 [1] : vector<8x32xf32> to vector<8xf32>
    %143 = vector.shape_cast %142 : vector<8xf32> to vector<8x1xf32>
    %cst_54 = arith.constant 3.200000e+01 : f32
    %144 = vector.broadcast %cst_54 : f32 to vector<8x1xf32>
    %145 = arith.divf %143, %144 : vector<8x1xf32>
    %146 = vector.broadcast %138 : vector<8x1xf32> to vector<8x32xf32>
    %147 = arith.subf %130, %146 : vector<8x32xf32>
    %cst_55 = arith.constant 9.99999974E-6 : f32
    %148 = vector.broadcast %cst_55 : f32 to vector<8x1xf32>
    %149 = arith.addf %145, %148 : vector<8x1xf32>
    %150 = math.rsqrt %149 : vector<8x1xf32>
    %151 = vector.broadcast %150 : vector<8x1xf32> to vector<8x32xf32>
    %152 = arith.mulf %147, %151 : vector<8x32xf32>
    %153 = vector.broadcast %132 : vector<1x32xf32> to vector<8x32xf32>
    %154 = arith.mulf %152, %153 : vector<8x32xf32>
    %155 = vector.broadcast %134 : vector<1x32xf32> to vector<8x32xf32>
    %156 = arith.addf %154, %155 : vector<8x32xf32>
    %c0_56 = arith.constant 0 : index
    %c0_57 = arith.constant 0 : index
    %c0_58 = arith.constant 0 : index
    %157 = vector.load %arg13[%c0_56, %c0_57, %c0_58] : memref<2x32x64xbf16, #tpu.memory_space<vmem>>, vector<1x32x64xbf16>
    %158 = vector.shape_cast %157 : vector<1x32x64xbf16> to vector<32x64xbf16>
    %159 = arith.truncf %156 : vector<8x32xf32> to vector<8x32xbf16>
    %cst_59 = arith.constant dense<0.000000e+00> : vector<8x64xf32>
    %160 = tpu.matmul %159, %158, %cst_59 {dimension_numbers = #tpu.dot_dimension_numbers<[1], [0], [0], [1], [0, 0, 1, 1], [], []>} : vector<8x32xbf16>, vector<32x64xbf16>, vector<8x64xf32> -> vector<8x64xf32>
    %c0_60 = arith.constant 0 : index
    %c0_61 = arith.constant 0 : index
    %c0_62 = arith.constant 0 : index
    %161 = vector.load %arg14[%c0_60, %c0_61, %c0_62] : memref<2x1x64xf32, #tpu.memory_space<vmem>>, vector<1x1x64xf32>
    %162 = vector.shape_cast %161 : vector<1x1x64xf32> to vector<1x64xf32>
    %163 = vector.broadcast %162 : vector<1x64xf32> to vector<8x64xf32>
    %164 = arith.addf %160, %163 : vector<8x64xf32>
    %cst_63 = arith.constant 0.000000e+00 : f32
    %165 = vector.broadcast %cst_63 : f32 to vector<8x64xf32>
    %166 = arith.maximumf %164, %165 : vector<8x64xf32>
    %c0_64 = arith.constant 0 : index
    %c0_65 = arith.constant 0 : index
    %c0_66 = arith.constant 0 : index
    %167 = vector.load %arg15[%c0_64, %c0_65, %c0_66] : memref<2x64x32xbf16, #tpu.memory_space<vmem>>, vector<1x64x32xbf16>
    %168 = vector.shape_cast %167 : vector<1x64x32xbf16> to vector<64x32xbf16>
    %169 = arith.truncf %166 : vector<8x64xf32> to vector<8x64xbf16>
    %cst_67 = arith.constant dense<0.000000e+00> : vector<8x32xf32>
    %170 = tpu.matmul %169, %168, %cst_67 {dimension_numbers = #tpu.dot_dimension_numbers<[1], [0], [0], [1], [0, 0, 1, 1], [], []>} : vector<8x64xbf16>, vector<64x32xbf16>, vector<8x32xf32> -> vector<8x32xf32>
    %c0_68 = arith.constant 0 : index
    %c0_69 = arith.constant 0 : index
    %c0_70 = arith.constant 0 : index
    %171 = vector.load %arg16[%c0_68, %c0_69, %c0_70] : memref<2x1x32xf32, #tpu.memory_space<vmem>>, vector<1x1x32xf32>
    %172 = vector.shape_cast %171 : vector<1x1x32xf32> to vector<1x32xf32>
    %173 = vector.broadcast %172 : vector<1x32xf32> to vector<8x32xf32>
    %174 = arith.addf %170, %173 : vector<8x32xf32>
    %175 = arith.addf %156, %174 : vector<8x32xf32>
    %c0_71 = arith.constant 0 : index
    %c0_72 = arith.constant 0 : index
    %c0_73 = arith.constant 0 : index
    %176 = vector.load %arg17[%c0_71, %c0_72, %c0_73] : memref<2x1x32xf32, #tpu.memory_space<vmem>>, vector<1x1x32xf32>
    %177 = vector.shape_cast %176 : vector<1x1x32xf32> to vector<1x32xf32>
    %c0_74 = arith.constant 0 : index
    %c0_75 = arith.constant 0 : index
    %c0_76 = arith.constant 0 : index
    %178 = vector.load %arg18[%c0_74, %c0_75, %c0_76] : memref<2x1x32xf32, #tpu.memory_space<vmem>>, vector<1x1x32xf32>
    %179 = vector.shape_cast %178 : vector<1x1x32xf32> to vector<1x32xf32>
    %cst_77 = arith.constant dense<0.000000e+00> : vector<8xf32>
    %180 = vector.multi_reduction <add>, %175, %cst_77 [1] : vector<8x32xf32> to vector<8xf32>
    %181 = vector.shape_cast %180 : vector<8xf32> to vector<8x1xf32>
    %cst_78 = arith.constant 3.200000e+01 : f32
    %182 = vector.broadcast %cst_78 : f32 to vector<8x1xf32>
    %183 = arith.divf %181, %182 : vector<8x1xf32>
    %184 = vector.broadcast %183 : vector<8x1xf32> to vector<8x32xf32>
    %185 = arith.subf %175, %184 : vector<8x32xf32>
    %186 = arith.mulf %185, %185 : vector<8x32xf32>
    %cst_79 = arith.constant dense<0.000000e+00> : vector<8xf32>
    %187 = vector.multi_reduction <add>, %186, %cst_79 [1] : vector<8x32xf32> to vector<8xf32>
    %188 = vector.shape_cast %187 : vector<8xf32> to vector<8x1xf32>
    %cst_80 = arith.constant 3.200000e+01 : f32
    %189 = vector.broadcast %cst_80 : f32 to vector<8x1xf32>
    %190 = arith.divf %188, %189 : vector<8x1xf32>
    %191 = vector.broadcast %183 : vector<8x1xf32> to vector<8x32xf32>
    %192 = arith.subf %175, %191 : vector<8x32xf32>
    %cst_81 = arith.constant 9.99999974E-6 : f32
    %193 = vector.broadcast %cst_81 : f32 to vector<8x1xf32>
    %194 = arith.addf %190, %193 : vector<8x1xf32>
    %195 = math.rsqrt %194 : vector<8x1xf32>
    %196 = vector.broadcast %195 : vector<8x1xf32> to vector<8x32xf32>
    %197 = arith.mulf %192, %196 : vector<8x32xf32>
    %198 = vector.broadcast %177 : vector<1x32xf32> to vector<8x32xf32>
    %199 = arith.mulf %197, %198 : vector<8x32xf32>
    %200 = vector.broadcast %179 : vector<1x32xf32> to vector<8x32xf32>
    %201 = arith.addf %199, %200 : vector<8x32xf32>
    %c1 = arith.constant 1 : index
    %c0_82 = arith.constant 0 : index
    %c0_83 = arith.constant 0 : index
    %202 = vector.load %arg7[%c1, %c0_82, %c0_83] : memref<2x32x96xbf16, #tpu.memory_space<vmem>>, vector<1x32x96xbf16>
    %203 = vector.shape_cast %202 : vector<1x32x96xbf16> to vector<32x96xbf16>
    %204 = arith.truncf %201 : vector<8x32xf32> to vector<8x32xbf16>
    %cst_84 = arith.constant dense<0.000000e+00> : vector<8x96xf32>
    %205 = tpu.matmul %204, %203, %cst_84 {dimension_numbers = #tpu.dot_dimension_numbers<[1], [0], [0], [1], [0, 0, 1, 1], [], []>} : vector<8x32xbf16>, vector<32x96xbf16>, vector<8x96xf32> -> vector<8x96xf32>
    %c1_85 = arith.constant 1 : index
    %c0_86 = arith.constant 0 : index
    %c0_87 = arith.constant 0 : index
    %206 = vector.load %arg8[%c1_85, %c0_86, %c0_87] : memref<2x1x96xf32, #tpu.memory_space<vmem>>, vector<1x1x96xf32>
    %207 = vector.shape_cast %206 : vector<1x1x96xf32> to vector<1x96xf32>
    %208 = vector.broadcast %207 : vector<1x96xf32> to vector<8x96xf32>
    %209 = arith.addf %205, %208 : vector<8x96xf32>
    %210 = vector.extract_strided_slice %209 {offsets = [0, 0], sizes = [8, 32], strides = [1, 1]} : vector<8x96xf32> to vector<8x32xf32>
    %211 = vector.extract_strided_slice %209 {offsets = [0, 32], sizes = [8, 32], strides = [1, 1]} : vector<8x96xf32> to vector<8x32xf32>
    %212 = vector.extract_strided_slice %209 {offsets = [0, 64], sizes = [8, 32], strides = [1, 1]} : vector<8x96xf32> to vector<8x32xf32>
    %c1_88 = arith.constant 1 : index
    %c0_89 = arith.constant 0 : index
    %c0_90 = arith.constant 0 : index
    %213 = vector.load %arg9[%c1_88, %c0_89, %c0_90] : memref<2x32x32xf32, #tpu.memory_space<vmem>>, vector<1x32x32xf32>
    %214 = vector.shape_cast %213 : vector<1x32x32xf32> to vector<32x32xf32>
    %215 = vector.extract_strided_slice %210 {offsets = [0, 0], sizes = [8, 8], strides = [1, 1]} : vector<8x32xf32> to vector<8x8xf32>
    %216 = arith.truncf %215 : vector<8x8xf32> to vector<8x8xbf16>
    %217 = vector.extract_strided_slice %211 {offsets = [0, 0], sizes = [8, 8], strides = [1, 1]} : vector<8x32xf32> to vector<8x8xf32>
    %218 = arith.truncf %217 : vector<8x8xf32> to vector<8x8xbf16>
    %219 = vector.extract_strided_slice %212 {offsets = [0, 0], sizes = [8, 8], strides = [1, 1]} : vector<8x32xf32> to vector<8x8xf32>
    %220 = arith.truncf %219 : vector<8x8xf32> to vector<8x8xbf16>
    %cst_91 = arith.constant dense<0.000000e+00> : vector<8x8xf32>
    %221 = tpu.matmul %216, %218, %cst_91 {dimension_numbers = #tpu.dot_dimension_numbers<[1], [1], [0], [0], [0, 0, 1, 0], [], []>} : vector<8x8xbf16>, vector<8x8xbf16>, vector<8x8xf32> -> vector<8x8xf32>
    %cst_92 = arith.constant 0.353553385 : f32
    %222 = vector.broadcast %cst_92 : f32 to vector<8x8xf32>
    %223 = arith.mulf %221, %222 : vector<8x8xf32>
    %cst_93 = arith.constant dense<0xFF800000> : vector<8xf32>
    %224 = vector.multi_reduction <maximumf>, %223, %cst_93 [1] : vector<8x8xf32> to vector<8xf32>
    %225 = vector.shape_cast %224 : vector<8xf32> to vector<8x1xf32>
    %226 = vector.broadcast %225 : vector<8x1xf32> to vector<8x8xf32>
    %227 = arith.subf %223, %226 : vector<8x8xf32>
    %228 = math.exp %227 : vector<8x8xf32>
    %cst_94 = arith.constant dense<0.000000e+00> : vector<8xf32>
    %229 = vector.multi_reduction <add>, %228, %cst_94 [1] : vector<8x8xf32> to vector<8xf32>
    %230 = vector.shape_cast %229 : vector<8xf32> to vector<8x1xf32>
    %231 = tpu.reciprocal %230 {approx = true} : vector<8x1xf32> -> vector<8x1xf32>
    %232 = vector.broadcast %231 : vector<8x1xf32> to vector<8x8xf32>
    %233 = arith.mulf %228, %232 : vector<8x8xf32>
    %234 = arith.truncf %233 : vector<8x8xf32> to vector<8x8xbf16>
    %cst_95 = arith.constant dense<0.000000e+00> : vector<8x8xf32>
    %235 = tpu.matmul %234, %220, %cst_95 {dimension_numbers = #tpu.dot_dimension_numbers<[1], [0], [0], [1], [0, 0, 1, 1], [], []>} : vector<8x8xbf16>, vector<8x8xbf16>, vector<8x8xf32> -> vector<8x8xf32>
    %236 = arith.truncf %235 : vector<8x8xf32> to vector<8x8xbf16>
    %237 = vector.extract_strided_slice %214 {offsets = [0, 0], sizes = [8, 32], strides = [1, 1]} : vector<32x32xf32> to vector<8x32xf32>
    %238 = arith.truncf %237 : vector<8x32xf32> to vector<8x32xbf16>
    %cst_96 = arith.constant dense<0.000000e+00> : vector<8x32xf32>
    %239 = tpu.matmul %236, %238, %cst_96 {dimension_numbers = #tpu.dot_dimension_numbers<[1], [0], [0], [1], [0, 0, 1, 1], [], []>} : vector<8x8xbf16>, vector<8x32xbf16>, vector<8x32xf32> -> vector<8x32xf32>
    %240 = vector.extract_strided_slice %210 {offsets = [0, 8], sizes = [8, 8], strides = [1, 1]} : vector<8x32xf32> to vector<8x8xf32>
    %241 = arith.truncf %240 : vector<8x8xf32> to vector<8x8xbf16>
    %242 = vector.extract_strided_slice %211 {offsets = [0, 8], sizes = [8, 8], strides = [1, 1]} : vector<8x32xf32> to vector<8x8xf32>
    %243 = arith.truncf %242 : vector<8x8xf32> to vector<8x8xbf16>
    %244 = vector.extract_strided_slice %212 {offsets = [0, 8], sizes = [8, 8], strides = [1, 1]} : vector<8x32xf32> to vector<8x8xf32>
    %245 = arith.truncf %244 : vector<8x8xf32> to vector<8x8xbf16>
    %cst_97 = arith.constant dense<0.000000e+00> : vector<8x8xf32>
    %246 = tpu.matmul %241, %243, %cst_97 {dimension_numbers = #tpu.dot_dimension_numbers<[1], [1], [0], [0], [0, 0, 1, 0], [], []>} : vector<8x8xbf16>, vector<8x8xbf16>, vector<8x8xf32> -> vector<8x8xf32>
    %cst_98 = arith.constant 0.353553385 : f32
    %247 = vector.broadcast %cst_98 : f32 to vector<8x8xf32>
    %248 = arith.mulf %246, %247 : vector<8x8xf32>
    %cst_99 = arith.constant dense<0xFF800000> : vector<8xf32>
    %249 = vector.multi_reduction <maximumf>, %248, %cst_99 [1] : vector<8x8xf32> to vector<8xf32>
    %250 = vector.shape_cast %249 : vector<8xf32> to vector<8x1xf32>
    %251 = vector.broadcast %250 : vector<8x1xf32> to vector<8x8xf32>
    %252 = arith.subf %248, %251 : vector<8x8xf32>
    %253 = math.exp %252 : vector<8x8xf32>
    %cst_100 = arith.constant dense<0.000000e+00> : vector<8xf32>
    %254 = vector.multi_reduction <add>, %253, %cst_100 [1] : vector<8x8xf32> to vector<8xf32>
    %255 = vector.shape_cast %254 : vector<8xf32> to vector<8x1xf32>
    %256 = tpu.reciprocal %255 {approx = true} : vector<8x1xf32> -> vector<8x1xf32>
    %257 = vector.broadcast %256 : vector<8x1xf32> to vector<8x8xf32>
    %258 = arith.mulf %253, %257 : vector<8x8xf32>
    %259 = arith.truncf %258 : vector<8x8xf32> to vector<8x8xbf16>
    %cst_101 = arith.constant dense<0.000000e+00> : vector<8x8xf32>
    %260 = tpu.matmul %259, %245, %cst_101 {dimension_numbers = #tpu.dot_dimension_numbers<[1], [0], [0], [1], [0, 0, 1, 1], [], []>} : vector<8x8xbf16>, vector<8x8xbf16>, vector<8x8xf32> -> vector<8x8xf32>
    %261 = arith.truncf %260 : vector<8x8xf32> to vector<8x8xbf16>
    %262 = vector.extract_strided_slice %214 {offsets = [8, 0], sizes = [8, 32], strides = [1, 1]} : vector<32x32xf32> to vector<8x32xf32>
    %263 = arith.truncf %262 : vector<8x32xf32> to vector<8x32xbf16>
    %cst_102 = arith.constant dense<0.000000e+00> : vector<8x32xf32>
    %264 = tpu.matmul %261, %263, %cst_102 {dimension_numbers = #tpu.dot_dimension_numbers<[1], [0], [0], [1], [0, 0, 1, 1], [], []>} : vector<8x8xbf16>, vector<8x32xbf16>, vector<8x32xf32> -> vector<8x32xf32>
    %265 = arith.addf %239, %264 : vector<8x32xf32>
    %266 = vector.extract_strided_slice %210 {offsets = [0, 16], sizes = [8, 8], strides = [1, 1]} : vector<8x32xf32> to vector<8x8xf32>
    %267 = arith.truncf %266 : vector<8x8xf32> to vector<8x8xbf16>
    %268 = vector.extract_strided_slice %211 {offsets = [0, 16], sizes = [8, 8], strides = [1, 1]} : vector<8x32xf32> to vector<8x8xf32>
    %269 = arith.truncf %268 : vector<8x8xf32> to vector<8x8xbf16>
    %270 = vector.extract_strided_slice %212 {offsets = [0, 16], sizes = [8, 8], strides = [1, 1]} : vector<8x32xf32> to vector<8x8xf32>
    %271 = arith.truncf %270 : vector<8x8xf32> to vector<8x8xbf16>
    %cst_103 = arith.constant dense<0.000000e+00> : vector<8x8xf32>
    %272 = tpu.matmul %267, %269, %cst_103 {dimension_numbers = #tpu.dot_dimension_numbers<[1], [1], [0], [0], [0, 0, 1, 0], [], []>} : vector<8x8xbf16>, vector<8x8xbf16>, vector<8x8xf32> -> vector<8x8xf32>
    %cst_104 = arith.constant 0.353553385 : f32
    %273 = vector.broadcast %cst_104 : f32 to vector<8x8xf32>
    %274 = arith.mulf %272, %273 : vector<8x8xf32>
    %cst_105 = arith.constant dense<0xFF800000> : vector<8xf32>
    %275 = vector.multi_reduction <maximumf>, %274, %cst_105 [1] : vector<8x8xf32> to vector<8xf32>
    %276 = vector.shape_cast %275 : vector<8xf32> to vector<8x1xf32>
    %277 = vector.broadcast %276 : vector<8x1xf32> to vector<8x8xf32>
    %278 = arith.subf %274, %277 : vector<8x8xf32>
    %279 = math.exp %278 : vector<8x8xf32>
    %cst_106 = arith.constant dense<0.000000e+00> : vector<8xf32>
    %280 = vector.multi_reduction <add>, %279, %cst_106 [1] : vector<8x8xf32> to vector<8xf32>
    %281 = vector.shape_cast %280 : vector<8xf32> to vector<8x1xf32>
    %282 = tpu.reciprocal %281 {approx = true} : vector<8x1xf32> -> vector<8x1xf32>
    %283 = vector.broadcast %282 : vector<8x1xf32> to vector<8x8xf32>
    %284 = arith.mulf %279, %283 : vector<8x8xf32>
    %285 = arith.truncf %284 : vector<8x8xf32> to vector<8x8xbf16>
    %cst_107 = arith.constant dense<0.000000e+00> : vector<8x8xf32>
    %286 = tpu.matmul %285, %271, %cst_107 {dimension_numbers = #tpu.dot_dimension_numbers<[1], [0], [0], [1], [0, 0, 1, 1], [], []>} : vector<8x8xbf16>, vector<8x8xbf16>, vector<8x8xf32> -> vector<8x8xf32>
    %287 = arith.truncf %286 : vector<8x8xf32> to vector<8x8xbf16>
    %288 = vector.extract_strided_slice %214 {offsets = [16, 0], sizes = [8, 32], strides = [1, 1]} : vector<32x32xf32> to vector<8x32xf32>
    %289 = arith.truncf %288 : vector<8x32xf32> to vector<8x32xbf16>
    %cst_108 = arith.constant dense<0.000000e+00> : vector<8x32xf32>
    %290 = tpu.matmul %287, %289, %cst_108 {dimension_numbers = #tpu.dot_dimension_numbers<[1], [0], [0], [1], [0, 0, 1, 1], [], []>} : vector<8x8xbf16>, vector<8x32xbf16>, vector<8x32xf32> -> vector<8x32xf32>
    %291 = arith.addf %265, %290 : vector<8x32xf32>
    %292 = vector.extract_strided_slice %210 {offsets = [0, 24], sizes = [8, 8], strides = [1, 1]} : vector<8x32xf32> to vector<8x8xf32>
    %293 = arith.truncf %292 : vector<8x8xf32> to vector<8x8xbf16>
    %294 = vector.extract_strided_slice %211 {offsets = [0, 24], sizes = [8, 8], strides = [1, 1]} : vector<8x32xf32> to vector<8x8xf32>
    %295 = arith.truncf %294 : vector<8x8xf32> to vector<8x8xbf16>
    %296 = vector.extract_strided_slice %212 {offsets = [0, 24], sizes = [8, 8], strides = [1, 1]} : vector<8x32xf32> to vector<8x8xf32>
    %297 = arith.truncf %296 : vector<8x8xf32> to vector<8x8xbf16>
    %cst_109 = arith.constant dense<0.000000e+00> : vector<8x8xf32>
    %298 = tpu.matmul %293, %295, %cst_109 {dimension_numbers = #tpu.dot_dimension_numbers<[1], [1], [0], [0], [0, 0, 1, 0], [], []>} : vector<8x8xbf16>, vector<8x8xbf16>, vector<8x8xf32> -> vector<8x8xf32>
    %cst_110 = arith.constant 0.353553385 : f32
    %299 = vector.broadcast %cst_110 : f32 to vector<8x8xf32>
    %300 = arith.mulf %298, %299 : vector<8x8xf32>
    %cst_111 = arith.constant dense<0xFF800000> : vector<8xf32>
    %301 = vector.multi_reduction <maximumf>, %300, %cst_111 [1] : vector<8x8xf32> to vector<8xf32>
    %302 = vector.shape_cast %301 : vector<8xf32> to vector<8x1xf32>
    %303 = vector.broadcast %302 : vector<8x1xf32> to vector<8x8xf32>
    %304 = arith.subf %300, %303 : vector<8x8xf32>
    %305 = math.exp %304 : vector<8x8xf32>
    %cst_112 = arith.constant dense<0.000000e+00> : vector<8xf32>
    %306 = vector.multi_reduction <add>, %305, %cst_112 [1] : vector<8x8xf32> to vector<8xf32>
    %307 = vector.shape_cast %306 : vector<8xf32> to vector<8x1xf32>
    %308 = tpu.reciprocal %307 {approx = true} : vector<8x1xf32> -> vector<8x1xf32>
    %309 = vector.broadcast %308 : vector<8x1xf32> to vector<8x8xf32>
    %310 = arith.mulf %305, %309 : vector<8x8xf32>
    %311 = arith.truncf %310 : vector<8x8xf32> to vector<8x8xbf16>
    %cst_113 = arith.constant dense<0.000000e+00> : vector<8x8xf32>
    %312 = tpu.matmul %311, %297, %cst_113 {dimension_numbers = #tpu.dot_dimension_numbers<[1], [0], [0], [1], [0, 0, 1, 1], [], []>} : vector<8x8xbf16>, vector<8x8xbf16>, vector<8x8xf32> -> vector<8x8xf32>
    %313 = arith.truncf %312 : vector<8x8xf32> to vector<8x8xbf16>
    %314 = vector.extract_strided_slice %214 {offsets = [24, 0], sizes = [8, 32], strides = [1, 1]} : vector<32x32xf32> to vector<8x32xf32>
    %315 = arith.truncf %314 : vector<8x32xf32> to vector<8x32xbf16>
    %cst_114 = arith.constant dense<0.000000e+00> : vector<8x32xf32>
    %316 = tpu.matmul %313, %315, %cst_114 {dimension_numbers = #tpu.dot_dimension_numbers<[1], [0], [0], [1], [0, 0, 1, 1], [], []>} : vector<8x8xbf16>, vector<8x32xbf16>, vector<8x32xf32> -> vector<8x32xf32>
    %317 = arith.addf %291, %316 : vector<8x32xf32>
    %c1_115 = arith.constant 1 : index
    %c0_116 = arith.constant 0 : index
    %c0_117 = arith.constant 0 : index
    %318 = vector.load %arg10[%c1_115, %c0_116, %c0_117] : memref<2x1x32xf32, #tpu.memory_space<vmem>>, vector<1x1x32xf32>
    %319 = vector.shape_cast %318 : vector<1x1x32xf32> to vector<1x32xf32>
    %320 = vector.broadcast %319 : vector<1x32xf32> to vector<8x32xf32>
    %321 = arith.addf %317, %320 : vector<8x32xf32>
    %322 = arith.addf %201, %321 : vector<8x32xf32>
    %c1_118 = arith.constant 1 : index
    %c0_119 = arith.constant 0 : index
    %c0_120 = arith.constant 0 : index
    %323 = vector.load %arg11[%c1_118, %c0_119, %c0_120] : memref<2x1x32xf32, #tpu.memory_space<vmem>>, vector<1x1x32xf32>
    %324 = vector.shape_cast %323 : vector<1x1x32xf32> to vector<1x32xf32>
    %c1_121 = arith.constant 1 : index
    %c0_122 = arith.constant 0 : index
    %c0_123 = arith.constant 0 : index
    %325 = vector.load %arg12[%c1_121, %c0_122, %c0_123] : memref<2x1x32xf32, #tpu.memory_space<vmem>>, vector<1x1x32xf32>
    %326 = vector.shape_cast %325 : vector<1x1x32xf32> to vector<1x32xf32>
    %cst_124 = arith.constant dense<0.000000e+00> : vector<8xf32>
    %327 = vector.multi_reduction <add>, %322, %cst_124 [1] : vector<8x32xf32> to vector<8xf32>
    %328 = vector.shape_cast %327 : vector<8xf32> to vector<8x1xf32>
    %cst_125 = arith.constant 3.200000e+01 : f32
    %329 = vector.broadcast %cst_125 : f32 to vector<8x1xf32>
    %330 = arith.divf %328, %329 : vector<8x1xf32>
    %331 = vector.broadcast %330 : vector<8x1xf32> to vector<8x32xf32>
    %332 = arith.subf %322, %331 : vector<8x32xf32>
    %333 = arith.mulf %332, %332 : vector<8x32xf32>
    %cst_126 = arith.constant dense<0.000000e+00> : vector<8xf32>
    %334 = vector.multi_reduction <add>, %333, %cst_126 [1] : vector<8x32xf32> to vector<8xf32>
    %335 = vector.shape_cast %334 : vector<8xf32> to vector<8x1xf32>
    %cst_127 = arith.constant 3.200000e+01 : f32
    %336 = vector.broadcast %cst_127 : f32 to vector<8x1xf32>
    %337 = arith.divf %335, %336 : vector<8x1xf32>
    %338 = vector.broadcast %330 : vector<8x1xf32> to vector<8x32xf32>
    %339 = arith.subf %322, %338 : vector<8x32xf32>
    %cst_128 = arith.constant 9.99999974E-6 : f32
    %340 = vector.broadcast %cst_128 : f32 to vector<8x1xf32>
    %341 = arith.addf %337, %340 : vector<8x1xf32>
    %342 = math.rsqrt %341 : vector<8x1xf32>
    %343 = vector.broadcast %342 : vector<8x1xf32> to vector<8x32xf32>
    %344 = arith.mulf %339, %343 : vector<8x32xf32>
    %345 = vector.broadcast %324 : vector<1x32xf32> to vector<8x32xf32>
    %346 = arith.mulf %344, %345 : vector<8x32xf32>
    %347 = vector.broadcast %326 : vector<1x32xf32> to vector<8x32xf32>
    %348 = arith.addf %346, %347 : vector<8x32xf32>
    %c1_129 = arith.constant 1 : index
    %c0_130 = arith.constant 0 : index
    %c0_131 = arith.constant 0 : index
    %349 = vector.load %arg13[%c1_129, %c0_130, %c0_131] : memref<2x32x64xbf16, #tpu.memory_space<vmem>>, vector<1x32x64xbf16>
    %350 = vector.shape_cast %349 : vector<1x32x64xbf16> to vector<32x64xbf16>
    %351 = arith.truncf %348 : vector<8x32xf32> to vector<8x32xbf16>
    %cst_132 = arith.constant dense<0.000000e+00> : vector<8x64xf32>
    %352 = tpu.matmul %351, %350, %cst_132 {dimension_numbers = #tpu.dot_dimension_numbers<[1], [0], [0], [1], [0, 0, 1, 1], [], []>} : vector<8x32xbf16>, vector<32x64xbf16>, vector<8x64xf32> -> vector<8x64xf32>
    %c1_133 = arith.constant 1 : index
    %c0_134 = arith.constant 0 : index
    %c0_135 = arith.constant 0 : index
    %353 = vector.load %arg14[%c1_133, %c0_134, %c0_135] : memref<2x1x64xf32, #tpu.memory_space<vmem>>, vector<1x1x64xf32>
    %354 = vector.shape_cast %353 : vector<1x1x64xf32> to vector<1x64xf32>
    %355 = vector.broadcast %354 : vector<1x64xf32> to vector<8x64xf32>
    %356 = arith.addf %352, %355 : vector<8x64xf32>
    %cst_136 = arith.constant 0.000000e+00 : f32
    %357 = vector.broadcast %cst_136 : f32 to vector<8x64xf32>
    %358 = arith.maximumf %356, %357 : vector<8x64xf32>
    %c1_137 = arith.constant 1 : index
    %c0_138 = arith.constant 0 : index
    %c0_139 = arith.constant 0 : index
    %359 = vector.load %arg15[%c1_137, %c0_138, %c0_139] : memref<2x64x32xbf16, #tpu.memory_space<vmem>>, vector<1x64x32xbf16>
    %360 = vector.shape_cast %359 : vector<1x64x32xbf16> to vector<64x32xbf16>
    %361 = arith.truncf %358 : vector<8x64xf32> to vector<8x64xbf16>
    %cst_140 = arith.constant dense<0.000000e+00> : vector<8x32xf32>
    %362 = tpu.matmul %361, %360, %cst_140 {dimension_numbers = #tpu.dot_dimension_numbers<[1], [0], [0], [1], [0, 0, 1, 1], [], []>} : vector<8x64xbf16>, vector<64x32xbf16>, vector<8x32xf32> -> vector<8x32xf32>
    %c1_141 = arith.constant 1 : index
    %c0_142 = arith.constant 0 : index
    %c0_143 = arith.constant 0 : index
    %363 = vector.load %arg16[%c1_141, %c0_142, %c0_143] : memref<2x1x32xf32, #tpu.memory_space<vmem>>, vector<1x1x32xf32>
    %364 = vector.shape_cast %363 : vector<1x1x32xf32> to vector<1x32xf32>
    %365 = vector.broadcast %364 : vector<1x32xf32> to vector<8x32xf32>
    %366 = arith.addf %362, %365 : vector<8x32xf32>
    %367 = arith.addf %348, %366 : vector<8x32xf32>
    %c1_144 = arith.constant 1 : index
    %c0_145 = arith.constant 0 : index
    %c0_146 = arith.constant 0 : index
    %368 = vector.load %arg17[%c1_144, %c0_145, %c0_146] : memref<2x1x32xf32, #tpu.memory_space<vmem>>, vector<1x1x32xf32>
    %369 = vector.shape_cast %368 : vector<1x1x32xf32> to vector<1x32xf32>
    %c1_147 = arith.constant 1 : index
    %c0_148 = arith.constant 0 : index
    %c0_149 = arith.constant 0 : index
    %370 = vector.load %arg18[%c1_147, %c0_148, %c0_149] : memref<2x1x32xf32, #tpu.memory_space<vmem>>, vector<1x1x32xf32>
    %371 = vector.shape_cast %370 : vector<1x1x32xf32> to vector<1x32xf32>
    %cst_150 = arith.constant dense<0.000000e+00> : vector<8xf32>
    %372 = vector.multi_reduction <add>, %367, %cst_150 [1] : vector<8x32xf32> to vector<8xf32>
    %373 = vector.shape_cast %372 : vector<8xf32> to vector<8x1xf32>
    %cst_151 = arith.constant 3.200000e+01 : f32
    %374 = vector.broadcast %cst_151 : f32 to vector<8x1xf32>
    %375 = arith.divf %373, %374 : vector<8x1xf32>
    %376 = vector.broadcast %375 : vector<8x1xf32> to vector<8x32xf32>
    %377 = arith.subf %367, %376 : vector<8x32xf32>
    %378 = arith.mulf %377, %377 : vector<8x32xf32>
    %cst_152 = arith.constant dense<0.000000e+00> : vector<8xf32>
    %379 = vector.multi_reduction <add>, %378, %cst_152 [1] : vector<8x32xf32> to vector<8xf32>
    %380 = vector.shape_cast %379 : vector<8xf32> to vector<8x1xf32>
    %cst_153 = arith.constant 3.200000e+01 : f32
    %381 = vector.broadcast %cst_153 : f32 to vector<8x1xf32>
    %382 = arith.divf %380, %381 : vector<8x1xf32>
    %383 = vector.broadcast %375 : vector<8x1xf32> to vector<8x32xf32>
    %384 = arith.subf %367, %383 : vector<8x32xf32>
    %cst_154 = arith.constant 9.99999974E-6 : f32
    %385 = vector.broadcast %cst_154 : f32 to vector<8x1xf32>
    %386 = arith.addf %382, %385 : vector<8x1xf32>
    %387 = math.rsqrt %386 : vector<8x1xf32>
    %388 = vector.broadcast %387 : vector<8x1xf32> to vector<8x32xf32>
    %389 = arith.mulf %384, %388 : vector<8x32xf32>
    %390 = vector.broadcast %369 : vector<1x32xf32> to vector<8x32xf32>
    %391 = arith.mulf %389, %390 : vector<8x32xf32>
    %392 = vector.broadcast %371 : vector<1x32xf32> to vector<8x32xf32>
    %393 = arith.addf %391, %392 : vector<8x32xf32>
    %c0_155 = arith.constant 0 : index
    %c0_156 = arith.constant 0 : index
    %c0_157 = arith.constant 0 : index
    %394 = vector.load %arg2[%c0_155, %c0_156, %c0_157] : memref<1x8x16xf32, #tpu.memory_space<vmem>>, vector<1x8x16xf32>
    %395 = vector.shape_cast %394 : vector<1x8x16xf32> to vector<8x16xf32>
    %c0_158 = arith.constant 0 : index
    %c0_159 = arith.constant 0 : index
    %396 = vector.load %arg5[%c0_158, %c0_159] : memref<16x32xbf16, #tpu.memory_space<vmem>>, vector<16x32xbf16>
    %397 = arith.truncf %395 : vector<8x16xf32> to vector<8x16xbf16>
    %cst_160 = arith.constant dense<0.000000e+00> : vector<8x32xf32>
    %398 = tpu.matmul %397, %396, %cst_160 {dimension_numbers = #tpu.dot_dimension_numbers<[1], [0], [0], [1], [0, 0, 1, 1], [], []>} : vector<8x16xbf16>, vector<16x32xbf16>, vector<8x32xf32> -> vector<8x32xf32>
    %c0_161 = arith.constant 0 : index
    %c0_162 = arith.constant 0 : index
    %399 = vector.load %arg6[%c0_161, %c0_162] : memref<1x32xf32, #tpu.memory_space<vmem>>, vector<1x32xf32>
    %400 = vector.broadcast %399 : vector<1x32xf32> to vector<8x32xf32>
    %401 = arith.addf %398, %400 : vector<8x32xf32>
    %c0_163 = arith.constant 0 : index
    %c0_164 = arith.constant 0 : index
    %402 = vector.load %arg4[%c0_163, %c0_164] : memref<8x32xf32, #tpu.memory_space<vmem>>, vector<8x32xf32>
    %403 = arith.addf %401, %402 : vector<8x32xf32>
    %c0_165 = arith.constant 0 : index
    %c0_166 = arith.constant 0 : index
    %c0_167 = arith.constant 0 : index
    %404 = vector.load %arg19[%c0_165, %c0_166, %c0_167] : memref<2x32x96xbf16, #tpu.memory_space<vmem>>, vector<1x32x96xbf16>
    %405 = vector.shape_cast %404 : vector<1x32x96xbf16> to vector<32x96xbf16>
    %406 = arith.truncf %403 : vector<8x32xf32> to vector<8x32xbf16>
    %cst_168 = arith.constant dense<0.000000e+00> : vector<8x96xf32>
    %407 = tpu.matmul %406, %405, %cst_168 {dimension_numbers = #tpu.dot_dimension_numbers<[1], [0], [0], [1], [0, 0, 1, 1], [], []>} : vector<8x32xbf16>, vector<32x96xbf16>, vector<8x96xf32> -> vector<8x96xf32>
    %c0_169 = arith.constant 0 : index
    %c0_170 = arith.constant 0 : index
    %c0_171 = arith.constant 0 : index
    %408 = vector.load %arg20[%c0_169, %c0_170, %c0_171] : memref<2x1x96xf32, #tpu.memory_space<vmem>>, vector<1x1x96xf32>
    %409 = vector.shape_cast %408 : vector<1x1x96xf32> to vector<1x96xf32>
    %410 = vector.broadcast %409 : vector<1x96xf32> to vector<8x96xf32>
    %411 = arith.addf %407, %410 : vector<8x96xf32>
    %412 = vector.extract_strided_slice %411 {offsets = [0, 0], sizes = [8, 32], strides = [1, 1]} : vector<8x96xf32> to vector<8x32xf32>
    %413 = vector.extract_strided_slice %411 {offsets = [0, 32], sizes = [8, 32], strides = [1, 1]} : vector<8x96xf32> to vector<8x32xf32>
    %414 = vector.extract_strided_slice %411 {offsets = [0, 64], sizes = [8, 32], strides = [1, 1]} : vector<8x96xf32> to vector<8x32xf32>
    %c0_172 = arith.constant 0 : index
    %c0_173 = arith.constant 0 : index
    %c0_174 = arith.constant 0 : index
    %415 = vector.load %arg21[%c0_172, %c0_173, %c0_174] : memref<2x32x32xf32, #tpu.memory_space<vmem>>, vector<1x32x32xf32>
    %416 = vector.shape_cast %415 : vector<1x32x32xf32> to vector<32x32xf32>
    %417 = tpu.iota {dimensions = array<i32: 0>} : vector<8x8xi32>
    %418 = tpu.iota {dimensions = array<i32: 1>} : vector<8x8xi32>
    %419 = arith.cmpi sle, %418, %417 : vector<8x8xi32>
    %cst_175 = arith.constant 0.000000e+00 : f32
    %cst_176 = arith.constant -1.000000e+30 : f32
    %420 = vector.broadcast %cst_175 : f32 to vector<8x8xf32>
    %421 = vector.broadcast %cst_176 : f32 to vector<8x8xf32>
    %422 = arith.select %419, %420, %421 : vector<8x8xi1>, vector<8x8xf32>
    %423 = vector.extract_strided_slice %412 {offsets = [0, 0], sizes = [8, 8], strides = [1, 1]} : vector<8x32xf32> to vector<8x8xf32>
    %424 = arith.truncf %423 : vector<8x8xf32> to vector<8x8xbf16>
    %425 = vector.extract_strided_slice %413 {offsets = [0, 0], sizes = [8, 8], strides = [1, 1]} : vector<8x32xf32> to vector<8x8xf32>
    %426 = arith.truncf %425 : vector<8x8xf32> to vector<8x8xbf16>
    %427 = vector.extract_strided_slice %414 {offsets = [0, 0], sizes = [8, 8], strides = [1, 1]} : vector<8x32xf32> to vector<8x8xf32>
    %428 = arith.truncf %427 : vector<8x8xf32> to vector<8x8xbf16>
    %cst_177 = arith.constant dense<0.000000e+00> : vector<8x8xf32>
    %429 = tpu.matmul %424, %426, %cst_177 {dimension_numbers = #tpu.dot_dimension_numbers<[1], [1], [0], [0], [0, 0, 1, 0], [], []>} : vector<8x8xbf16>, vector<8x8xbf16>, vector<8x8xf32> -> vector<8x8xf32>
    %cst_178 = arith.constant 0.353553385 : f32
    %430 = vector.broadcast %cst_178 : f32 to vector<8x8xf32>
    %431 = arith.mulf %429, %430 : vector<8x8xf32>
    %432 = arith.addf %431, %422 : vector<8x8xf32>
    %cst_179 = arith.constant dense<0xFF800000> : vector<8xf32>
    %433 = vector.multi_reduction <maximumf>, %432, %cst_179 [1] : vector<8x8xf32> to vector<8xf32>
    %434 = vector.shape_cast %433 : vector<8xf32> to vector<8x1xf32>
    %435 = vector.broadcast %434 : vector<8x1xf32> to vector<8x8xf32>
    %436 = arith.subf %432, %435 : vector<8x8xf32>
    %437 = math.exp %436 : vector<8x8xf32>
    %cst_180 = arith.constant dense<0.000000e+00> : vector<8xf32>
    %438 = vector.multi_reduction <add>, %437, %cst_180 [1] : vector<8x8xf32> to vector<8xf32>
    %439 = vector.shape_cast %438 : vector<8xf32> to vector<8x1xf32>
    %440 = tpu.reciprocal %439 {approx = true} : vector<8x1xf32> -> vector<8x1xf32>
    %441 = vector.broadcast %440 : vector<8x1xf32> to vector<8x8xf32>
    %442 = arith.mulf %437, %441 : vector<8x8xf32>
    %443 = arith.truncf %442 : vector<8x8xf32> to vector<8x8xbf16>
    %cst_181 = arith.constant dense<0.000000e+00> : vector<8x8xf32>
    %444 = tpu.matmul %443, %428, %cst_181 {dimension_numbers = #tpu.dot_dimension_numbers<[1], [0], [0], [1], [0, 0, 1, 1], [], []>} : vector<8x8xbf16>, vector<8x8xbf16>, vector<8x8xf32> -> vector<8x8xf32>
    %445 = arith.truncf %444 : vector<8x8xf32> to vector<8x8xbf16>
    %446 = vector.extract_strided_slice %416 {offsets = [0, 0], sizes = [8, 32], strides = [1, 1]} : vector<32x32xf32> to vector<8x32xf32>
    %447 = arith.truncf %446 : vector<8x32xf32> to vector<8x32xbf16>
    %cst_182 = arith.constant dense<0.000000e+00> : vector<8x32xf32>
    %448 = tpu.matmul %445, %447, %cst_182 {dimension_numbers = #tpu.dot_dimension_numbers<[1], [0], [0], [1], [0, 0, 1, 1], [], []>} : vector<8x8xbf16>, vector<8x32xbf16>, vector<8x32xf32> -> vector<8x32xf32>
    %449 = vector.extract_strided_slice %412 {offsets = [0, 8], sizes = [8, 8], strides = [1, 1]} : vector<8x32xf32> to vector<8x8xf32>
    %450 = arith.truncf %449 : vector<8x8xf32> to vector<8x8xbf16>
    %451 = vector.extract_strided_slice %413 {offsets = [0, 8], sizes = [8, 8], strides = [1, 1]} : vector<8x32xf32> to vector<8x8xf32>
    %452 = arith.truncf %451 : vector<8x8xf32> to vector<8x8xbf16>
    %453 = vector.extract_strided_slice %414 {offsets = [0, 8], sizes = [8, 8], strides = [1, 1]} : vector<8x32xf32> to vector<8x8xf32>
    %454 = arith.truncf %453 : vector<8x8xf32> to vector<8x8xbf16>
    %cst_183 = arith.constant dense<0.000000e+00> : vector<8x8xf32>
    %455 = tpu.matmul %450, %452, %cst_183 {dimension_numbers = #tpu.dot_dimension_numbers<[1], [1], [0], [0], [0, 0, 1, 0], [], []>} : vector<8x8xbf16>, vector<8x8xbf16>, vector<8x8xf32> -> vector<8x8xf32>
    %cst_184 = arith.constant 0.353553385 : f32
    %456 = vector.broadcast %cst_184 : f32 to vector<8x8xf32>
    %457 = arith.mulf %455, %456 : vector<8x8xf32>
    %458 = arith.addf %457, %422 : vector<8x8xf32>
    %cst_185 = arith.constant dense<0xFF800000> : vector<8xf32>
    %459 = vector.multi_reduction <maximumf>, %458, %cst_185 [1] : vector<8x8xf32> to vector<8xf32>
    %460 = vector.shape_cast %459 : vector<8xf32> to vector<8x1xf32>
    %461 = vector.broadcast %460 : vector<8x1xf32> to vector<8x8xf32>
    %462 = arith.subf %458, %461 : vector<8x8xf32>
    %463 = math.exp %462 : vector<8x8xf32>
    %cst_186 = arith.constant dense<0.000000e+00> : vector<8xf32>
    %464 = vector.multi_reduction <add>, %463, %cst_186 [1] : vector<8x8xf32> to vector<8xf32>
    %465 = vector.shape_cast %464 : vector<8xf32> to vector<8x1xf32>
    %466 = tpu.reciprocal %465 {approx = true} : vector<8x1xf32> -> vector<8x1xf32>
    %467 = vector.broadcast %466 : vector<8x1xf32> to vector<8x8xf32>
    %468 = arith.mulf %463, %467 : vector<8x8xf32>
    %469 = arith.truncf %468 : vector<8x8xf32> to vector<8x8xbf16>
    %cst_187 = arith.constant dense<0.000000e+00> : vector<8x8xf32>
    %470 = tpu.matmul %469, %454, %cst_187 {dimension_numbers = #tpu.dot_dimension_numbers<[1], [0], [0], [1], [0, 0, 1, 1], [], []>} : vector<8x8xbf16>, vector<8x8xbf16>, vector<8x8xf32> -> vector<8x8xf32>
    %471 = arith.truncf %470 : vector<8x8xf32> to vector<8x8xbf16>
    %472 = vector.extract_strided_slice %416 {offsets = [8, 0], sizes = [8, 32], strides = [1, 1]} : vector<32x32xf32> to vector<8x32xf32>
    %473 = arith.truncf %472 : vector<8x32xf32> to vector<8x32xbf16>
    %cst_188 = arith.constant dense<0.000000e+00> : vector<8x32xf32>
    %474 = tpu.matmul %471, %473, %cst_188 {dimension_numbers = #tpu.dot_dimension_numbers<[1], [0], [0], [1], [0, 0, 1, 1], [], []>} : vector<8x8xbf16>, vector<8x32xbf16>, vector<8x32xf32> -> vector<8x32xf32>
    %475 = arith.addf %448, %474 : vector<8x32xf32>
    %476 = vector.extract_strided_slice %412 {offsets = [0, 16], sizes = [8, 8], strides = [1, 1]} : vector<8x32xf32> to vector<8x8xf32>
    %477 = arith.truncf %476 : vector<8x8xf32> to vector<8x8xbf16>
    %478 = vector.extract_strided_slice %413 {offsets = [0, 16], sizes = [8, 8], strides = [1, 1]} : vector<8x32xf32> to vector<8x8xf32>
    %479 = arith.truncf %478 : vector<8x8xf32> to vector<8x8xbf16>
    %480 = vector.extract_strided_slice %414 {offsets = [0, 16], sizes = [8, 8], strides = [1, 1]} : vector<8x32xf32> to vector<8x8xf32>
    %481 = arith.truncf %480 : vector<8x8xf32> to vector<8x8xbf16>
    %cst_189 = arith.constant dense<0.000000e+00> : vector<8x8xf32>
    %482 = tpu.matmul %477, %479, %cst_189 {dimension_numbers = #tpu.dot_dimension_numbers<[1], [1], [0], [0], [0, 0, 1, 0], [], []>} : vector<8x8xbf16>, vector<8x8xbf16>, vector<8x8xf32> -> vector<8x8xf32>
    %cst_190 = arith.constant 0.353553385 : f32
    %483 = vector.broadcast %cst_190 : f32 to vector<8x8xf32>
    %484 = arith.mulf %482, %483 : vector<8x8xf32>
    %485 = arith.addf %484, %422 : vector<8x8xf32>
    %cst_191 = arith.constant dense<0xFF800000> : vector<8xf32>
    %486 = vector.multi_reduction <maximumf>, %485, %cst_191 [1] : vector<8x8xf32> to vector<8xf32>
    %487 = vector.shape_cast %486 : vector<8xf32> to vector<8x1xf32>
    %488 = vector.broadcast %487 : vector<8x1xf32> to vector<8x8xf32>
    %489 = arith.subf %485, %488 : vector<8x8xf32>
    %490 = math.exp %489 : vector<8x8xf32>
    %cst_192 = arith.constant dense<0.000000e+00> : vector<8xf32>
    %491 = vector.multi_reduction <add>, %490, %cst_192 [1] : vector<8x8xf32> to vector<8xf32>
    %492 = vector.shape_cast %491 : vector<8xf32> to vector<8x1xf32>
    %493 = tpu.reciprocal %492 {approx = true} : vector<8x1xf32> -> vector<8x1xf32>
    %494 = vector.broadcast %493 : vector<8x1xf32> to vector<8x8xf32>
    %495 = arith.mulf %490, %494 : vector<8x8xf32>
    %496 = arith.truncf %495 : vector<8x8xf32> to vector<8x8xbf16>
    %cst_193 = arith.constant dense<0.000000e+00> : vector<8x8xf32>
    %497 = tpu.matmul %496, %481, %cst_193 {dimension_numbers = #tpu.dot_dimension_numbers<[1], [0], [0], [1], [0, 0, 1, 1], [], []>} : vector<8x8xbf16>, vector<8x8xbf16>, vector<8x8xf32> -> vector<8x8xf32>
    %498 = arith.truncf %497 : vector<8x8xf32> to vector<8x8xbf16>
    %499 = vector.extract_strided_slice %416 {offsets = [16, 0], sizes = [8, 32], strides = [1, 1]} : vector<32x32xf32> to vector<8x32xf32>
    %500 = arith.truncf %499 : vector<8x32xf32> to vector<8x32xbf16>
    %cst_194 = arith.constant dense<0.000000e+00> : vector<8x32xf32>
    %501 = tpu.matmul %498, %500, %cst_194 {dimension_numbers = #tpu.dot_dimension_numbers<[1], [0], [0], [1], [0, 0, 1, 1], [], []>} : vector<8x8xbf16>, vector<8x32xbf16>, vector<8x32xf32> -> vector<8x32xf32>
    %502 = arith.addf %475, %501 : vector<8x32xf32>
    %503 = vector.extract_strided_slice %412 {offsets = [0, 24], sizes = [8, 8], strides = [1, 1]} : vector<8x32xf32> to vector<8x8xf32>
    %504 = arith.truncf %503 : vector<8x8xf32> to vector<8x8xbf16>
    %505 = vector.extract_strided_slice %413 {offsets = [0, 24], sizes = [8, 8], strides = [1, 1]} : vector<8x32xf32> to vector<8x8xf32>
    %506 = arith.truncf %505 : vector<8x8xf32> to vector<8x8xbf16>
    %507 = vector.extract_strided_slice %414 {offsets = [0, 24], sizes = [8, 8], strides = [1, 1]} : vector<8x32xf32> to vector<8x8xf32>
    %508 = arith.truncf %507 : vector<8x8xf32> to vector<8x8xbf16>
    %cst_195 = arith.constant dense<0.000000e+00> : vector<8x8xf32>
    %509 = tpu.matmul %504, %506, %cst_195 {dimension_numbers = #tpu.dot_dimension_numbers<[1], [1], [0], [0], [0, 0, 1, 0], [], []>} : vector<8x8xbf16>, vector<8x8xbf16>, vector<8x8xf32> -> vector<8x8xf32>
    %cst_196 = arith.constant 0.353553385 : f32
    %510 = vector.broadcast %cst_196 : f32 to vector<8x8xf32>
    %511 = arith.mulf %509, %510 : vector<8x8xf32>
    %512 = arith.addf %511, %422 : vector<8x8xf32>
    %cst_197 = arith.constant dense<0xFF800000> : vector<8xf32>
    %513 = vector.multi_reduction <maximumf>, %512, %cst_197 [1] : vector<8x8xf32> to vector<8xf32>
    %514 = vector.shape_cast %513 : vector<8xf32> to vector<8x1xf32>
    %515 = vector.broadcast %514 : vector<8x1xf32> to vector<8x8xf32>
    %516 = arith.subf %512, %515 : vector<8x8xf32>
    %517 = math.exp %516 : vector<8x8xf32>
    %cst_198 = arith.constant dense<0.000000e+00> : vector<8xf32>
    %518 = vector.multi_reduction <add>, %517, %cst_198 [1] : vector<8x8xf32> to vector<8xf32>
    %519 = vector.shape_cast %518 : vector<8xf32> to vector<8x1xf32>
    %520 = tpu.reciprocal %519 {approx = true} : vector<8x1xf32> -> vector<8x1xf32>
    %521 = vector.broadcast %520 : vector<8x1xf32> to vector<8x8xf32>
    %522 = arith.mulf %517, %521 : vector<8x8xf32>
    %523 = arith.truncf %522 : vector<8x8xf32> to vector<8x8xbf16>
    %cst_199 = arith.constant dense<0.000000e+00> : vector<8x8xf32>
    %524 = tpu.matmul %523, %508, %cst_199 {dimension_numbers = #tpu.dot_dimension_numbers<[1], [0], [0], [1], [0, 0, 1, 1], [], []>} : vector<8x8xbf16>, vector<8x8xbf16>, vector<8x8xf32> -> vector<8x8xf32>
    %525 = arith.truncf %524 : vector<8x8xf32> to vector<8x8xbf16>
    %526 = vector.extract_strided_slice %416 {offsets = [24, 0], sizes = [8, 32], strides = [1, 1]} : vector<32x32xf32> to vector<8x32xf32>
    %527 = arith.truncf %526 : vector<8x32xf32> to vector<8x32xbf16>
    %cst_200 = arith.constant dense<0.000000e+00> : vector<8x32xf32>
    %528 = tpu.matmul %525, %527, %cst_200 {dimension_numbers = #tpu.dot_dimension_numbers<[1], [0], [0], [1], [0, 0, 1, 1], [], []>} : vector<8x8xbf16>, vector<8x32xbf16>, vector<8x32xf32> -> vector<8x32xf32>
    %529 = arith.addf %502, %528 : vector<8x32xf32>
    %c0_201 = arith.constant 0 : index
    %c0_202 = arith.constant 0 : index
    %c0_203 = arith.constant 0 : index
    %530 = vector.load %arg22[%c0_201, %c0_202, %c0_203] : memref<2x1x32xf32, #tpu.memory_space<vmem>>, vector<1x1x32xf32>
    %531 = vector.shape_cast %530 : vector<1x1x32xf32> to vector<1x32xf32>
    %532 = vector.broadcast %531 : vector<1x32xf32> to vector<8x32xf32>
    %533 = arith.addf %529, %532 : vector<8x32xf32>
    %534 = arith.addf %403, %533 : vector<8x32xf32>
    %c0_204 = arith.constant 0 : index
    %c0_205 = arith.constant 0 : index
    %c0_206 = arith.constant 0 : index
    %535 = vector.load %arg23[%c0_204, %c0_205, %c0_206] : memref<2x1x32xf32, #tpu.memory_space<vmem>>, vector<1x1x32xf32>
    %536 = vector.shape_cast %535 : vector<1x1x32xf32> to vector<1x32xf32>
    %c0_207 = arith.constant 0 : index
    %c0_208 = arith.constant 0 : index
    %c0_209 = arith.constant 0 : index
    %537 = vector.load %arg24[%c0_207, %c0_208, %c0_209] : memref<2x1x32xf32, #tpu.memory_space<vmem>>, vector<1x1x32xf32>
    %538 = vector.shape_cast %537 : vector<1x1x32xf32> to vector<1x32xf32>
    %cst_210 = arith.constant dense<0.000000e+00> : vector<8xf32>
    %539 = vector.multi_reduction <add>, %534, %cst_210 [1] : vector<8x32xf32> to vector<8xf32>
    %540 = vector.shape_cast %539 : vector<8xf32> to vector<8x1xf32>
    %cst_211 = arith.constant 3.200000e+01 : f32
    %541 = vector.broadcast %cst_211 : f32 to vector<8x1xf32>
    %542 = arith.divf %540, %541 : vector<8x1xf32>
    %543 = vector.broadcast %542 : vector<8x1xf32> to vector<8x32xf32>
    %544 = arith.subf %534, %543 : vector<8x32xf32>
    %545 = arith.mulf %544, %544 : vector<8x32xf32>
    %cst_212 = arith.constant dense<0.000000e+00> : vector<8xf32>
    %546 = vector.multi_reduction <add>, %545, %cst_212 [1] : vector<8x32xf32> to vector<8xf32>
    %547 = vector.shape_cast %546 : vector<8xf32> to vector<8x1xf32>
    %cst_213 = arith.constant 3.200000e+01 : f32
    %548 = vector.broadcast %cst_213 : f32 to vector<8x1xf32>
    %549 = arith.divf %547, %548 : vector<8x1xf32>
    %550 = vector.broadcast %542 : vector<8x1xf32> to vector<8x32xf32>
    %551 = arith.subf %534, %550 : vector<8x32xf32>
    %cst_214 = arith.constant 9.99999974E-6 : f32
    %552 = vector.broadcast %cst_214 : f32 to vector<8x1xf32>
    %553 = arith.addf %549, %552 : vector<8x1xf32>
    %554 = math.rsqrt %553 : vector<8x1xf32>
    %555 = vector.broadcast %554 : vector<8x1xf32> to vector<8x32xf32>
    %556 = arith.mulf %551, %555 : vector<8x32xf32>
    %557 = vector.broadcast %536 : vector<1x32xf32> to vector<8x32xf32>
    %558 = arith.mulf %556, %557 : vector<8x32xf32>
    %559 = vector.broadcast %538 : vector<1x32xf32> to vector<8x32xf32>
    %560 = arith.addf %558, %559 : vector<8x32xf32>
    %c0_215 = arith.constant 0 : index
    %c0_216 = arith.constant 0 : index
    %c0_217 = arith.constant 0 : index
    %561 = vector.load %arg25[%c0_215, %c0_216, %c0_217] : memref<2x32x32xbf16, #tpu.memory_space<vmem>>, vector<1x32x32xbf16>
    %562 = vector.shape_cast %561 : vector<1x32x32xbf16> to vector<32x32xbf16>
    %563 = arith.truncf %560 : vector<8x32xf32> to vector<8x32xbf16>
    %cst_218 = arith.constant dense<0.000000e+00> : vector<8x32xf32>
    %564 = tpu.matmul %563, %562, %cst_218 {dimension_numbers = #tpu.dot_dimension_numbers<[1], [0], [0], [1], [0, 0, 1, 1], [], []>} : vector<8x32xbf16>, vector<32x32xbf16>, vector<8x32xf32> -> vector<8x32xf32>
    %c0_219 = arith.constant 0 : index
    %c0_220 = arith.constant 0 : index
    %c0_221 = arith.constant 0 : index
    %565 = vector.load %arg26[%c0_219, %c0_220, %c0_221] : memref<2x1x32xf32, #tpu.memory_space<vmem>>, vector<1x1x32xf32>
    %566 = vector.shape_cast %565 : vector<1x1x32xf32> to vector<1x32xf32>
    %567 = vector.broadcast %566 : vector<1x32xf32> to vector<8x32xf32>
    %568 = arith.addf %564, %567 : vector<8x32xf32>
    %c0_222 = arith.constant 0 : index
    %c0_223 = arith.constant 0 : index
    %c0_224 = arith.constant 0 : index
    %569 = vector.load %arg27[%c0_222, %c0_223, %c0_224] : memref<2x32x64xbf16, #tpu.memory_space<vmem>>, vector<1x32x64xbf16>
    %570 = vector.shape_cast %569 : vector<1x32x64xbf16> to vector<32x64xbf16>
    %571 = arith.truncf %393 : vector<8x32xf32> to vector<8x32xbf16>
    %cst_225 = arith.constant dense<0.000000e+00> : vector<8x64xf32>
    %572 = tpu.matmul %571, %570, %cst_225 {dimension_numbers = #tpu.dot_dimension_numbers<[1], [0], [0], [1], [0, 0, 1, 1], [], []>} : vector<8x32xbf16>, vector<32x64xbf16>, vector<8x64xf32> -> vector<8x64xf32>
    %c0_226 = arith.constant 0 : index
    %c0_227 = arith.constant 0 : index
    %c0_228 = arith.constant 0 : index
    %573 = vector.load %arg28[%c0_226, %c0_227, %c0_228] : memref<2x1x64xf32, #tpu.memory_space<vmem>>, vector<1x1x64xf32>
    %574 = vector.shape_cast %573 : vector<1x1x64xf32> to vector<1x64xf32>
    %575 = vector.broadcast %574 : vector<1x64xf32> to vector<8x64xf32>
    %576 = arith.addf %572, %575 : vector<8x64xf32>
    %577 = vector.extract_strided_slice %576 {offsets = [0, 0], sizes = [8, 32], strides = [1, 1]} : vector<8x64xf32> to vector<8x32xf32>
    %578 = vector.extract_strided_slice %576 {offsets = [0, 32], sizes = [8, 32], strides = [1, 1]} : vector<8x64xf32> to vector<8x32xf32>
    %c0_229 = arith.constant 0 : index
    %c0_230 = arith.constant 0 : index
    %c0_231 = arith.constant 0 : index
    %579 = vector.load %arg29[%c0_229, %c0_230, %c0_231] : memref<2x32x32xf32, #tpu.memory_space<vmem>>, vector<1x32x32xf32>
    %580 = vector.shape_cast %579 : vector<1x32x32xf32> to vector<32x32xf32>
    %581 = vector.extract_strided_slice %568 {offsets = [0, 0], sizes = [8, 8], strides = [1, 1]} : vector<8x32xf32> to vector<8x8xf32>
    %582 = arith.truncf %581 : vector<8x8xf32> to vector<8x8xbf16>
    %583 = vector.extract_strided_slice %577 {offsets = [0, 0], sizes = [8, 8], strides = [1, 1]} : vector<8x32xf32> to vector<8x8xf32>
    %584 = arith.truncf %583 : vector<8x8xf32> to vector<8x8xbf16>
    %585 = vector.extract_strided_slice %578 {offsets = [0, 0], sizes = [8, 8], strides = [1, 1]} : vector<8x32xf32> to vector<8x8xf32>
    %586 = arith.truncf %585 : vector<8x8xf32> to vector<8x8xbf16>
    %cst_232 = arith.constant dense<0.000000e+00> : vector<8x8xf32>
    %587 = tpu.matmul %582, %584, %cst_232 {dimension_numbers = #tpu.dot_dimension_numbers<[1], [1], [0], [0], [0, 0, 1, 0], [], []>} : vector<8x8xbf16>, vector<8x8xbf16>, vector<8x8xf32> -> vector<8x8xf32>
    %cst_233 = arith.constant 0.353553385 : f32
    %588 = vector.broadcast %cst_233 : f32 to vector<8x8xf32>
    %589 = arith.mulf %587, %588 : vector<8x8xf32>
    %cst_234 = arith.constant dense<0xFF800000> : vector<8xf32>
    %590 = vector.multi_reduction <maximumf>, %589, %cst_234 [1] : vector<8x8xf32> to vector<8xf32>
    %591 = vector.shape_cast %590 : vector<8xf32> to vector<8x1xf32>
    %592 = vector.broadcast %591 : vector<8x1xf32> to vector<8x8xf32>
    %593 = arith.subf %589, %592 : vector<8x8xf32>
    %594 = math.exp %593 : vector<8x8xf32>
    %cst_235 = arith.constant dense<0.000000e+00> : vector<8xf32>
    %595 = vector.multi_reduction <add>, %594, %cst_235 [1] : vector<8x8xf32> to vector<8xf32>
    %596 = vector.shape_cast %595 : vector<8xf32> to vector<8x1xf32>
    %597 = tpu.reciprocal %596 {approx = true} : vector<8x1xf32> -> vector<8x1xf32>
    %598 = vector.broadcast %597 : vector<8x1xf32> to vector<8x8xf32>
    %599 = arith.mulf %594, %598 : vector<8x8xf32>
    %600 = arith.truncf %599 : vector<8x8xf32> to vector<8x8xbf16>
    %cst_236 = arith.constant dense<0.000000e+00> : vector<8x8xf32>
    %601 = tpu.matmul %600, %586, %cst_236 {dimension_numbers = #tpu.dot_dimension_numbers<[1], [0], [0], [1], [0, 0, 1, 1], [], []>} : vector<8x8xbf16>, vector<8x8xbf16>, vector<8x8xf32> -> vector<8x8xf32>
    %602 = arith.truncf %601 : vector<8x8xf32> to vector<8x8xbf16>
    %603 = vector.extract_strided_slice %580 {offsets = [0, 0], sizes = [8, 32], strides = [1, 1]} : vector<32x32xf32> to vector<8x32xf32>
    %604 = arith.truncf %603 : vector<8x32xf32> to vector<8x32xbf16>
    %cst_237 = arith.constant dense<0.000000e+00> : vector<8x32xf32>
    %605 = tpu.matmul %602, %604, %cst_237 {dimension_numbers = #tpu.dot_dimension_numbers<[1], [0], [0], [1], [0, 0, 1, 1], [], []>} : vector<8x8xbf16>, vector<8x32xbf16>, vector<8x32xf32> -> vector<8x32xf32>
    %606 = vector.extract_strided_slice %568 {offsets = [0, 8], sizes = [8, 8], strides = [1, 1]} : vector<8x32xf32> to vector<8x8xf32>
    %607 = arith.truncf %606 : vector<8x8xf32> to vector<8x8xbf16>
    %608 = vector.extract_strided_slice %577 {offsets = [0, 8], sizes = [8, 8], strides = [1, 1]} : vector<8x32xf32> to vector<8x8xf32>
    %609 = arith.truncf %608 : vector<8x8xf32> to vector<8x8xbf16>
    %610 = vector.extract_strided_slice %578 {offsets = [0, 8], sizes = [8, 8], strides = [1, 1]} : vector<8x32xf32> to vector<8x8xf32>
    %611 = arith.truncf %610 : vector<8x8xf32> to vector<8x8xbf16>
    %cst_238 = arith.constant dense<0.000000e+00> : vector<8x8xf32>
    %612 = tpu.matmul %607, %609, %cst_238 {dimension_numbers = #tpu.dot_dimension_numbers<[1], [1], [0], [0], [0, 0, 1, 0], [], []>} : vector<8x8xbf16>, vector<8x8xbf16>, vector<8x8xf32> -> vector<8x8xf32>
    %cst_239 = arith.constant 0.353553385 : f32
    %613 = vector.broadcast %cst_239 : f32 to vector<8x8xf32>
    %614 = arith.mulf %612, %613 : vector<8x8xf32>
    %cst_240 = arith.constant dense<0xFF800000> : vector<8xf32>
    %615 = vector.multi_reduction <maximumf>, %614, %cst_240 [1] : vector<8x8xf32> to vector<8xf32>
    %616 = vector.shape_cast %615 : vector<8xf32> to vector<8x1xf32>
    %617 = vector.broadcast %616 : vector<8x1xf32> to vector<8x8xf32>
    %618 = arith.subf %614, %617 : vector<8x8xf32>
    %619 = math.exp %618 : vector<8x8xf32>
    %cst_241 = arith.constant dense<0.000000e+00> : vector<8xf32>
    %620 = vector.multi_reduction <add>, %619, %cst_241 [1] : vector<8x8xf32> to vector<8xf32>
    %621 = vector.shape_cast %620 : vector<8xf32> to vector<8x1xf32>
    %622 = tpu.reciprocal %621 {approx = true} : vector<8x1xf32> -> vector<8x1xf32>
    %623 = vector.broadcast %622 : vector<8x1xf32> to vector<8x8xf32>
    %624 = arith.mulf %619, %623 : vector<8x8xf32>
    %625 = arith.truncf %624 : vector<8x8xf32> to vector<8x8xbf16>
    %cst_242 = arith.constant dense<0.000000e+00> : vector<8x8xf32>
    %626 = tpu.matmul %625, %611, %cst_242 {dimension_numbers = #tpu.dot_dimension_numbers<[1], [0], [0], [1], [0, 0, 1, 1], [], []>} : vector<8x8xbf16>, vector<8x8xbf16>, vector<8x8xf32> -> vector<8x8xf32>
    %627 = arith.truncf %626 : vector<8x8xf32> to vector<8x8xbf16>
    %628 = vector.extract_strided_slice %580 {offsets = [8, 0], sizes = [8, 32], strides = [1, 1]} : vector<32x32xf32> to vector<8x32xf32>
    %629 = arith.truncf %628 : vector<8x32xf32> to vector<8x32xbf16>
    %cst_243 = arith.constant dense<0.000000e+00> : vector<8x32xf32>
    %630 = tpu.matmul %627, %629, %cst_243 {dimension_numbers = #tpu.dot_dimension_numbers<[1], [0], [0], [1], [0, 0, 1, 1], [], []>} : vector<8x8xbf16>, vector<8x32xbf16>, vector<8x32xf32> -> vector<8x32xf32>
    %631 = arith.addf %605, %630 : vector<8x32xf32>
    %632 = vector.extract_strided_slice %568 {offsets = [0, 16], sizes = [8, 8], strides = [1, 1]} : vector<8x32xf32> to vector<8x8xf32>
    %633 = arith.truncf %632 : vector<8x8xf32> to vector<8x8xbf16>
    %634 = vector.extract_strided_slice %577 {offsets = [0, 16], sizes = [8, 8], strides = [1, 1]} : vector<8x32xf32> to vector<8x8xf32>
    %635 = arith.truncf %634 : vector<8x8xf32> to vector<8x8xbf16>
    %636 = vector.extract_strided_slice %578 {offsets = [0, 16], sizes = [8, 8], strides = [1, 1]} : vector<8x32xf32> to vector<8x8xf32>
    %637 = arith.truncf %636 : vector<8x8xf32> to vector<8x8xbf16>
    %cst_244 = arith.constant dense<0.000000e+00> : vector<8x8xf32>
    %638 = tpu.matmul %633, %635, %cst_244 {dimension_numbers = #tpu.dot_dimension_numbers<[1], [1], [0], [0], [0, 0, 1, 0], [], []>} : vector<8x8xbf16>, vector<8x8xbf16>, vector<8x8xf32> -> vector<8x8xf32>
    %cst_245 = arith.constant 0.353553385 : f32
    %639 = vector.broadcast %cst_245 : f32 to vector<8x8xf32>
    %640 = arith.mulf %638, %639 : vector<8x8xf32>
    %cst_246 = arith.constant dense<0xFF800000> : vector<8xf32>
    %641 = vector.multi_reduction <maximumf>, %640, %cst_246 [1] : vector<8x8xf32> to vector<8xf32>
    %642 = vector.shape_cast %641 : vector<8xf32> to vector<8x1xf32>
    %643 = vector.broadcast %642 : vector<8x1xf32> to vector<8x8xf32>
    %644 = arith.subf %640, %643 : vector<8x8xf32>
    %645 = math.exp %644 : vector<8x8xf32>
    %cst_247 = arith.constant dense<0.000000e+00> : vector<8xf32>
    %646 = vector.multi_reduction <add>, %645, %cst_247 [1] : vector<8x8xf32> to vector<8xf32>
    %647 = vector.shape_cast %646 : vector<8xf32> to vector<8x1xf32>
    %648 = tpu.reciprocal %647 {approx = true} : vector<8x1xf32> -> vector<8x1xf32>
    %649 = vector.broadcast %648 : vector<8x1xf32> to vector<8x8xf32>
    %650 = arith.mulf %645, %649 : vector<8x8xf32>
    %651 = arith.truncf %650 : vector<8x8xf32> to vector<8x8xbf16>
    %cst_248 = arith.constant dense<0.000000e+00> : vector<8x8xf32>
    %652 = tpu.matmul %651, %637, %cst_248 {dimension_numbers = #tpu.dot_dimension_numbers<[1], [0], [0], [1], [0, 0, 1, 1], [], []>} : vector<8x8xbf16>, vector<8x8xbf16>, vector<8x8xf32> -> vector<8x8xf32>
    %653 = arith.truncf %652 : vector<8x8xf32> to vector<8x8xbf16>
    %654 = vector.extract_strided_slice %580 {offsets = [16, 0], sizes = [8, 32], strides = [1, 1]} : vector<32x32xf32> to vector<8x32xf32>
    %655 = arith.truncf %654 : vector<8x32xf32> to vector<8x32xbf16>
    %cst_249 = arith.constant dense<0.000000e+00> : vector<8x32xf32>
    %656 = tpu.matmul %653, %655, %cst_249 {dimension_numbers = #tpu.dot_dimension_numbers<[1], [0], [0], [1], [0, 0, 1, 1], [], []>} : vector<8x8xbf16>, vector<8x32xbf16>, vector<8x32xf32> -> vector<8x32xf32>
    %657 = arith.addf %631, %656 : vector<8x32xf32>
    %658 = vector.extract_strided_slice %568 {offsets = [0, 24], sizes = [8, 8], strides = [1, 1]} : vector<8x32xf32> to vector<8x8xf32>
    %659 = arith.truncf %658 : vector<8x8xf32> to vector<8x8xbf16>
    %660 = vector.extract_strided_slice %577 {offsets = [0, 24], sizes = [8, 8], strides = [1, 1]} : vector<8x32xf32> to vector<8x8xf32>
    %661 = arith.truncf %660 : vector<8x8xf32> to vector<8x8xbf16>
    %662 = vector.extract_strided_slice %578 {offsets = [0, 24], sizes = [8, 8], strides = [1, 1]} : vector<8x32xf32> to vector<8x8xf32>
    %663 = arith.truncf %662 : vector<8x8xf32> to vector<8x8xbf16>
    %cst_250 = arith.constant dense<0.000000e+00> : vector<8x8xf32>
    %664 = tpu.matmul %659, %661, %cst_250 {dimension_numbers = #tpu.dot_dimension_numbers<[1], [1], [0], [0], [0, 0, 1, 0], [], []>} : vector<8x8xbf16>, vector<8x8xbf16>, vector<8x8xf32> -> vector<8x8xf32>
    %cst_251 = arith.constant 0.353553385 : f32
    %665 = vector.broadcast %cst_251 : f32 to vector<8x8xf32>
    %666 = arith.mulf %664, %665 : vector<8x8xf32>
    %cst_252 = arith.constant dense<0xFF800000> : vector<8xf32>
    %667 = vector.multi_reduction <maximumf>, %666, %cst_252 [1] : vector<8x8xf32> to vector<8xf32>
    %668 = vector.shape_cast %667 : vector<8xf32> to vector<8x1xf32>
    %669 = vector.broadcast %668 : vector<8x1xf32> to vector<8x8xf32>
    %670 = arith.subf %666, %669 : vector<8x8xf32>
    %671 = math.exp %670 : vector<8x8xf32>
    %cst_253 = arith.constant dense<0.000000e+00> : vector<8xf32>
    %672 = vector.multi_reduction <add>, %671, %cst_253 [1] : vector<8x8xf32> to vector<8xf32>
    %673 = vector.shape_cast %672 : vector<8xf32> to vector<8x1xf32>
    %674 = tpu.reciprocal %673 {approx = true} : vector<8x1xf32> -> vector<8x1xf32>
    %675 = vector.broadcast %674 : vector<8x1xf32> to vector<8x8xf32>
    %676 = arith.mulf %671, %675 : vector<8x8xf32>
    %677 = arith.truncf %676 : vector<8x8xf32> to vector<8x8xbf16>
    %cst_254 = arith.constant dense<0.000000e+00> : vector<8x8xf32>
    %678 = tpu.matmul %677, %663, %cst_254 {dimension_numbers = #tpu.dot_dimension_numbers<[1], [0], [0], [1], [0, 0, 1, 1], [], []>} : vector<8x8xbf16>, vector<8x8xbf16>, vector<8x8xf32> -> vector<8x8xf32>
    %679 = arith.truncf %678 : vector<8x8xf32> to vector<8x8xbf16>
    %680 = vector.extract_strided_slice %580 {offsets = [24, 0], sizes = [8, 32], strides = [1, 1]} : vector<32x32xf32> to vector<8x32xf32>
    %681 = arith.truncf %680 : vector<8x32xf32> to vector<8x32xbf16>
    %cst_255 = arith.constant dense<0.000000e+00> : vector<8x32xf32>
    %682 = tpu.matmul %679, %681, %cst_255 {dimension_numbers = #tpu.dot_dimension_numbers<[1], [0], [0], [1], [0, 0, 1, 1], [], []>} : vector<8x8xbf16>, vector<8x32xbf16>, vector<8x32xf32> -> vector<8x32xf32>
    %683 = arith.addf %657, %682 : vector<8x32xf32>
    %c0_256 = arith.constant 0 : index
    %c0_257 = arith.constant 0 : index
    %c0_258 = arith.constant 0 : index
    %684 = vector.load %arg30[%c0_256, %c0_257, %c0_258] : memref<2x1x32xf32, #tpu.memory_space<vmem>>, vector<1x1x32xf32>
    %685 = vector.shape_cast %684 : vector<1x1x32xf32> to vector<1x32xf32>
    %686 = vector.broadcast %685 : vector<1x32xf32> to vector<8x32xf32>
    %687 = arith.addf %683, %686 : vector<8x32xf32>
    %688 = arith.addf %560, %687 : vector<8x32xf32>
    %c0_259 = arith.constant 0 : index
    %c0_260 = arith.constant 0 : index
    %c0_261 = arith.constant 0 : index
    %689 = vector.load %arg31[%c0_259, %c0_260, %c0_261] : memref<2x1x32xf32, #tpu.memory_space<vmem>>, vector<1x1x32xf32>
    %690 = vector.shape_cast %689 : vector<1x1x32xf32> to vector<1x32xf32>
    %c0_262 = arith.constant 0 : index
    %c0_263 = arith.constant 0 : index
    %c0_264 = arith.constant 0 : index
    %691 = vector.load %arg32[%c0_262, %c0_263, %c0_264] : memref<2x1x32xf32, #tpu.memory_space<vmem>>, vector<1x1x32xf32>
    %692 = vector.shape_cast %691 : vector<1x1x32xf32> to vector<1x32xf32>
    %cst_265 = arith.constant dense<0.000000e+00> : vector<8xf32>
    %693 = vector.multi_reduction <add>, %688, %cst_265 [1] : vector<8x32xf32> to vector<8xf32>
    %694 = vector.shape_cast %693 : vector<8xf32> to vector<8x1xf32>
    %cst_266 = arith.constant 3.200000e+01 : f32
    %695 = vector.broadcast %cst_266 : f32 to vector<8x1xf32>
    %696 = arith.divf %694, %695 : vector<8x1xf32>
    %697 = vector.broadcast %696 : vector<8x1xf32> to vector<8x32xf32>
    %698 = arith.subf %688, %697 : vector<8x32xf32>
    %699 = arith.mulf %698, %698 : vector<8x32xf32>
    %cst_267 = arith.constant dense<0.000000e+00> : vector<8xf32>
    %700 = vector.multi_reduction <add>, %699, %cst_267 [1] : vector<8x32xf32> to vector<8xf32>
    %701 = vector.shape_cast %700 : vector<8xf32> to vector<8x1xf32>
    %cst_268 = arith.constant 3.200000e+01 : f32
    %702 = vector.broadcast %cst_268 : f32 to vector<8x1xf32>
    %703 = arith.divf %701, %702 : vector<8x1xf32>
    %704 = vector.broadcast %696 : vector<8x1xf32> to vector<8x32xf32>
    %705 = arith.subf %688, %704 : vector<8x32xf32>
    %cst_269 = arith.constant 9.99999974E-6 : f32
    %706 = vector.broadcast %cst_269 : f32 to vector<8x1xf32>
    %707 = arith.addf %703, %706 : vector<8x1xf32>
    %708 = math.rsqrt %707 : vector<8x1xf32>
    %709 = vector.broadcast %708 : vector<8x1xf32> to vector<8x32xf32>
    %710 = arith.mulf %705, %709 : vector<8x32xf32>
    %711 = vector.broadcast %690 : vector<1x32xf32> to vector<8x32xf32>
    %712 = arith.mulf %710, %711 : vector<8x32xf32>
    %713 = vector.broadcast %692 : vector<1x32xf32> to vector<8x32xf32>
    %714 = arith.addf %712, %713 : vector<8x32xf32>
    %c0_270 = arith.constant 0 : index
    %c0_271 = arith.constant 0 : index
    %c0_272 = arith.constant 0 : index
    %715 = vector.load %arg33[%c0_270, %c0_271, %c0_272] : memref<2x32x64xbf16, #tpu.memory_space<vmem>>, vector<1x32x64xbf16>
    %716 = vector.shape_cast %715 : vector<1x32x64xbf16> to vector<32x64xbf16>
    %717 = arith.truncf %714 : vector<8x32xf32> to vector<8x32xbf16>
    %cst_273 = arith.constant dense<0.000000e+00> : vector<8x64xf32>
    %718 = tpu.matmul %717, %716, %cst_273 {dimension_numbers = #tpu.dot_dimension_numbers<[1], [0], [0], [1], [0, 0, 1, 1], [], []>} : vector<8x32xbf16>, vector<32x64xbf16>, vector<8x64xf32> -> vector<8x64xf32>
    %c0_274 = arith.constant 0 : index
    %c0_275 = arith.constant 0 : index
    %c0_276 = arith.constant 0 : index
    %719 = vector.load %arg34[%c0_274, %c0_275, %c0_276] : memref<2x1x64xf32, #tpu.memory_space<vmem>>, vector<1x1x64xf32>
    %720 = vector.shape_cast %719 : vector<1x1x64xf32> to vector<1x64xf32>
    %721 = vector.broadcast %720 : vector<1x64xf32> to vector<8x64xf32>
    %722 = arith.addf %718, %721 : vector<8x64xf32>
    %cst_277 = arith.constant 0.000000e+00 : f32
    %723 = vector.broadcast %cst_277 : f32 to vector<8x64xf32>
    %724 = arith.maximumf %722, %723 : vector<8x64xf32>
    %c0_278 = arith.constant 0 : index
    %c0_279 = arith.constant 0 : index
    %c0_280 = arith.constant 0 : index
    %725 = vector.load %arg35[%c0_278, %c0_279, %c0_280] : memref<2x64x32xbf16, #tpu.memory_space<vmem>>, vector<1x64x32xbf16>
    %726 = vector.shape_cast %725 : vector<1x64x32xbf16> to vector<64x32xbf16>
    %727 = arith.truncf %724 : vector<8x64xf32> to vector<8x64xbf16>
    %cst_281 = arith.constant dense<0.000000e+00> : vector<8x32xf32>
    %728 = tpu.matmul %727, %726, %cst_281 {dimension_numbers = #tpu.dot_dimension_numbers<[1], [0], [0], [1], [0, 0, 1, 1], [], []>} : vector<8x64xbf16>, vector<64x32xbf16>, vector<8x32xf32> -> vector<8x32xf32>
    %c0_282 = arith.constant 0 : index
    %c0_283 = arith.constant 0 : index
    %c0_284 = arith.constant 0 : index
    %729 = vector.load %arg36[%c0_282, %c0_283, %c0_284] : memref<2x1x32xf32, #tpu.memory_space<vmem>>, vector<1x1x32xf32>
    %730 = vector.shape_cast %729 : vector<1x1x32xf32> to vector<1x32xf32>
    %731 = vector.broadcast %730 : vector<1x32xf32> to vector<8x32xf32>
    %732 = arith.addf %728, %731 : vector<8x32xf32>
    %733 = arith.addf %714, %732 : vector<8x32xf32>
    %c0_285 = arith.constant 0 : index
    %c0_286 = arith.constant 0 : index
    %c0_287 = arith.constant 0 : index
    %734 = vector.load %arg37[%c0_285, %c0_286, %c0_287] : memref<2x1x32xf32, #tpu.memory_space<vmem>>, vector<1x1x32xf32>
    %735 = vector.shape_cast %734 : vector<1x1x32xf32> to vector<1x32xf32>
    %c0_288 = arith.constant 0 : index
    %c0_289 = arith.constant 0 : index
    %c0_290 = arith.constant 0 : index
    %736 = vector.load %arg38[%c0_288, %c0_289, %c0_290] : memref<2x1x32xf32, #tpu.memory_space<vmem>>, vector<1x1x32xf32>
    %737 = vector.shape_cast %736 : vector<1x1x32xf32> to vector<1x32xf32>
    %cst_291 = arith.constant dense<0.000000e+00> : vector<8xf32>
    %738 = vector.multi_reduction <add>, %733, %cst_291 [1] : vector<8x32xf32> to vector<8xf32>
    %739 = vector.shape_cast %738 : vector<8xf32> to vector<8x1xf32>
    %cst_292 = arith.constant 3.200000e+01 : f32
    %740 = vector.broadcast %cst_292 : f32 to vector<8x1xf32>
    %741 = arith.divf %739, %740 : vector<8x1xf32>
    %742 = vector.broadcast %741 : vector<8x1xf32> to vector<8x32xf32>
    %743 = arith.subf %733, %742 : vector<8x32xf32>
    %744 = arith.mulf %743, %743 : vector<8x32xf32>
    %cst_293 = arith.constant dense<0.000000e+00> : vector<8xf32>
    %745 = vector.multi_reduction <add>, %744, %cst_293 [1] : vector<8x32xf32> to vector<8xf32>
    %746 = vector.shape_cast %745 : vector<8xf32> to vector<8x1xf32>
    %cst_294 = arith.constant 3.200000e+01 : f32
    %747 = vector.broadcast %cst_294 : f32 to vector<8x1xf32>
    %748 = arith.divf %746, %747 : vector<8x1xf32>
    %749 = vector.broadcast %741 : vector<8x1xf32> to vector<8x32xf32>
    %750 = arith.subf %733, %749 : vector<8x32xf32>
    %cst_295 = arith.constant 9.99999974E-6 : f32
    %751 = vector.broadcast %cst_295 : f32 to vector<8x1xf32>
    %752 = arith.addf %748, %751 : vector<8x1xf32>
    %753 = math.rsqrt %752 : vector<8x1xf32>
    %754 = vector.broadcast %753 : vector<8x1xf32> to vector<8x32xf32>
    %755 = arith.mulf %750, %754 : vector<8x32xf32>
    %756 = vector.broadcast %735 : vector<1x32xf32> to vector<8x32xf32>
    %757 = arith.mulf %755, %756 : vector<8x32xf32>
    %758 = vector.broadcast %737 : vector<1x32xf32> to vector<8x32xf32>
    %759 = arith.addf %757, %758 : vector<8x32xf32>
    %c1_296 = arith.constant 1 : index
    %c0_297 = arith.constant 0 : index
    %c0_298 = arith.constant 0 : index
    %760 = vector.load %arg19[%c1_296, %c0_297, %c0_298] : memref<2x32x96xbf16, #tpu.memory_space<vmem>>, vector<1x32x96xbf16>
    %761 = vector.shape_cast %760 : vector<1x32x96xbf16> to vector<32x96xbf16>
    %762 = arith.truncf %759 : vector<8x32xf32> to vector<8x32xbf16>
    %cst_299 = arith.constant dense<0.000000e+00> : vector<8x96xf32>
    %763 = tpu.matmul %762, %761, %cst_299 {dimension_numbers = #tpu.dot_dimension_numbers<[1], [0], [0], [1], [0, 0, 1, 1], [], []>} : vector<8x32xbf16>, vector<32x96xbf16>, vector<8x96xf32> -> vector<8x96xf32>
    %c1_300 = arith.constant 1 : index
    %c0_301 = arith.constant 0 : index
    %c0_302 = arith.constant 0 : index
    %764 = vector.load %arg20[%c1_300, %c0_301, %c0_302] : memref<2x1x96xf32, #tpu.memory_space<vmem>>, vector<1x1x96xf32>
    %765 = vector.shape_cast %764 : vector<1x1x96xf32> to vector<1x96xf32>
    %766 = vector.broadcast %765 : vector<1x96xf32> to vector<8x96xf32>
    %767 = arith.addf %763, %766 : vector<8x96xf32>
    %768 = vector.extract_strided_slice %767 {offsets = [0, 0], sizes = [8, 32], strides = [1, 1]} : vector<8x96xf32> to vector<8x32xf32>
    %769 = vector.extract_strided_slice %767 {offsets = [0, 32], sizes = [8, 32], strides = [1, 1]} : vector<8x96xf32> to vector<8x32xf32>
    %770 = vector.extract_strided_slice %767 {offsets = [0, 64], sizes = [8, 32], strides = [1, 1]} : vector<8x96xf32> to vector<8x32xf32>
    %c1_303 = arith.constant 1 : index
    %c0_304 = arith.constant 0 : index
    %c0_305 = arith.constant 0 : index
    %771 = vector.load %arg21[%c1_303, %c0_304, %c0_305] : memref<2x32x32xf32, #tpu.memory_space<vmem>>, vector<1x32x32xf32>
    %772 = vector.shape_cast %771 : vector<1x32x32xf32> to vector<32x32xf32>
    %773 = tpu.iota {dimensions = array<i32: 0>} : vector<8x8xi32>
    %774 = tpu.iota {dimensions = array<i32: 1>} : vector<8x8xi32>
    %775 = arith.cmpi sle, %774, %773 : vector<8x8xi32>
    %cst_306 = arith.constant 0.000000e+00 : f32
    %cst_307 = arith.constant -1.000000e+30 : f32
    %776 = vector.broadcast %cst_306 : f32 to vector<8x8xf32>
    %777 = vector.broadcast %cst_307 : f32 to vector<8x8xf32>
    %778 = arith.select %775, %776, %777 : vector<8x8xi1>, vector<8x8xf32>
    %779 = vector.extract_strided_slice %768 {offsets = [0, 0], sizes = [8, 8], strides = [1, 1]} : vector<8x32xf32> to vector<8x8xf32>
    %780 = arith.truncf %779 : vector<8x8xf32> to vector<8x8xbf16>
    %781 = vector.extract_strided_slice %769 {offsets = [0, 0], sizes = [8, 8], strides = [1, 1]} : vector<8x32xf32> to vector<8x8xf32>
    %782 = arith.truncf %781 : vector<8x8xf32> to vector<8x8xbf16>
    %783 = vector.extract_strided_slice %770 {offsets = [0, 0], sizes = [8, 8], strides = [1, 1]} : vector<8x32xf32> to vector<8x8xf32>
    %784 = arith.truncf %783 : vector<8x8xf32> to vector<8x8xbf16>
    %cst_308 = arith.constant dense<0.000000e+00> : vector<8x8xf32>
    %785 = tpu.matmul %780, %782, %cst_308 {dimension_numbers = #tpu.dot_dimension_numbers<[1], [1], [0], [0], [0, 0, 1, 0], [], []>} : vector<8x8xbf16>, vector<8x8xbf16>, vector<8x8xf32> -> vector<8x8xf32>
    %cst_309 = arith.constant 0.353553385 : f32
    %786 = vector.broadcast %cst_309 : f32 to vector<8x8xf32>
    %787 = arith.mulf %785, %786 : vector<8x8xf32>
    %788 = arith.addf %787, %778 : vector<8x8xf32>
    %cst_310 = arith.constant dense<0xFF800000> : vector<8xf32>
    %789 = vector.multi_reduction <maximumf>, %788, %cst_310 [1] : vector<8x8xf32> to vector<8xf32>
    %790 = vector.shape_cast %789 : vector<8xf32> to vector<8x1xf32>
    %791 = vector.broadcast %790 : vector<8x1xf32> to vector<8x8xf32>
    %792 = arith.subf %788, %791 : vector<8x8xf32>
    %793 = math.exp %792 : vector<8x8xf32>
    %cst_311 = arith.constant dense<0.000000e+00> : vector<8xf32>
    %794 = vector.multi_reduction <add>, %793, %cst_311 [1] : vector<8x8xf32> to vector<8xf32>
    %795 = vector.shape_cast %794 : vector<8xf32> to vector<8x1xf32>
    %796 = tpu.reciprocal %795 {approx = true} : vector<8x1xf32> -> vector<8x1xf32>
    %797 = vector.broadcast %796 : vector<8x1xf32> to vector<8x8xf32>
    %798 = arith.mulf %793, %797 : vector<8x8xf32>
    %799 = arith.truncf %798 : vector<8x8xf32> to vector<8x8xbf16>
    %cst_312 = arith.constant dense<0.000000e+00> : vector<8x8xf32>
    %800 = tpu.matmul %799, %784, %cst_312 {dimension_numbers = #tpu.dot_dimension_numbers<[1], [0], [0], [1], [0, 0, 1, 1], [], []>} : vector<8x8xbf16>, vector<8x8xbf16>, vector<8x8xf32> -> vector<8x8xf32>
    %801 = arith.truncf %800 : vector<8x8xf32> to vector<8x8xbf16>
    %802 = vector.extract_strided_slice %772 {offsets = [0, 0], sizes = [8, 32], strides = [1, 1]} : vector<32x32xf32> to vector<8x32xf32>
    %803 = arith.truncf %802 : vector<8x32xf32> to vector<8x32xbf16>
    %cst_313 = arith.constant dense<0.000000e+00> : vector<8x32xf32>
    %804 = tpu.matmul %801, %803, %cst_313 {dimension_numbers = #tpu.dot_dimension_numbers<[1], [0], [0], [1], [0, 0, 1, 1], [], []>} : vector<8x8xbf16>, vector<8x32xbf16>, vector<8x32xf32> -> vector<8x32xf32>
    %805 = vector.extract_strided_slice %768 {offsets = [0, 8], sizes = [8, 8], strides = [1, 1]} : vector<8x32xf32> to vector<8x8xf32>
    %806 = arith.truncf %805 : vector<8x8xf32> to vector<8x8xbf16>
    %807 = vector.extract_strided_slice %769 {offsets = [0, 8], sizes = [8, 8], strides = [1, 1]} : vector<8x32xf32> to vector<8x8xf32>
    %808 = arith.truncf %807 : vector<8x8xf32> to vector<8x8xbf16>
    %809 = vector.extract_strided_slice %770 {offsets = [0, 8], sizes = [8, 8], strides = [1, 1]} : vector<8x32xf32> to vector<8x8xf32>
    %810 = arith.truncf %809 : vector<8x8xf32> to vector<8x8xbf16>
    %cst_314 = arith.constant dense<0.000000e+00> : vector<8x8xf32>
    %811 = tpu.matmul %806, %808, %cst_314 {dimension_numbers = #tpu.dot_dimension_numbers<[1], [1], [0], [0], [0, 0, 1, 0], [], []>} : vector<8x8xbf16>, vector<8x8xbf16>, vector<8x8xf32> -> vector<8x8xf32>
    %cst_315 = arith.constant 0.353553385 : f32
    %812 = vector.broadcast %cst_315 : f32 to vector<8x8xf32>
    %813 = arith.mulf %811, %812 : vector<8x8xf32>
    %814 = arith.addf %813, %778 : vector<8x8xf32>
    %cst_316 = arith.constant dense<0xFF800000> : vector<8xf32>
    %815 = vector.multi_reduction <maximumf>, %814, %cst_316 [1] : vector<8x8xf32> to vector<8xf32>
    %816 = vector.shape_cast %815 : vector<8xf32> to vector<8x1xf32>
    %817 = vector.broadcast %816 : vector<8x1xf32> to vector<8x8xf32>
    %818 = arith.subf %814, %817 : vector<8x8xf32>
    %819 = math.exp %818 : vector<8x8xf32>
    %cst_317 = arith.constant dense<0.000000e+00> : vector<8xf32>
    %820 = vector.multi_reduction <add>, %819, %cst_317 [1] : vector<8x8xf32> to vector<8xf32>
    %821 = vector.shape_cast %820 : vector<8xf32> to vector<8x1xf32>
    %822 = tpu.reciprocal %821 {approx = true} : vector<8x1xf32> -> vector<8x1xf32>
    %823 = vector.broadcast %822 : vector<8x1xf32> to vector<8x8xf32>
    %824 = arith.mulf %819, %823 : vector<8x8xf32>
    %825 = arith.truncf %824 : vector<8x8xf32> to vector<8x8xbf16>
    %cst_318 = arith.constant dense<0.000000e+00> : vector<8x8xf32>
    %826 = tpu.matmul %825, %810, %cst_318 {dimension_numbers = #tpu.dot_dimension_numbers<[1], [0], [0], [1], [0, 0, 1, 1], [], []>} : vector<8x8xbf16>, vector<8x8xbf16>, vector<8x8xf32> -> vector<8x8xf32>
    %827 = arith.truncf %826 : vector<8x8xf32> to vector<8x8xbf16>
    %828 = vector.extract_strided_slice %772 {offsets = [8, 0], sizes = [8, 32], strides = [1, 1]} : vector<32x32xf32> to vector<8x32xf32>
    %829 = arith.truncf %828 : vector<8x32xf32> to vector<8x32xbf16>
    %cst_319 = arith.constant dense<0.000000e+00> : vector<8x32xf32>
    %830 = tpu.matmul %827, %829, %cst_319 {dimension_numbers = #tpu.dot_dimension_numbers<[1], [0], [0], [1], [0, 0, 1, 1], [], []>} : vector<8x8xbf16>, vector<8x32xbf16>, vector<8x32xf32> -> vector<8x32xf32>
    %831 = arith.addf %804, %830 : vector<8x32xf32>
    %832 = vector.extract_strided_slice %768 {offsets = [0, 16], sizes = [8, 8], strides = [1, 1]} : vector<8x32xf32> to vector<8x8xf32>
    %833 = arith.truncf %832 : vector<8x8xf32> to vector<8x8xbf16>
    %834 = vector.extract_strided_slice %769 {offsets = [0, 16], sizes = [8, 8], strides = [1, 1]} : vector<8x32xf32> to vector<8x8xf32>
    %835 = arith.truncf %834 : vector<8x8xf32> to vector<8x8xbf16>
    %836 = vector.extract_strided_slice %770 {offsets = [0, 16], sizes = [8, 8], strides = [1, 1]} : vector<8x32xf32> to vector<8x8xf32>
    %837 = arith.truncf %836 : vector<8x8xf32> to vector<8x8xbf16>
    %cst_320 = arith.constant dense<0.000000e+00> : vector<8x8xf32>
    %838 = tpu.matmul %833, %835, %cst_320 {dimension_numbers = #tpu.dot_dimension_numbers<[1], [1], [0], [0], [0, 0, 1, 0], [], []>} : vector<8x8xbf16>, vector<8x8xbf16>, vector<8x8xf32> -> vector<8x8xf32>
    %cst_321 = arith.constant 0.353553385 : f32
    %839 = vector.broadcast %cst_321 : f32 to vector<8x8xf32>
    %840 = arith.mulf %838, %839 : vector<8x8xf32>
    %841 = arith.addf %840, %778 : vector<8x8xf32>
    %cst_322 = arith.constant dense<0xFF800000> : vector<8xf32>
    %842 = vector.multi_reduction <maximumf>, %841, %cst_322 [1] : vector<8x8xf32> to vector<8xf32>
    %843 = vector.shape_cast %842 : vector<8xf32> to vector<8x1xf32>
    %844 = vector.broadcast %843 : vector<8x1xf32> to vector<8x8xf32>
    %845 = arith.subf %841, %844 : vector<8x8xf32>
    %846 = math.exp %845 : vector<8x8xf32>
    %cst_323 = arith.constant dense<0.000000e+00> : vector<8xf32>
    %847 = vector.multi_reduction <add>, %846, %cst_323 [1] : vector<8x8xf32> to vector<8xf32>
    %848 = vector.shape_cast %847 : vector<8xf32> to vector<8x1xf32>
    %849 = tpu.reciprocal %848 {approx = true} : vector<8x1xf32> -> vector<8x1xf32>
    %850 = vector.broadcast %849 : vector<8x1xf32> to vector<8x8xf32>
    %851 = arith.mulf %846, %850 : vector<8x8xf32>
    %852 = arith.truncf %851 : vector<8x8xf32> to vector<8x8xbf16>
    %cst_324 = arith.constant dense<0.000000e+00> : vector<8x8xf32>
    %853 = tpu.matmul %852, %837, %cst_324 {dimension_numbers = #tpu.dot_dimension_numbers<[1], [0], [0], [1], [0, 0, 1, 1], [], []>} : vector<8x8xbf16>, vector<8x8xbf16>, vector<8x8xf32> -> vector<8x8xf32>
    %854 = arith.truncf %853 : vector<8x8xf32> to vector<8x8xbf16>
    %855 = vector.extract_strided_slice %772 {offsets = [16, 0], sizes = [8, 32], strides = [1, 1]} : vector<32x32xf32> to vector<8x32xf32>
    %856 = arith.truncf %855 : vector<8x32xf32> to vector<8x32xbf16>
    %cst_325 = arith.constant dense<0.000000e+00> : vector<8x32xf32>
    %857 = tpu.matmul %854, %856, %cst_325 {dimension_numbers = #tpu.dot_dimension_numbers<[1], [0], [0], [1], [0, 0, 1, 1], [], []>} : vector<8x8xbf16>, vector<8x32xbf16>, vector<8x32xf32> -> vector<8x32xf32>
    %858 = arith.addf %831, %857 : vector<8x32xf32>
    %859 = vector.extract_strided_slice %768 {offsets = [0, 24], sizes = [8, 8], strides = [1, 1]} : vector<8x32xf32> to vector<8x8xf32>
    %860 = arith.truncf %859 : vector<8x8xf32> to vector<8x8xbf16>
    %861 = vector.extract_strided_slice %769 {offsets = [0, 24], sizes = [8, 8], strides = [1, 1]} : vector<8x32xf32> to vector<8x8xf32>
    %862 = arith.truncf %861 : vector<8x8xf32> to vector<8x8xbf16>
    %863 = vector.extract_strided_slice %770 {offsets = [0, 24], sizes = [8, 8], strides = [1, 1]} : vector<8x32xf32> to vector<8x8xf32>
    %864 = arith.truncf %863 : vector<8x8xf32> to vector<8x8xbf16>
    %cst_326 = arith.constant dense<0.000000e+00> : vector<8x8xf32>
    %865 = tpu.matmul %860, %862, %cst_326 {dimension_numbers = #tpu.dot_dimension_numbers<[1], [1], [0], [0], [0, 0, 1, 0], [], []>} : vector<8x8xbf16>, vector<8x8xbf16>, vector<8x8xf32> -> vector<8x8xf32>
    %cst_327 = arith.constant 0.353553385 : f32
    %866 = vector.broadcast %cst_327 : f32 to vector<8x8xf32>
    %867 = arith.mulf %865, %866 : vector<8x8xf32>
    %868 = arith.addf %867, %778 : vector<8x8xf32>
    %cst_328 = arith.constant dense<0xFF800000> : vector<8xf32>
    %869 = vector.multi_reduction <maximumf>, %868, %cst_328 [1] : vector<8x8xf32> to vector<8xf32>
    %870 = vector.shape_cast %869 : vector<8xf32> to vector<8x1xf32>
    %871 = vector.broadcast %870 : vector<8x1xf32> to vector<8x8xf32>
    %872 = arith.subf %868, %871 : vector<8x8xf32>
    %873 = math.exp %872 : vector<8x8xf32>
    %cst_329 = arith.constant dense<0.000000e+00> : vector<8xf32>
    %874 = vector.multi_reduction <add>, %873, %cst_329 [1] : vector<8x8xf32> to vector<8xf32>
    %875 = vector.shape_cast %874 : vector<8xf32> to vector<8x1xf32>
    %876 = tpu.reciprocal %875 {approx = true} : vector<8x1xf32> -> vector<8x1xf32>
    %877 = vector.broadcast %876 : vector<8x1xf32> to vector<8x8xf32>
    %878 = arith.mulf %873, %877 : vector<8x8xf32>
    %879 = arith.truncf %878 : vector<8x8xf32> to vector<8x8xbf16>
    %cst_330 = arith.constant dense<0.000000e+00> : vector<8x8xf32>
    %880 = tpu.matmul %879, %864, %cst_330 {dimension_numbers = #tpu.dot_dimension_numbers<[1], [0], [0], [1], [0, 0, 1, 1], [], []>} : vector<8x8xbf16>, vector<8x8xbf16>, vector<8x8xf32> -> vector<8x8xf32>
    %881 = arith.truncf %880 : vector<8x8xf32> to vector<8x8xbf16>
    %882 = vector.extract_strided_slice %772 {offsets = [24, 0], sizes = [8, 32], strides = [1, 1]} : vector<32x32xf32> to vector<8x32xf32>
    %883 = arith.truncf %882 : vector<8x32xf32> to vector<8x32xbf16>
    %cst_331 = arith.constant dense<0.000000e+00> : vector<8x32xf32>
    %884 = tpu.matmul %881, %883, %cst_331 {dimension_numbers = #tpu.dot_dimension_numbers<[1], [0], [0], [1], [0, 0, 1, 1], [], []>} : vector<8x8xbf16>, vector<8x32xbf16>, vector<8x32xf32> -> vector<8x32xf32>
    %885 = arith.addf %858, %884 : vector<8x32xf32>
    %c1_332 = arith.constant 1 : index
    %c0_333 = arith.constant 0 : index
    %c0_334 = arith.constant 0 : index
    %886 = vector.load %arg22[%c1_332, %c0_333, %c0_334] : memref<2x1x32xf32, #tpu.memory_space<vmem>>, vector<1x1x32xf32>
    %887 = vector.shape_cast %886 : vector<1x1x32xf32> to vector<1x32xf32>
    %888 = vector.broadcast %887 : vector<1x32xf32> to vector<8x32xf32>
    %889 = arith.addf %885, %888 : vector<8x32xf32>
    %890 = arith.addf %759, %889 : vector<8x32xf32>
    %c1_335 = arith.constant 1 : index
    %c0_336 = arith.constant 0 : index
    %c0_337 = arith.constant 0 : index
    %891 = vector.load %arg23[%c1_335, %c0_336, %c0_337] : memref<2x1x32xf32, #tpu.memory_space<vmem>>, vector<1x1x32xf32>
    %892 = vector.shape_cast %891 : vector<1x1x32xf32> to vector<1x32xf32>
    %c1_338 = arith.constant 1 : index
    %c0_339 = arith.constant 0 : index
    %c0_340 = arith.constant 0 : index
    %893 = vector.load %arg24[%c1_338, %c0_339, %c0_340] : memref<2x1x32xf32, #tpu.memory_space<vmem>>, vector<1x1x32xf32>
    %894 = vector.shape_cast %893 : vector<1x1x32xf32> to vector<1x32xf32>
    %cst_341 = arith.constant dense<0.000000e+00> : vector<8xf32>
    %895 = vector.multi_reduction <add>, %890, %cst_341 [1] : vector<8x32xf32> to vector<8xf32>
    %896 = vector.shape_cast %895 : vector<8xf32> to vector<8x1xf32>
    %cst_342 = arith.constant 3.200000e+01 : f32
    %897 = vector.broadcast %cst_342 : f32 to vector<8x1xf32>
    %898 = arith.divf %896, %897 : vector<8x1xf32>
    %899 = vector.broadcast %898 : vector<8x1xf32> to vector<8x32xf32>
    %900 = arith.subf %890, %899 : vector<8x32xf32>
    %901 = arith.mulf %900, %900 : vector<8x32xf32>
    %cst_343 = arith.constant dense<0.000000e+00> : vector<8xf32>
    %902 = vector.multi_reduction <add>, %901, %cst_343 [1] : vector<8x32xf32> to vector<8xf32>
    %903 = vector.shape_cast %902 : vector<8xf32> to vector<8x1xf32>
    %cst_344 = arith.constant 3.200000e+01 : f32
    %904 = vector.broadcast %cst_344 : f32 to vector<8x1xf32>
    %905 = arith.divf %903, %904 : vector<8x1xf32>
    %906 = vector.broadcast %898 : vector<8x1xf32> to vector<8x32xf32>
    %907 = arith.subf %890, %906 : vector<8x32xf32>
    %cst_345 = arith.constant 9.99999974E-6 : f32
    %908 = vector.broadcast %cst_345 : f32 to vector<8x1xf32>
    %909 = arith.addf %905, %908 : vector<8x1xf32>
    %910 = math.rsqrt %909 : vector<8x1xf32>
    %911 = vector.broadcast %910 : vector<8x1xf32> to vector<8x32xf32>
    %912 = arith.mulf %907, %911 : vector<8x32xf32>
    %913 = vector.broadcast %892 : vector<1x32xf32> to vector<8x32xf32>
    %914 = arith.mulf %912, %913 : vector<8x32xf32>
    %915 = vector.broadcast %894 : vector<1x32xf32> to vector<8x32xf32>
    %916 = arith.addf %914, %915 : vector<8x32xf32>
    %c1_346 = arith.constant 1 : index
    %c0_347 = arith.constant 0 : index
    %c0_348 = arith.constant 0 : index
    %917 = vector.load %arg25[%c1_346, %c0_347, %c0_348] : memref<2x32x32xbf16, #tpu.memory_space<vmem>>, vector<1x32x32xbf16>
    %918 = vector.shape_cast %917 : vector<1x32x32xbf16> to vector<32x32xbf16>
    %919 = arith.truncf %916 : vector<8x32xf32> to vector<8x32xbf16>
    %cst_349 = arith.constant dense<0.000000e+00> : vector<8x32xf32>
    %920 = tpu.matmul %919, %918, %cst_349 {dimension_numbers = #tpu.dot_dimension_numbers<[1], [0], [0], [1], [0, 0, 1, 1], [], []>} : vector<8x32xbf16>, vector<32x32xbf16>, vector<8x32xf32> -> vector<8x32xf32>
    %c1_350 = arith.constant 1 : index
    %c0_351 = arith.constant 0 : index
    %c0_352 = arith.constant 0 : index
    %921 = vector.load %arg26[%c1_350, %c0_351, %c0_352] : memref<2x1x32xf32, #tpu.memory_space<vmem>>, vector<1x1x32xf32>
    %922 = vector.shape_cast %921 : vector<1x1x32xf32> to vector<1x32xf32>
    %923 = vector.broadcast %922 : vector<1x32xf32> to vector<8x32xf32>
    %924 = arith.addf %920, %923 : vector<8x32xf32>
    %c1_353 = arith.constant 1 : index
    %c0_354 = arith.constant 0 : index
    %c0_355 = arith.constant 0 : index
    %925 = vector.load %arg27[%c1_353, %c0_354, %c0_355] : memref<2x32x64xbf16, #tpu.memory_space<vmem>>, vector<1x32x64xbf16>
    %926 = vector.shape_cast %925 : vector<1x32x64xbf16> to vector<32x64xbf16>
    %927 = arith.truncf %393 : vector<8x32xf32> to vector<8x32xbf16>
    %cst_356 = arith.constant dense<0.000000e+00> : vector<8x64xf32>
    %928 = tpu.matmul %927, %926, %cst_356 {dimension_numbers = #tpu.dot_dimension_numbers<[1], [0], [0], [1], [0, 0, 1, 1], [], []>} : vector<8x32xbf16>, vector<32x64xbf16>, vector<8x64xf32> -> vector<8x64xf32>
    %c1_357 = arith.constant 1 : index
    %c0_358 = arith.constant 0 : index
    %c0_359 = arith.constant 0 : index
    %929 = vector.load %arg28[%c1_357, %c0_358, %c0_359] : memref<2x1x64xf32, #tpu.memory_space<vmem>>, vector<1x1x64xf32>
    %930 = vector.shape_cast %929 : vector<1x1x64xf32> to vector<1x64xf32>
    %931 = vector.broadcast %930 : vector<1x64xf32> to vector<8x64xf32>
    %932 = arith.addf %928, %931 : vector<8x64xf32>
    %933 = vector.extract_strided_slice %932 {offsets = [0, 0], sizes = [8, 32], strides = [1, 1]} : vector<8x64xf32> to vector<8x32xf32>
    %934 = vector.extract_strided_slice %932 {offsets = [0, 32], sizes = [8, 32], strides = [1, 1]} : vector<8x64xf32> to vector<8x32xf32>
    %c1_360 = arith.constant 1 : index
    %c0_361 = arith.constant 0 : index
    %c0_362 = arith.constant 0 : index
    %935 = vector.load %arg29[%c1_360, %c0_361, %c0_362] : memref<2x32x32xf32, #tpu.memory_space<vmem>>, vector<1x32x32xf32>
    %936 = vector.shape_cast %935 : vector<1x32x32xf32> to vector<32x32xf32>
    %937 = vector.extract_strided_slice %924 {offsets = [0, 0], sizes = [8, 8], strides = [1, 1]} : vector<8x32xf32> to vector<8x8xf32>
    %938 = arith.truncf %937 : vector<8x8xf32> to vector<8x8xbf16>
    %939 = vector.extract_strided_slice %933 {offsets = [0, 0], sizes = [8, 8], strides = [1, 1]} : vector<8x32xf32> to vector<8x8xf32>
    %940 = arith.truncf %939 : vector<8x8xf32> to vector<8x8xbf16>
    %941 = vector.extract_strided_slice %934 {offsets = [0, 0], sizes = [8, 8], strides = [1, 1]} : vector<8x32xf32> to vector<8x8xf32>
    %942 = arith.truncf %941 : vector<8x8xf32> to vector<8x8xbf16>
    %cst_363 = arith.constant dense<0.000000e+00> : vector<8x8xf32>
    %943 = tpu.matmul %938, %940, %cst_363 {dimension_numbers = #tpu.dot_dimension_numbers<[1], [1], [0], [0], [0, 0, 1, 0], [], []>} : vector<8x8xbf16>, vector<8x8xbf16>, vector<8x8xf32> -> vector<8x8xf32>
    %cst_364 = arith.constant 0.353553385 : f32
    %944 = vector.broadcast %cst_364 : f32 to vector<8x8xf32>
    %945 = arith.mulf %943, %944 : vector<8x8xf32>
    %cst_365 = arith.constant dense<0xFF800000> : vector<8xf32>
    %946 = vector.multi_reduction <maximumf>, %945, %cst_365 [1] : vector<8x8xf32> to vector<8xf32>
    %947 = vector.shape_cast %946 : vector<8xf32> to vector<8x1xf32>
    %948 = vector.broadcast %947 : vector<8x1xf32> to vector<8x8xf32>
    %949 = arith.subf %945, %948 : vector<8x8xf32>
    %950 = math.exp %949 : vector<8x8xf32>
    %cst_366 = arith.constant dense<0.000000e+00> : vector<8xf32>
    %951 = vector.multi_reduction <add>, %950, %cst_366 [1] : vector<8x8xf32> to vector<8xf32>
    %952 = vector.shape_cast %951 : vector<8xf32> to vector<8x1xf32>
    %953 = tpu.reciprocal %952 {approx = true} : vector<8x1xf32> -> vector<8x1xf32>
    %954 = vector.broadcast %953 : vector<8x1xf32> to vector<8x8xf32>
    %955 = arith.mulf %950, %954 : vector<8x8xf32>
    %956 = arith.truncf %955 : vector<8x8xf32> to vector<8x8xbf16>
    %cst_367 = arith.constant dense<0.000000e+00> : vector<8x8xf32>
    %957 = tpu.matmul %956, %942, %cst_367 {dimension_numbers = #tpu.dot_dimension_numbers<[1], [0], [0], [1], [0, 0, 1, 1], [], []>} : vector<8x8xbf16>, vector<8x8xbf16>, vector<8x8xf32> -> vector<8x8xf32>
    %958 = arith.truncf %957 : vector<8x8xf32> to vector<8x8xbf16>
    %959 = vector.extract_strided_slice %936 {offsets = [0, 0], sizes = [8, 32], strides = [1, 1]} : vector<32x32xf32> to vector<8x32xf32>
    %960 = arith.truncf %959 : vector<8x32xf32> to vector<8x32xbf16>
    %cst_368 = arith.constant dense<0.000000e+00> : vector<8x32xf32>
    %961 = tpu.matmul %958, %960, %cst_368 {dimension_numbers = #tpu.dot_dimension_numbers<[1], [0], [0], [1], [0, 0, 1, 1], [], []>} : vector<8x8xbf16>, vector<8x32xbf16>, vector<8x32xf32> -> vector<8x32xf32>
    %962 = vector.extract_strided_slice %924 {offsets = [0, 8], sizes = [8, 8], strides = [1, 1]} : vector<8x32xf32> to vector<8x8xf32>
    %963 = arith.truncf %962 : vector<8x8xf32> to vector<8x8xbf16>
    %964 = vector.extract_strided_slice %933 {offsets = [0, 8], sizes = [8, 8], strides = [1, 1]} : vector<8x32xf32> to vector<8x8xf32>
    %965 = arith.truncf %964 : vector<8x8xf32> to vector<8x8xbf16>
    %966 = vector.extract_strided_slice %934 {offsets = [0, 8], sizes = [8, 8], strides = [1, 1]} : vector<8x32xf32> to vector<8x8xf32>
    %967 = arith.truncf %966 : vector<8x8xf32> to vector<8x8xbf16>
    %cst_369 = arith.constant dense<0.000000e+00> : vector<8x8xf32>
    %968 = tpu.matmul %963, %965, %cst_369 {dimension_numbers = #tpu.dot_dimension_numbers<[1], [1], [0], [0], [0, 0, 1, 0], [], []>} : vector<8x8xbf16>, vector<8x8xbf16>, vector<8x8xf32> -> vector<8x8xf32>
    %cst_370 = arith.constant 0.353553385 : f32
    %969 = vector.broadcast %cst_370 : f32 to vector<8x8xf32>
    %970 = arith.mulf %968, %969 : vector<8x8xf32>
    %cst_371 = arith.constant dense<0xFF800000> : vector<8xf32>
    %971 = vector.multi_reduction <maximumf>, %970, %cst_371 [1] : vector<8x8xf32> to vector<8xf32>
    %972 = vector.shape_cast %971 : vector<8xf32> to vector<8x1xf32>
    %973 = vector.broadcast %972 : vector<8x1xf32> to vector<8x8xf32>
    %974 = arith.subf %970, %973 : vector<8x8xf32>
    %975 = math.exp %974 : vector<8x8xf32>
    %cst_372 = arith.constant dense<0.000000e+00> : vector<8xf32>
    %976 = vector.multi_reduction <add>, %975, %cst_372 [1] : vector<8x8xf32> to vector<8xf32>
    %977 = vector.shape_cast %976 : vector<8xf32> to vector<8x1xf32>
    %978 = tpu.reciprocal %977 {approx = true} : vector<8x1xf32> -> vector<8x1xf32>
    %979 = vector.broadcast %978 : vector<8x1xf32> to vector<8x8xf32>
    %980 = arith.mulf %975, %979 : vector<8x8xf32>
    %981 = arith.truncf %980 : vector<8x8xf32> to vector<8x8xbf16>
    %cst_373 = arith.constant dense<0.000000e+00> : vector<8x8xf32>
    %982 = tpu.matmul %981, %967, %cst_373 {dimension_numbers = #tpu.dot_dimension_numbers<[1], [0], [0], [1], [0, 0, 1, 1], [], []>} : vector<8x8xbf16>, vector<8x8xbf16>, vector<8x8xf32> -> vector<8x8xf32>
    %983 = arith.truncf %982 : vector<8x8xf32> to vector<8x8xbf16>
    %984 = vector.extract_strided_slice %936 {offsets = [8, 0], sizes = [8, 32], strides = [1, 1]} : vector<32x32xf32> to vector<8x32xf32>
    %985 = arith.truncf %984 : vector<8x32xf32> to vector<8x32xbf16>
    %cst_374 = arith.constant dense<0.000000e+00> : vector<8x32xf32>
    %986 = tpu.matmul %983, %985, %cst_374 {dimension_numbers = #tpu.dot_dimension_numbers<[1], [0], [0], [1], [0, 0, 1, 1], [], []>} : vector<8x8xbf16>, vector<8x32xbf16>, vector<8x32xf32> -> vector<8x32xf32>
    %987 = arith.addf %961, %986 : vector<8x32xf32>
    %988 = vector.extract_strided_slice %924 {offsets = [0, 16], sizes = [8, 8], strides = [1, 1]} : vector<8x32xf32> to vector<8x8xf32>
    %989 = arith.truncf %988 : vector<8x8xf32> to vector<8x8xbf16>
    %990 = vector.extract_strided_slice %933 {offsets = [0, 16], sizes = [8, 8], strides = [1, 1]} : vector<8x32xf32> to vector<8x8xf32>
    %991 = arith.truncf %990 : vector<8x8xf32> to vector<8x8xbf16>
    %992 = vector.extract_strided_slice %934 {offsets = [0, 16], sizes = [8, 8], strides = [1, 1]} : vector<8x32xf32> to vector<8x8xf32>
    %993 = arith.truncf %992 : vector<8x8xf32> to vector<8x8xbf16>
    %cst_375 = arith.constant dense<0.000000e+00> : vector<8x8xf32>
    %994 = tpu.matmul %989, %991, %cst_375 {dimension_numbers = #tpu.dot_dimension_numbers<[1], [1], [0], [0], [0, 0, 1, 0], [], []>} : vector<8x8xbf16>, vector<8x8xbf16>, vector<8x8xf32> -> vector<8x8xf32>
    %cst_376 = arith.constant 0.353553385 : f32
    %995 = vector.broadcast %cst_376 : f32 to vector<8x8xf32>
    %996 = arith.mulf %994, %995 : vector<8x8xf32>
    %cst_377 = arith.constant dense<0xFF800000> : vector<8xf32>
    %997 = vector.multi_reduction <maximumf>, %996, %cst_377 [1] : vector<8x8xf32> to vector<8xf32>
    %998 = vector.shape_cast %997 : vector<8xf32> to vector<8x1xf32>
    %999 = vector.broadcast %998 : vector<8x1xf32> to vector<8x8xf32>
    %1000 = arith.subf %996, %999 : vector<8x8xf32>
    %1001 = math.exp %1000 : vector<8x8xf32>
    %cst_378 = arith.constant dense<0.000000e+00> : vector<8xf32>
    %1002 = vector.multi_reduction <add>, %1001, %cst_378 [1] : vector<8x8xf32> to vector<8xf32>
    %1003 = vector.shape_cast %1002 : vector<8xf32> to vector<8x1xf32>
    %1004 = tpu.reciprocal %1003 {approx = true} : vector<8x1xf32> -> vector<8x1xf32>
    %1005 = vector.broadcast %1004 : vector<8x1xf32> to vector<8x8xf32>
    %1006 = arith.mulf %1001, %1005 : vector<8x8xf32>
    %1007 = arith.truncf %1006 : vector<8x8xf32> to vector<8x8xbf16>
    %cst_379 = arith.constant dense<0.000000e+00> : vector<8x8xf32>
    %1008 = tpu.matmul %1007, %993, %cst_379 {dimension_numbers = #tpu.dot_dimension_numbers<[1], [0], [0], [1], [0, 0, 1, 1], [], []>} : vector<8x8xbf16>, vector<8x8xbf16>, vector<8x8xf32> -> vector<8x8xf32>
    %1009 = arith.truncf %1008 : vector<8x8xf32> to vector<8x8xbf16>
    %1010 = vector.extract_strided_slice %936 {offsets = [16, 0], sizes = [8, 32], strides = [1, 1]} : vector<32x32xf32> to vector<8x32xf32>
    %1011 = arith.truncf %1010 : vector<8x32xf32> to vector<8x32xbf16>
    %cst_380 = arith.constant dense<0.000000e+00> : vector<8x32xf32>
    %1012 = tpu.matmul %1009, %1011, %cst_380 {dimension_numbers = #tpu.dot_dimension_numbers<[1], [0], [0], [1], [0, 0, 1, 1], [], []>} : vector<8x8xbf16>, vector<8x32xbf16>, vector<8x32xf32> -> vector<8x32xf32>
    %1013 = arith.addf %987, %1012 : vector<8x32xf32>
    %1014 = vector.extract_strided_slice %924 {offsets = [0, 24], sizes = [8, 8], strides = [1, 1]} : vector<8x32xf32> to vector<8x8xf32>
    %1015 = arith.truncf %1014 : vector<8x8xf32> to vector<8x8xbf16>
    %1016 = vector.extract_strided_slice %933 {offsets = [0, 24], sizes = [8, 8], strides = [1, 1]} : vector<8x32xf32> to vector<8x8xf32>
    %1017 = arith.truncf %1016 : vector<8x8xf32> to vector<8x8xbf16>
    %1018 = vector.extract_strided_slice %934 {offsets = [0, 24], sizes = [8, 8], strides = [1, 1]} : vector<8x32xf32> to vector<8x8xf32>
    %1019 = arith.truncf %1018 : vector<8x8xf32> to vector<8x8xbf16>
    %cst_381 = arith.constant dense<0.000000e+00> : vector<8x8xf32>
    %1020 = tpu.matmul %1015, %1017, %cst_381 {dimension_numbers = #tpu.dot_dimension_numbers<[1], [1], [0], [0], [0, 0, 1, 0], [], []>} : vector<8x8xbf16>, vector<8x8xbf16>, vector<8x8xf32> -> vector<8x8xf32>
    %cst_382 = arith.constant 0.353553385 : f32
    %1021 = vector.broadcast %cst_382 : f32 to vector<8x8xf32>
    %1022 = arith.mulf %1020, %1021 : vector<8x8xf32>
    %cst_383 = arith.constant dense<0xFF800000> : vector<8xf32>
    %1023 = vector.multi_reduction <maximumf>, %1022, %cst_383 [1] : vector<8x8xf32> to vector<8xf32>
    %1024 = vector.shape_cast %1023 : vector<8xf32> to vector<8x1xf32>
    %1025 = vector.broadcast %1024 : vector<8x1xf32> to vector<8x8xf32>
    %1026 = arith.subf %1022, %1025 : vector<8x8xf32>
    %1027 = math.exp %1026 : vector<8x8xf32>
    %cst_384 = arith.constant dense<0.000000e+00> : vector<8xf32>
    %1028 = vector.multi_reduction <add>, %1027, %cst_384 [1] : vector<8x8xf32> to vector<8xf32>
    %1029 = vector.shape_cast %1028 : vector<8xf32> to vector<8x1xf32>
    %1030 = tpu.reciprocal %1029 {approx = true} : vector<8x1xf32> -> vector<8x1xf32>
    %1031 = vector.broadcast %1030 : vector<8x1xf32> to vector<8x8xf32>
    %1032 = arith.mulf %1027, %1031 : vector<8x8xf32>
    %1033 = arith.truncf %1032 : vector<8x8xf32> to vector<8x8xbf16>
    %cst_385 = arith.constant dense<0.000000e+00> : vector<8x8xf32>
    %1034 = tpu.matmul %1033, %1019, %cst_385 {dimension_numbers = #tpu.dot_dimension_numbers<[1], [0], [0], [1], [0, 0, 1, 1], [], []>} : vector<8x8xbf16>, vector<8x8xbf16>, vector<8x8xf32> -> vector<8x8xf32>
    %1035 = arith.truncf %1034 : vector<8x8xf32> to vector<8x8xbf16>
    %1036 = vector.extract_strided_slice %936 {offsets = [24, 0], sizes = [8, 32], strides = [1, 1]} : vector<32x32xf32> to vector<8x32xf32>
    %1037 = arith.truncf %1036 : vector<8x32xf32> to vector<8x32xbf16>
    %cst_386 = arith.constant dense<0.000000e+00> : vector<8x32xf32>
    %1038 = tpu.matmul %1035, %1037, %cst_386 {dimension_numbers = #tpu.dot_dimension_numbers<[1], [0], [0], [1], [0, 0, 1, 1], [], []>} : vector<8x8xbf16>, vector<8x32xbf16>, vector<8x32xf32> -> vector<8x32xf32>
    %1039 = arith.addf %1013, %1038 : vector<8x32xf32>
    %c1_387 = arith.constant 1 : index
    %c0_388 = arith.constant 0 : index
    %c0_389 = arith.constant 0 : index
    %1040 = vector.load %arg30[%c1_387, %c0_388, %c0_389] : memref<2x1x32xf32, #tpu.memory_space<vmem>>, vector<1x1x32xf32>
    %1041 = vector.shape_cast %1040 : vector<1x1x32xf32> to vector<1x32xf32>
    %1042 = vector.broadcast %1041 : vector<1x32xf32> to vector<8x32xf32>
    %1043 = arith.addf %1039, %1042 : vector<8x32xf32>
    %1044 = arith.addf %916, %1043 : vector<8x32xf32>
    %c1_390 = arith.constant 1 : index
    %c0_391 = arith.constant 0 : index
    %c0_392 = arith.constant 0 : index
    %1045 = vector.load %arg31[%c1_390, %c0_391, %c0_392] : memref<2x1x32xf32, #tpu.memory_space<vmem>>, vector<1x1x32xf32>
    %1046 = vector.shape_cast %1045 : vector<1x1x32xf32> to vector<1x32xf32>
    %c1_393 = arith.constant 1 : index
    %c0_394 = arith.constant 0 : index
    %c0_395 = arith.constant 0 : index
    %1047 = vector.load %arg32[%c1_393, %c0_394, %c0_395] : memref<2x1x32xf32, #tpu.memory_space<vmem>>, vector<1x1x32xf32>
    %1048 = vector.shape_cast %1047 : vector<1x1x32xf32> to vector<1x32xf32>
    %cst_396 = arith.constant dense<0.000000e+00> : vector<8xf32>
    %1049 = vector.multi_reduction <add>, %1044, %cst_396 [1] : vector<8x32xf32> to vector<8xf32>
    %1050 = vector.shape_cast %1049 : vector<8xf32> to vector<8x1xf32>
    %cst_397 = arith.constant 3.200000e+01 : f32
    %1051 = vector.broadcast %cst_397 : f32 to vector<8x1xf32>
    %1052 = arith.divf %1050, %1051 : vector<8x1xf32>
    %1053 = vector.broadcast %1052 : vector<8x1xf32> to vector<8x32xf32>
    %1054 = arith.subf %1044, %1053 : vector<8x32xf32>
    %1055 = arith.mulf %1054, %1054 : vector<8x32xf32>
    %cst_398 = arith.constant dense<0.000000e+00> : vector<8xf32>
    %1056 = vector.multi_reduction <add>, %1055, %cst_398 [1] : vector<8x32xf32> to vector<8xf32>
    %1057 = vector.shape_cast %1056 : vector<8xf32> to vector<8x1xf32>
    %cst_399 = arith.constant 3.200000e+01 : f32
    %1058 = vector.broadcast %cst_399 : f32 to vector<8x1xf32>
    %1059 = arith.divf %1057, %1058 : vector<8x1xf32>
    %1060 = vector.broadcast %1052 : vector<8x1xf32> to vector<8x32xf32>
    %1061 = arith.subf %1044, %1060 : vector<8x32xf32>
    %cst_400 = arith.constant 9.99999974E-6 : f32
    %1062 = vector.broadcast %cst_400 : f32 to vector<8x1xf32>
    %1063 = arith.addf %1059, %1062 : vector<8x1xf32>
    %1064 = math.rsqrt %1063 : vector<8x1xf32>
    %1065 = vector.broadcast %1064 : vector<8x1xf32> to vector<8x32xf32>
    %1066 = arith.mulf %1061, %1065 : vector<8x32xf32>
    %1067 = vector.broadcast %1046 : vector<1x32xf32> to vector<8x32xf32>
    %1068 = arith.mulf %1066, %1067 : vector<8x32xf32>
    %1069 = vector.broadcast %1048 : vector<1x32xf32> to vector<8x32xf32>
    %1070 = arith.addf %1068, %1069 : vector<8x32xf32>
    %c1_401 = arith.constant 1 : index
    %c0_402 = arith.constant 0 : index
    %c0_403 = arith.constant 0 : index
    %1071 = vector.load %arg33[%c1_401, %c0_402, %c0_403] : memref<2x32x64xbf16, #tpu.memory_space<vmem>>, vector<1x32x64xbf16>
    %1072 = vector.shape_cast %1071 : vector<1x32x64xbf16> to vector<32x64xbf16>
    %1073 = arith.truncf %1070 : vector<8x32xf32> to vector<8x32xbf16>
    %cst_404 = arith.constant dense<0.000000e+00> : vector<8x64xf32>
    %1074 = tpu.matmul %1073, %1072, %cst_404 {dimension_numbers = #tpu.dot_dimension_numbers<[1], [0], [0], [1], [0, 0, 1, 1], [], []>} : vector<8x32xbf16>, vector<32x64xbf16>, vector<8x64xf32> -> vector<8x64xf32>
    %c1_405 = arith.constant 1 : index
    %c0_406 = arith.constant 0 : index
    %c0_407 = arith.constant 0 : index
    %1075 = vector.load %arg34[%c1_405, %c0_406, %c0_407] : memref<2x1x64xf32, #tpu.memory_space<vmem>>, vector<1x1x64xf32>
    %1076 = vector.shape_cast %1075 : vector<1x1x64xf32> to vector<1x64xf32>
    %1077 = vector.broadcast %1076 : vector<1x64xf32> to vector<8x64xf32>
    %1078 = arith.addf %1074, %1077 : vector<8x64xf32>
    %cst_408 = arith.constant 0.000000e+00 : f32
    %1079 = vector.broadcast %cst_408 : f32 to vector<8x64xf32>
    %1080 = arith.maximumf %1078, %1079 : vector<8x64xf32>
    %c1_409 = arith.constant 1 : index
    %c0_410 = arith.constant 0 : index
    %c0_411 = arith.constant 0 : index
    %1081 = vector.load %arg35[%c1_409, %c0_410, %c0_411] : memref<2x64x32xbf16, #tpu.memory_space<vmem>>, vector<1x64x32xbf16>
    %1082 = vector.shape_cast %1081 : vector<1x64x32xbf16> to vector<64x32xbf16>
    %1083 = arith.truncf %1080 : vector<8x64xf32> to vector<8x64xbf16>
    %cst_412 = arith.constant dense<0.000000e+00> : vector<8x32xf32>
    %1084 = tpu.matmul %1083, %1082, %cst_412 {dimension_numbers = #tpu.dot_dimension_numbers<[1], [0], [0], [1], [0, 0, 1, 1], [], []>} : vector<8x64xbf16>, vector<64x32xbf16>, vector<8x32xf32> -> vector<8x32xf32>
    %c1_413 = arith.constant 1 : index
    %c0_414 = arith.constant 0 : index
    %c0_415 = arith.constant 0 : index
    %1085 = vector.load %arg36[%c1_413, %c0_414, %c0_415] : memref<2x1x32xf32, #tpu.memory_space<vmem>>, vector<1x1x32xf32>
    %1086 = vector.shape_cast %1085 : vector<1x1x32xf32> to vector<1x32xf32>
    %1087 = vector.broadcast %1086 : vector<1x32xf32> to vector<8x32xf32>
    %1088 = arith.addf %1084, %1087 : vector<8x32xf32>
    %1089 = arith.addf %1070, %1088 : vector<8x32xf32>
    %c1_416 = arith.constant 1 : index
    %c0_417 = arith.constant 0 : index
    %c0_418 = arith.constant 0 : index
    %1090 = vector.load %arg37[%c1_416, %c0_417, %c0_418] : memref<2x1x32xf32, #tpu.memory_space<vmem>>, vector<1x1x32xf32>
    %1091 = vector.shape_cast %1090 : vector<1x1x32xf32> to vector<1x32xf32>
    %c1_419 = arith.constant 1 : index
    %c0_420 = arith.constant 0 : index
    %c0_421 = arith.constant 0 : index
    %1092 = vector.load %arg38[%c1_419, %c0_420, %c0_421] : memref<2x1x32xf32, #tpu.memory_space<vmem>>, vector<1x1x32xf32>
    %1093 = vector.shape_cast %1092 : vector<1x1x32xf32> to vector<1x32xf32>
    %cst_422 = arith.constant dense<0.000000e+00> : vector<8xf32>
    %1094 = vector.multi_reduction <add>, %1089, %cst_422 [1] : vector<8x32xf32> to vector<8xf32>
    %1095 = vector.shape_cast %1094 : vector<8xf32> to vector<8x1xf32>
    %cst_423 = arith.constant 3.200000e+01 : f32
    %1096 = vector.broadcast %cst_423 : f32 to vector<8x1xf32>
    %1097 = arith.divf %1095, %1096 : vector<8x1xf32>
    %1098 = vector.broadcast %1097 : vector<8x1xf32> to vector<8x32xf32>
    %1099 = arith.subf %1089, %1098 : vector<8x32xf32>
    %1100 = arith.mulf %1099, %1099 : vector<8x32xf32>
    %cst_424 = arith.constant dense<0.000000e+00> : vector<8xf32>
    %1101 = vector.multi_reduction <add>, %1100, %cst_424 [1] : vector<8x32xf32> to vector<8xf32>
    %1102 = vector.shape_cast %1101 : vector<8xf32> to vector<8x1xf32>
    %cst_425 = arith.constant 3.200000e+01 : f32
    %1103 = vector.broadcast %cst_425 : f32 to vector<8x1xf32>
    %1104 = arith.divf %1102, %1103 : vector<8x1xf32>
    %1105 = vector.broadcast %1097 : vector<8x1xf32> to vector<8x32xf32>
    %1106 = arith.subf %1089, %1105 : vector<8x32xf32>
    %cst_426 = arith.constant 9.99999974E-6 : f32
    %1107 = vector.broadcast %cst_426 : f32 to vector<8x1xf32>
    %1108 = arith.addf %1104, %1107 : vector<8x1xf32>
    %1109 = math.rsqrt %1108 : vector<8x1xf32>
    %1110 = vector.broadcast %1109 : vector<8x1xf32> to vector<8x32xf32>
    %1111 = arith.mulf %1106, %1110 : vector<8x32xf32>
    %1112 = vector.broadcast %1091 : vector<1x32xf32> to vector<8x32xf32>
    %1113 = arith.mulf %1111, %1112 : vector<8x32xf32>
    %1114 = vector.broadcast %1093 : vector<1x32xf32> to vector<8x32xf32>
    %1115 = arith.addf %1113, %1114 : vector<8x32xf32>
    %c0_427 = arith.constant 0 : index
    %c0_428 = arith.constant 0 : index
    %1116 = vector.load %arg39[%c0_427, %c0_428] : memref<32x32xbf16, #tpu.memory_space<vmem>>, vector<32x32xbf16>
    %1117 = arith.truncf %1115 : vector<8x32xf32> to vector<8x32xbf16>
    %cst_429 = arith.constant dense<0.000000e+00> : vector<8x32xf32>
    %1118 = tpu.matmul %1117, %1116, %cst_429 {dimension_numbers = #tpu.dot_dimension_numbers<[1], [0], [0], [1], [0, 0, 1, 1], [], []>} : vector<8x32xbf16>, vector<32x32xbf16>, vector<8x32xf32> -> vector<8x32xf32>
    %c0_430 = arith.constant 0 : index
    %c0_431 = arith.constant 0 : index
    %1119 = vector.load %arg40[%c0_430, %c0_431] : memref<1x32xf32, #tpu.memory_space<vmem>>, vector<1x32xf32>
    %1120 = vector.broadcast %1119 : vector<1x32xf32> to vector<8x32xf32>
    %1121 = arith.addf %1118, %1120 : vector<8x32xf32>
    %cst_432 = arith.constant dense<0xFF800000> : vector<8xf32>
    %1122 = vector.multi_reduction <maximumf>, %1121, %cst_432 [1] : vector<8x32xf32> to vector<8xf32>
    %1123 = vector.shape_cast %1122 : vector<8xf32> to vector<8x1xf32>
    %1124 = vector.broadcast %1123 : vector<8x1xf32> to vector<8x32xf32>
    %1125 = arith.subf %1121, %1124 : vector<8x32xf32>
    %1126 = math.exp %1125 : vector<8x32xf32>
    %cst_433 = arith.constant dense<0.000000e+00> : vector<8xf32>
    %1127 = vector.multi_reduction <add>, %1126, %cst_433 [1] : vector<8x32xf32> to vector<8xf32>
    %1128 = vector.shape_cast %1127 : vector<8xf32> to vector<8x1xf32>
    %1129 = tpu.reciprocal %1128 {approx = true} : vector<8x1xf32> -> vector<8x1xf32>
    %1130 = vector.broadcast %1129 : vector<8x1xf32> to vector<8x32xf32>
    %1131 = arith.mulf %1126, %1130 : vector<8x32xf32>
    %c0_434 = arith.constant 0 : index
    %c0_435 = arith.constant 0 : index
    %c0_436 = arith.constant 0 : index
    %1132 = vector.load %arg41[%c0_434, %c0_435, %c0_436] : memref<1x8x32xf32, #tpu.memory_space<vmem>>, vector<1x8x32xf32>
    %1133 = vector.shape_cast %1132 : vector<1x8x32xf32> to vector<8x32xf32>
    %1134 = vector.shape_cast %1131 : vector<8x32xf32> to vector<1x8x32xf32>
    tpu.vector_store %arg41[%c0_434, %c0_435, %c0_436], %1134 {strides = array<i32>} : memref<1x8x32xf32, #tpu.memory_space<vmem>>, vector<1x8x32xf32>,
    return
  }
  func.func @transform_0(%arg0: i32) -> (i32, i32, i32) {
    %c0_i32 = arith.constant 0 : i32
    %c0_i32_0 = arith.constant 0 : i32
    %c0_i32_1 = arith.constant 0 : i32
    return %arg0, %c0_i32, %c0_i32_0 : i32, i32, i32
  }
  func.func @transform_1(%arg0: i32) -> (i32, i32, i32) {
    %c0_i32 = arith.constant 0 : i32
    %c0_i32_0 = arith.constant 0 : i32
    %c0_i32_1 = arith.constant 0 : i32
    return %arg0, %c0_i32, %c0_i32_0 : i32, i32, i32
  }
  func.func @transform_2(%arg0: i32) -> (i32, i32) {
    %c0_i32 = arith.constant 0 : i32
    %c0_i32_0 = arith.constant 0 : i32
    %c0_i32_1 = arith.constant 0 : i32
    return %c0_i32, %c0_i32_0 : i32, i32
  }
  func.func @transform_3(%arg0: i32) -> (i32, i32) {
    %c0_i32 = arith.constant 0 : i32
    %c0_i32_0 = arith.constant 0 : i32
    %c0_i32_1 = arith.constant 0 : i32
    return %c0_i32, %c0_i32_0 : i32, i32
  }
  func.func @transform_4(%arg0: i32) -> (i32, i32) {
    %c0_i32 = arith.constant 0 : i32
    %c0_i32_0 = arith.constant 0 : i32
    %c0_i32_1 = arith.constant 0 : i32
    return %c0_i32, %c0_i32_0 : i32, i32
  }
  func.func @transform_5(%arg0: i32) -> (i32, i32) {
    %c0_i32 = arith.constant 0 : i32
    %c0_i32_0 = arith.constant 0 : i32
    %c0_i32_1 = arith.constant 0 : i32
    return %c0_i32, %c0_i32_0 : i32, i32
  }
  func.func @transform_6(%arg0: i32) -> (i32, i32, i32) {
    %c0_i32 = arith.constant 0 : i32
    %c0_i32_0 = arith.constant 0 : i32
    %c0_i32_1 = arith.constant 0 : i32
    %c0_i32_2 = arith.constant 0 : i32
    return %c0_i32, %c0_i32_0, %c0_i32_1 : i32, i32, i32
  }
  func.func @transform_7(%arg0: i32) -> (i32, i32, i32) {
    %c0_i32 = arith.constant 0 : i32
    %c0_i32_0 = arith.constant 0 : i32
    %c0_i32_1 = arith.constant 0 : i32
    %c0_i32_2 = arith.constant 0 : i32
    return %c0_i32, %c0_i32_0, %c0_i32_1 : i32, i32, i32
  }
  func.func @transform_8(%arg0: i32) -> (i32, i32, i32) {
    %c0_i32 = arith.constant 0 : i32
    %c0_i32_0 = arith.constant 0 : i32
    %c0_i32_1 = arith.constant 0 : i32
    %c0_i32_2 = arith.constant 0 : i32
    return %c0_i32, %c0_i32_0, %c0_i32_1 : i32, i32, i32
  }
  func.func @transform_9(%arg0: i32) -> (i32, i32, i32) {
    %c0_i32 = arith.constant 0 : i32
    %c0_i32_0 = arith.constant 0 : i32
    %c0_i32_1 = arith.constant 0 : i32
    %c0_i32_2 = arith.constant 0 : i32
    return %c0_i32, %c0_i32_0, %c0_i32_1 : i32, i32, i32
  }
  func.func @transform_10(%arg0: i32) -> (i32, i32, i32) {
    %c0_i32 = arith.constant 0 : i32
    %c0_i32_0 = arith.constant 0 : i32
    %c0_i32_1 = arith.constant 0 : i32
    %c0_i32_2 = arith.constant 0 : i32
    return %c0_i32, %c0_i32_0, %c0_i32_1 : i32, i32, i32
  }
  func.func @transform_11(%arg0: i32) -> (i32, i32, i32) {
    %c0_i32 = arith.constant 0 : i32
    %c0_i32_0 = arith.constant 0 : i32
    %c0_i32_1 = arith.constant 0 : i32
    %c0_i32_2 = arith.constant 0 : i32
    return %c0_i32, %c0_i32_0, %c0_i32_1 : i32, i32, i32
  }
  func.func @transform_12(%arg0: i32) -> (i32, i32, i32) {
    %c0_i32 = arith.constant 0 : i32
    %c0_i32_0 = arith.constant 0 : i32
    %c0_i32_1 = arith.constant 0 : i32
    %c0_i32_2 = arith.constant 0 : i32
    return %c0_i32, %c0_i32_0, %c0_i32_1 : i32, i32, i32
  }
  func.func @transform_13(%arg0: i32) -> (i32, i32, i32) {
    %c0_i32 = arith.constant 0 : i32
    %c0_i32_0 = arith.constant 0 : i32
    %c0_i32_1 = arith.constant 0 : i32
    %c0_i32_2 = arith.constant 0 : i32
    return %c0_i32, %c0_i32_0, %c0_i32_1 : i32, i32, i32
  }
  func.func @transform_14(%arg0: i32) -> (i32, i32, i32) {
    %c0_i32 = arith.constant 0 : i32
    %c0_i32_0 = arith.constant 0 : i32
    %c0_i32_1 = arith.constant 0 : i32
    %c0_i32_2 = arith.constant 0 : i32
    return %c0_i32, %c0_i32_0, %c0_i32_1 : i32, i32, i32
  }
  func.func @transform_15(%arg0: i32) -> (i32, i32, i32) {
    %c0_i32 = arith.constant 0 : i32
    %c0_i32_0 = arith.constant 0 : i32
    %c0_i32_1 = arith.constant 0 : i32
    %c0_i32_2 = arith.constant 0 : i32
    return %c0_i32, %c0_i32_0, %c0_i32_1 : i32, i32, i32
  }
  func.func @transform_16(%arg0: i32) -> (i32, i32, i32) {
    %c0_i32 = arith.constant 0 : i32
    %c0_i32_0 = arith.constant 0 : i32
    %c0_i32_1 = arith.constant 0 : i32
    %c0_i32_2 = arith.constant 0 : i32
    return %c0_i32, %c0_i32_0, %c0_i32_1 : i32, i32, i32
  }
  func.func @transform_17(%arg0: i32) -> (i32, i32, i32) {
    %c0_i32 = arith.constant 0 : i32
    %c0_i32_0 = arith.constant 0 : i32
    %c0_i32_1 = arith.constant 0 : i32
    %c0_i32_2 = arith.constant 0 : i32
    return %c0_i32, %c0_i32_0, %c0_i32_1 : i32, i32, i32
  }
  func.func @transform_18(%arg0: i32) -> (i32, i32, i32) {
    %c0_i32 = arith.constant 0 : i32
    %c0_i32_0 = arith.constant 0 : i32
    %c0_i32_1 = arith.constant 0 : i32
    %c0_i32_2 = arith.constant 0 : i32
    return %c0_i32, %c0_i32_0, %c0_i32_1 : i32, i32, i32
  }
  func.func @transform_19(%arg0: i32) -> (i32, i32, i32) {
    %c0_i32 = arith.constant 0 : i32
    %c0_i32_0 = arith.constant 0 : i32
    %c0_i32_1 = arith.constant 0 : i32
    %c0_i32_2 = arith.constant 0 : i32
    return %c0_i32, %c0_i32_0, %c0_i32_1 : i32, i32, i32
  }
  func.func @transform_20(%arg0: i32) -> (i32, i32, i32) {
    %c0_i32 = arith.constant 0 : i32
    %c0_i32_0 = arith.constant 0 : i32
    %c0_i32_1 = arith.constant 0 : i32
    %c0_i32_2 = arith.constant 0 : i32
    return %c0_i32, %c0_i32_0, %c0_i32_1 : i32, i32, i32
  }
  func.func @transform_21(%arg0: i32) -> (i32, i32, i32) {
    %c0_i32 = arith.constant 0 : i32
    %c0_i32_0 = arith.constant 0 : i32
    %c0_i32_1 = arith.constant 0 : i32
    %c0_i32_2 = arith.constant 0 : i32
    return %c0_i32, %c0_i32_0, %c0_i32_1 : i32, i32, i32
  }
  func.func @transform_22(%arg0: i32) -> (i32, i32, i32) {
    %c0_i32 = arith.constant 0 : i32
    %c0_i32_0 = arith.constant 0 : i32
    %c0_i32_1 = arith.constant 0 : i32
    %c0_i32_2 = arith.constant 0 : i32
    return %c0_i32, %c0_i32_0, %c0_i32_1 : i32, i32, i32
  }
  func.func @transform_23(%arg0: i32) -> (i32, i32, i32) {
    %c0_i32 = arith.constant 0 : i32
    %c0_i32_0 = arith.constant 0 : i32
    %c0_i32_1 = arith.constant 0 : i32
    %c0_i32_2 = arith.constant 0 : i32
    return %c0_i32, %c0_i32_0, %c0_i32_1 : i32, i32, i32
  }
  func.func @transform_24(%arg0: i32) -> (i32, i32, i32) {
    %c0_i32 = arith.constant 0 : i32
    %c0_i32_0 = arith.constant 0 : i32
    %c0_i32_1 = arith.constant 0 : i32
    %c0_i32_2 = arith.constant 0 : i32
    return %c0_i32, %c0_i32_0, %c0_i32_1 : i32, i32, i32
  }
  func.func @transform_25(%arg0: i32) -> (i32, i32, i32) {
    %c0_i32 = arith.constant 0 : i32
    %c0_i32_0 = arith.constant 0 : i32
    %c0_i32_1 = arith.constant 0 : i32
    %c0_i32_2 = arith.constant 0 : i32
    return %c0_i32, %c0_i32_0, %c0_i32_1 : i32, i32, i32
  }
  func.func @transform_26(%arg0: i32) -> (i32, i32, i32) {
    %c0_i32 = arith.constant 0 : i32
    %c0_i32_0 = arith.constant 0 : i32
    %c0_i32_1 = arith.constant 0 : i32
    %c0_i32_2 = arith.constant 0 : i32
    return %c0_i32, %c0_i32_0, %c0_i32_1 : i32, i32, i32
  }
  func.func @transform_27(%arg0: i32) -> (i32, i32, i32) {
    %c0_i32 = arith.constant 0 : i32
    %c0_i32_0 = arith.constant 0 : i32
    %c0_i32_1 = arith.constant 0 : i32
    %c0_i32_2 = arith.constant 0 : i32
    return %c0_i32, %c0_i32_0, %c0_i32_1 : i32, i32, i32
  }
  func.func @transform_28(%arg0: i32) -> (i32, i32, i32) {
    %c0_i32 = arith.constant 0 : i32
    %c0_i32_0 = arith.constant 0 : i32
    %c0_i32_1 = arith.constant 0 : i32
    %c0_i32_2 = arith.constant 0 : i32
    return %c0_i32, %c0_i32_0, %c0_i32_1 : i32, i32, i32
  }
  func.func @transform_29(%arg0: i32) -> (i32, i32, i32) {
    %c0_i32 = arith.constant 0 : i32
    %c0_i32_0 = arith.constant 0 : i32
    %c0_i32_1 = arith.constant 0 : i32
    %c0_i32_2 = arith.constant 0 : i32
    return %c0_i32, %c0_i32_0, %c0_i32_1 : i32, i32, i32
  }
  func.func @transform_30(%arg0: i32) -> (i32, i32, i32) {
    %c0_i32 = arith.constant 0 : i32
    %c0_i32_0 = arith.constant 0 : i32
    %c0_i32_1 = arith.constant 0 : i32
    %c0_i32_2 = arith.constant 0 : i32
    return %c0_i32, %c0_i32_0, %c0_i32_1 : i32, i32, i32
  }
  func.func @transform_31(%arg0: i32) -> (i32, i32, i32) {
    %c0_i32 = arith.constant 0 : i32
    %c0_i32_0 = arith.constant 0 : i32
    %c0_i32_1 = arith.constant 0 : i32
    %c0_i32_2 = arith.constant 0 : i32
    return %c0_i32, %c0_i32_0, %c0_i32_1 : i32, i32, i32
  }
  func.func @transform_32(%arg0: i32) -> (i32, i32, i32) {
    %c0_i32 = arith.constant 0 : i32
    %c0_i32_0 = arith.constant 0 : i32
    %c0_i32_1 = arith.constant 0 : i32
    %c0_i32_2 = arith.constant 0 : i32
    return %c0_i32, %c0_i32_0, %c0_i32_1 : i32, i32, i32
  }
  func.func @transform_33(%arg0: i32) -> (i32, i32, i32) {
    %c0_i32 = arith.constant 0 : i32
    %c0_i32_0 = arith.constant 0 : i32
    %c0_i32_1 = arith.constant 0 : i32
    %c0_i32_2 = arith.constant 0 : i32
    return %c0_i32, %c0_i32_0, %c0_i32_1 : i32, i32, i32
  }
  func.func @transform_34(%arg0: i32) -> (i32, i32, i32) {
    %c0_i32 = arith.constant 0 : i32
    %c0_i32_0 = arith.constant 0 : i32
    %c0_i32_1 = arith.constant 0 : i32
    %c0_i32_2 = arith.constant 0 : i32
    return %c0_i32, %c0_i32_0, %c0_i32_1 : i32, i32, i32
  }
  func.func @transform_35(%arg0: i32) -> (i32, i32, i32) {
    %c0_i32 = arith.constant 0 : i32
    %c0_i32_0 = arith.constant 0 : i32
    %c0_i32_1 = arith.constant 0 : i32
    %c0_i32_2 = arith.constant 0 : i32
    return %c0_i32, %c0_i32_0, %c0_i32_1 : i32, i32, i32
  }
  func.func @transform_36(%arg0: i32) -> (i32, i32, i32) {
    %c0_i32 = arith.constant 0 : i32
    %c0_i32_0 = arith.constant 0 : i32
    %c0_i32_1 = arith.constant 0 : i32
    %c0_i32_2 = arith.constant 0 : i32
    return %c0_i32, %c0_i32_0, %c0_i32_1 : i32, i32, i32
  }
  func.func @transform_37(%arg0: i32) -> (i32, i32, i32) {
    %c0_i32 = arith.constant 0 : i32
    %c0_i32_0 = arith.constant 0 : i32
    %c0_i32_1 = arith.constant 0 : i32
    %c0_i32_2 = arith.constant 0 : i32
    return %c0_i32, %c0_i32_0, %c0_i32_1 : i32, i32, i32
  }
  func.func @transform_38(%arg0: i32) -> (i32, i32) {
    %c0_i32 = arith.constant 0 : i32
    %c0_i32_0 = arith.constant 0 : i32
    %c0_i32_1 = arith.constant 0 : i32
    return %c0_i32, %c0_i32_0 : i32, i32
  }
  func.func @transform_39(%arg0: i32) -> (i32, i32) {
    %c0_i32 = arith.constant 0 : i32
    %c0_i32_0 = arith.constant 0 : i32
    %c0_i32_1 = arith.constant 0 : i32
    return %c0_i32, %c0_i32_0 : i32, i32
  }
  func.func @transform_40(%arg0: i32) -> (i32, i32, i32) {
    %c0_i32 = arith.constant 0 : i32
    %c0_i32_0 = arith.constant 0 : i32
    %c0_i32_1 = arith.constant 0 : i32
    return %arg0, %c0_i32, %c0_i32_0 : i32, i32, i32
  }
}

</mosaic_0001>

<bundles_post_ra>
// kernel: transformers_forward.1
= control target key start
LH: loop header
LB: loop body
LE: loop exit
PB: predicated region body
PF: predicated region fallthrough
CT: control target
= control target key end

     0   :  { %s8204_s6 = smov 1   ;;  %s8205_s10 = smov 2   ;;  %s9359_s0 = inlined_call_operand.smem [shape: u32[41], index: -1, kind: input, shape index: {}] }
   0x1   :  { %s8266_s5 = sld [smem:[%s9359_s0]]   ;;  %s8206_s14 = smov 3  }
   0x2   :  { %s8271_s9 = sld [smem:[%s9359_s0 + %s8204_s6]]   ;;  %s8207_s18 = smov 4  }
   0x3   :  { %s8276_s13 = sld [smem:[%s9359_s0 + %s8205_s10]]   ;;  %s8208_s22 = smov 5  }
   0x4   :  { %s8281_s17 = sld [smem:[%s9359_s0 + %s8206_s14]]   ;;  %s8209_s26 = smov 6  }
   0x5   :  { %s8286_s21 = sld [smem:[%s9359_s0 + %s8207_s18]]   ;;  %s8210_s30 = smov 7  }
   0x6   :  { %s8291_s25 = sld [smem:[%s9359_s0 + %s8208_s22]]   ;;  %s8211_s4 = smov 8  }
   0x7   :  { %9419 = sst [smem:[#allocation2_spill]] %s8266_s5  ;;  %s8212_s10 = smov 9  }
   0x8   :  { %9420 = sst [smem:[#allocation3_spill]] %s8271_s9  ;;  %s8213_s15 = smov 10  }
   0x9   :  { %9421 = sst [smem:[#allocation4_spill]] %s8276_s13  ;;  %s8214_s20 = smov 11  }
   0xa   :  { %9422 = sst [smem:[#allocation5_spill]] %s8281_s17  ;;  %s8216_s1 = smov 13  }
   0xb   :  { %9423 = sst [smem:[#allocation6_spill]] %s8286_s21  ;;  %s8217_s7 = smov 14  }
   0xc   :  { %9424 = sst [smem:[#allocation7_spill]] %s8291_s25  ;;  %s8219_s22 = smov 16  }
   0xd   :  { %s8296_s29 = sld [smem:[%s9359_s0 + %s8209_s26]]   ;;  %s8215_s26 = smov 12  }
   0xe   :  { %s8301_s3 = sld [smem:[%s9359_s0 + %s8210_s30]]   ;;  %s8220_s28 = smov 17  }
   0xf   :  { %s8306_s8 = sld [smem:[%s9359_s0 + %s8211_s4]]  }
  0x10   :  { %s8311_s14 = sld [smem:[%s9359_s0 + %s8212_s10]]  }
  0x11   :  { %s8316_s19 = sld [smem:[%s9359_s0 + %s8213_s15]]   ;;  %s8218_s15 = smov 15  }
  0x12   :  { %s8321_s24 = sld [smem:[%s9359_s0 + %s8214_s20]]  }
  0x13   :  { %9425 = sst [smem:[#allocation8_spill]] %s8296_s29 }
  0x14   :  { %9426 = sst [smem:[#allocation9_spill]] %s8301_s3 }
  0x15   :  { %9427 = sst [smem:[#allocation10_spill]] %s8306_s8 }
  0x16   :  { %9428 = sst [smem:[#allocation11_spill]] %s8311_s14 }
  0x17   :  { %9429 = sst [smem:[#allocation12_spill]] %s8316_s19 }
  0x18   :  { %9430 = sst [smem:[#allocation13_spill]] %s8321_s24 }
  0x19   :  { %s8326_s30 = sld [smem:[%s9359_s0 + %s8215_s26]]  }
  0x1a   :  { %s8331_s6 = sld [smem:[%s9359_s0 + %s8216_s1]]  }
  0x1b   :  { %s8336_s12 = sld [smem:[%s9359_s0 + %s8217_s7]]   ;;  %s8221_s7 = smov 18  }
  0x1c   :  { %s8341_s20 = sld [smem:[%s9359_s0 + %s8218_s15]]   ;;  %s8222_s15 = smov 19  }
  0x1d   :  { %s8346_s27 = sld [smem:[%s9359_s0 + %s8219_s22]]   ;;  %s8223_s22 = smov 20  }
  0x1e   :  { %s8351_s4 = sld [smem:[%s9359_s0 + %s8220_s28]]   ;;  %s8224_s28 = smov 21  }
  0x1f   :  { %9431 = sst [smem:[#allocation14_spill]] %s8326_s30 }
  0x20   :  { %9432 = sst [smem:[#allocation15_spill]] %s8331_s6 }
  0x21   :  { %9433 = sst [smem:[#allocation16_spill]] %s8336_s12 }
  0x22   :  { %9434 = sst [smem:[#allocation17_spill]] %s8341_s20 }
  0x23   :  { %9435 = sst [smem:[#allocation18_spill]] %s8346_s27 }
  0x24   :  { %9436 = sst [smem:[#allocation19_spill]] %s8351_s4 }
  0x25   :  { %s8356_s17 = sld [smem:[%s9359_s0 + %s8221_s7]]   ;;  %s8225_s7 = smov 22  }
  0x26   :  { %s8361_s9 = sld [smem:[%s9359_s0 + %s8222_s15]]   ;;  %s8226_s15 = smov 23  }
  0x27   :  { %s8366_s27 = sld [smem:[%s9359_s0 + %s8223_s22]]   ;;  %s8227_s22 = smov 24  }
  0x28   :  { %s8371_s4 = sld [smem:[%s9359_s0 + %s8224_s28]]   ;;  %s8228_s28 = smov 25  }
  0x2b   :  { %9437 = sst [smem:[#allocation20_spill]] %s8356_s17 }
  0x2c   :  { %9438 = sst [smem:[#allocation21_spill]] %s8361_s9 }
  0x2d   :  { %9439 = sst [smem:[#allocation22_spill]] %s8366_s27 }
  0x2e   :  { %9440 = sst [smem:[#allocation23_spill]] %s8371_s4 }
  0x2f   :  { %s8376_s17 = sld [smem:[%s9359_s0 + %s8225_s7]]   ;;  %s8229_s7 = smov 26  }
  0x30   :  { %s8381_s9 = sld [smem:[%s9359_s0 + %s8226_s15]]   ;;  %s8230_s15 = smov 27  }
  0x31   :  { %s8386_s27 = sld [smem:[%s9359_s0 + %s8227_s22]]   ;;  %s8231_s22 = smov 28  }
  0x32   :  { %s8391_s4 = sld [smem:[%s9359_s0 + %s8228_s28]]   ;;  %s8232_s28 = smov 29  }
  0x35   :  { %9441 = sst [smem:[#allocation24_spill]] %s8376_s17 }
  0x36   :  { %9442 = sst [smem:[#allocation25_spill]] %s8381_s9 }
  0x37   :  { %9443 = sst [smem:[#allocation26_spill]] %s8386_s27 }
  0x38   :  { %9444 = sst [smem:[#allocation27_spill]] %s8391_s4 }
  0x39   :  { %s8396_s17 = sld [smem:[%s9359_s0 + %s8229_s7]]   ;;  %s8233_s7 = smov 30  }
  0x3a   :  { %s8401_s9 = sld [smem:[%s9359_s0 + %s8230_s15]]   ;;  %s8234_s15 = smov 31  }
  0x3b   :  { %s8406_s27 = sld [smem:[%s9359_s0 + %s8231_s22]]   ;;  %s8235_s22 = smov 32  }
  0x3c   :  { %s8411_s4 = sld [smem:[%s9359_s0 + %s8232_s28]]   ;;  %s8236_s28 = smov 33  }
  0x3f   :  { %9445 = sst [smem:[#allocation28_spill]] %s8396_s17 }
  0x40   :  { %9446 = sst [smem:[#allocation29_spill]] %s8401_s9 }
  0x41   :  { %9447 = sst [smem:[#allocation30_spill]] %s8406_s27 }
  0x42   :  { %9448 = sst [smem:[#allocation31_spill]] %s8411_s4 }
  0x43   :  { %s8416_s17 = sld [smem:[%s9359_s0 + %s8233_s7]]   ;;  %s8237_s7 = smov 34  }
  0x44   :  { %s8421_s9 = sld [smem:[%s9359_s0 + %s8234_s15]]   ;;  %s8238_s15 = smov 35  }
  0x45   :  { %s8426_s27 = sld [smem:[%s9359_s0 + %s8235_s22]]   ;;  %s8239_s22 = smov 36  }
  0x46   :  { %s8431_s4 = sld [smem:[%s9359_s0 + %s8236_s28]]   ;;  %s8240_s28 = smov 37  }
  0x49   :  { %9449 = sst [smem:[#allocation32_spill]] %s8416_s17 }
  0x4a   :  { %9450 = sst [smem:[#allocation33_spill]] %s8421_s9 }
  0x4b   :  { %9451 = sst [smem:[#allocation34_spill]] %s8426_s27 }
  0x4c   :  { %9452 = sst [smem:[#allocation35_spill]] %s8431_s4 }
  0x4d   :  { %s8436_s17 = sld [smem:[%s9359_s0 + %s8237_s7]]   ;;  %s8241_s7 = smov 38  }
  0x4e   :  { %s8441_s9 = sld [smem:[%s9359_s0 + %s8238_s15]]   ;;  %s8242_s15 = smov 39  }
  0x4f   :  { %s8446_s27 = sld [smem:[%s9359_s0 + %s8239_s22]]   ;;  %s8243_s22 = smov 40  }
  0x50   :  { %s8451_s4 = sld [smem:[%s9359_s0 + %s8240_s28]]   ;;  %s8468_s28 = smov 0  }
  0x53   :  { %9453 = sst [smem:[#allocation36_spill]] %s8436_s17 }
  0x54   :  { %9454 = sst [smem:[#allocation37_spill]] %s8441_s9 }
  0x55   :  { %9455 = sst [smem:[#allocation38_spill]] %s8446_s27 }
  0x56   :  { %s8456_s17 = sld [smem:[%s9359_s0 + %s8241_s7]]  }
  0x57   :  { %s8461_s9 = sld [smem:[%s9359_s0 + %s8242_s15]]  }
  0x58   :  { %s8466_s27 = sld [smem:[%s9359_s0 + %s8243_s22]]  }
  0x5c   :  { %9456 = sst [smem:[#allocation39_spill]] %s8456_s17 }
  0x5d   :  { %9457 = sst [smem:[#allocation40_spill]] %s8461_s9 }
  0x5e   :  { %9458 = sst [smem:[#allocation41_spill]] %s8466_s27 }
  0x5f LB: > { %s9459_s30 = sld [smem:[#allocation14_spill]]  ;;  %s6905_s1 = sadd.s32 4294967295, %s8202_s28   ;;  %s8202_s28 = sphi %s8468_s28, %s91_s28  }
  0x60   : > { %s9460_s29 = sld [smem:[#allocation8_spill]]  ;;  %p6909_p0 = scmp.ge.s32.totalorder %s8202_s28, 1 }
  0x61   : > { %s9461_s25 = sld [smem:[#allocation7_spill]]  ;;  %p1111_p1 = scmp.lt.s32.totalorder %s8202_s28, 3 }
  0x62   : > { %s9462_s24 = sld [smem:[#allocation13_spill]] }
  0x63   : > { %s9463_s21 = sld [smem:[#allocation6_spill]]  ;;  %p1112_p2 = pnand %p6909_p0, %p1111_p1 }
  0x64   : > { %s9464_s20 = sld [smem:[#allocation17_spill]] }
  0x65   : > { %s9465_s19 = sld [smem:[#allocation12_spill]] }
  0x66   : > { %s9466_s14 = sld [smem:[#allocation11_spill]] }
  0x67   : > { %s9467_s12 = sld [smem:[#allocation16_spill]]  ;;  %1115 = sbr.rel (%p1112_p2) target bundleno = 19750 (0x4d26), region = 180 }
  0x68   : > { %s9468_s8 = sld [smem:[#allocation10_spill]] }
  0x69   : > { %s9469_s6 = sld [smem:[#allocation15_spill]] }
  0x6a   : > { %s9470_s3 = sld [smem:[#allocation9_spill]] }
  0x6b   : > { %9471 = sst [smem:[#allocation42_spill]] %s8202_s28 }
  0x6c   : > { %s9472_s5 = sld [smem:[#allocation2_spill]]  ;;  %v8031_v0 = vld [vmem:[%s9463_s21] sm:$0xff]   ;;  %v8244_v1 = vmov 0.0   ;;  %p1211_p3 = scmp.lt.s32.totalorder %s6905_s1, 1  ;;  %vm8245_vm0 = vmmov 0   ;;  %vm1241_vm1 = vcmask 130048  }
  0x6d   : > { %7373 = vmatprep.subr.bf16.mxu0 %v8244_v1  ;;  %7379 = vmatprep.subr.bf16.mxu1 %v8244_v1  ;;  %s9473_s13 = sld [smem:[#allocation4_spill]]  ;;  %v8032_v4 = vld [vmem:[%s9460_s29 + $0x8] sm:$0xff]   ;;  %v8033_v5 = vld [vmem:[%s9460_s29] sm:$0xff]   ;;  %vm1311_vm2 = vcmask 261120   ;;  %s9399_s7 = smov 120   ;;  %vm1363_vm3 = vcmask 64512  }
  0x6e   : > { %7374 = vmatpush3.bf16.msra.mxu0 %v8031_v0  ;;  %7375 = vmatprep.mubr.msk.bf16.mxu0 %vm8245_vm0, %v8244_v1  ;;  %s9517_s1 = smov (!%p1211_p3, %s6905_s1), 1  ;;  %v6913_v6 = vld [vmem:[%s9461_s25] ss:$0 sm:$0xff]  ;;  %s9395_s10 = smov 96   ;;  %vm1428_vm4 = vcmask 1043456   ;;  %v1356_v0 = vld [vmem:[%s9468_s8 + $0x8] sm:$0xff] }
  0x6f   : > { %7383 = vmatprep.mubr.msk.bf16.mxu1 %vm8245_vm0, %v8244_v1  ;;  %7387 = vmatprep.subr.bf16.mxu0 %v8244_v1  ;;  %s8484_s0 = sshll.u32 %s9517_s1, 3  ;;  %s9397_s11 = smov 88   ;;  %v1355_v61 = vld [vmem:[%s9468_s8] sm:$0xff]  ;;  %vm2146_vm5 = vcmask 523264  }
  0x70   : > { %9474 = sst [smem:[#allocation43_spill]] %s8484_s0  ;;  %7380 = vmatpush3.bf16.msra.mxu1 %v8032_v4  ;;  %v6916_v15 = vld [vmem:[%s9470_s3] ss:$0 sm:$0xff]  ;;  %s9401_s15 = smov 64   ;;  %v1473_v62 = vpack.c.bf16 %v1355_v61, %v1355_v61 }
  0x71   : > { %7381 = vmatprep.subr.bf16.mxu1 %v8244_v1  ;;  %s9393_s16 = smov 56   ;;  %s9391_s18 = smov 112  }
  0x72   : > { %s1214_s2 = scalar_lea.vmem %s9472_s5, %s8484_s0  ;;  %s9385_s22 = smov 80   ;;  %v1637_v63 = vsel %vm1428_vm4, %v1473_v62, 0 }
  0x73   : > { %v1224_v2 = vld [vmem:[%s1214_s2] sm:$0xff]  ;;  %s9383_s23 = smov 72   ;;  %s9389_s26 = smov 104  }
  0x74   : > { %v1227_v3 = vpack.c.bf16 %v1224_v2, %v1224_v2  ;;  %7382 = vmatpush3.bf16.msra.mxu1 %v8033_v5  ;;  %v1285_v8 = vld [vmem:[%s9473_s13] sm:$0xff]  ;;  %v1586_v2 = vpack.c.bf16 %v1356_v0, %v1356_v0  ;;  %s9387_s1 = smov 48   ;;  %s9381_s2 = smov 40  }
  0x75   : > { %7393 = vmatprep.subr.bf16.mxu1 %v8244_v1  ;;  %s9489_s5 = sld [smem:[#allocation23_spill]] }
  0x76   : > { %7376 = vmatmul.mubr.msk.bf16.vlgmr.msra.gmra.mxu0 %vm1241_vm1, %v1227_v3  ;;  %v1591_v3 = vsel %vm1428_vm4, %v1586_v2, 0  ;;  %s9493_s13 = sld [smem:[#allocation25_spill]] }
  0x77   : > { %7389 = vmatprep.mubr.msk.bf16.mxu0 %vm8245_vm0, %v8244_v1  ;;  %s9504_s28 = sld [smem:[#allocation33_spill]] }
  0x78   : > { %s9507_s9 = sld [smem:[#allocation37_spill]] }
  0x7d   : > { %s9505_s27 = smov %s9504_s28 }
 0x136   : > { %v1279_v7 = vpop.f32.mrf.mxu0 }
 0x137   : > { %v1280_v9 = vadd.f32 %v6913_v6, %v1279_v7 }
 0x138   : > { %v7377_v10 = vpop.f32.mrf.mxu0 }
 0x139   : > { %v8497_v11 = vadd.f32 %v1285_v8, %v1280_v9 }
 0x13a   : > { %v1282_v12 = vpop.f32.mrf.mxu0 }
 0x13b   : > { %v1291_v13 = vpack.c.bf16 %v8497_v11, %v8497_v11 }
 0x13c   : > { %v7378_v14 = vpop.f32.mrf.mxu0 }
 0x13d   : > { %7384 = vmatmul.mubr.msk.bf16.vlgmr.msra.gmra.mxu1 %vm1311_vm2, %v1291_v13 }
 0x13e   : > { %7395 = vmatprep.mubr.msk.bf16.mxu1 %vm8245_vm0, %v8244_v1 }
 0x1fd   : > { %v1349_v16 = vpop.f32.mrf.mxu1 }
 0x1fe   : > { %v1350_v17 = vadd.f32 %v6916_v15, %v1349_v16 }
 0x1ff   : > { %v7385_v18 = vpop.f32.mrf.mxu1 }
 0x200   : > { %v8505_v19 = vpack.c.bf16 %v1350_v17, %v1350_v17 }
 0x201   : > { %v1352_v20 = vpop.f32.mrf.mxu1 }
 0x202   : > { %1474 = vrot.lane.b32.xlu1 %v8505_v19, %s9399_s7  ;;  %1361 = vrot.lane.b32.xlu0 %v8505_v19, %s9395_s10 }
 0x203   : > { %v7386_v21 = vpop.f32.mrf.mxu1 }
 0x206   : > { %1476 = vrot.lane.b32.xlu0 %v8505_v19, %s9397_s11 }
 0x274   : > { %v1362_v22 = vpop.permute.xlu0 %1361  ;;  %v1475_v26 = vpop.permute.xlu1 %1474 }
 0x275   : > { %v1368_v23 = vsel %vm1363_vm3, %v1362_v22, 0 }
 0x276   : > { %7388 = vmatpush3.bf16.xpose.msra.mxu0 %v1368_v23 }
 0x277   : > { %7399 = vmatprep.subr.bf16.mxu0 %v8244_v1 }
 0x278   : > { %v1477_v24 = vpop.permute.xlu0 %1476 }
 0x279   : > { %v1482_v25 = vsel %vm1363_vm3, %v1477_v24, 0 }
 0x27d   : > { %7390 = vmatmul.mubr.msk.bf16.vlgmr.msra.gmra.mxu0 %vm1363_vm3, %v8505_v19 }
 0x27e   : > { %7400 = vmatpush3.bf16.xpose.msra.mxu0 %v1482_v25  ;;  %7401 = vmatprep.mubr.msk.bf16.mxu0 %vm8245_vm0, %v8244_v1 }
 0x27f   : > { %7411 = vmatprep.subr.bf16.mxu0 %v8244_v1 }
 0x285   : > { %7402 = vmatmul.mubr.msk.bf16.vlgmr.msra.gmra.mxu0 %vm1363_vm3, %v1475_v26 }
 0x286   : > { %7413 = vmatprep.mubr.msk.bf16.mxu0 %vm8245_vm0, %v8244_v1  ;;  %7412 = vmatpush3.bf16.msra.mxu0 %v1591_v3 }
 0x287   : > { %7423 = vmatprep.subr.bf16.mxu0 %v8244_v1 }
 0x33d   : > { %v1404_v27 = vpop.f32.mrf.mxu0 }
 0x33e   : > { %v1410_v28 = vmul.f32 0.35355338, %v1404_v27 }
 0x33f   : > { %v7391_v29 = vpop.f32.mrf.mxu0 }
 0x340   : > { %v1411_v30 = vsel %vm1363_vm3, %v1410_v28, -inf }
 0x341   : > { %1412 = vmax.xlane.f32.xlu1 %v1411_v30  ;;  %v1407_v31 = vpop.f32.mrf.mxu0 }
 0x343   : > { %v7392_v32 = vpop.f32.mrf.mxu0 }
 0x345   : > { %v1518_v33 = vpop.f32.mrf.mxu0 }
 0x346   : > { %v1524_v34 = vmul.f32 0.35355338, %v1518_v33 }
 0x347   : > { %v7403_v35 = vpop.f32.mrf.mxu0 }
 0x348   : > { %v1525_v36 = vsel %vm1363_vm3, %v1524_v34, -inf }
 0x349   : > { %1526 = vmax.xlane.f32.xlu0 %v1525_v36  ;;  %v1521_v37 = vpop.f32.mrf.mxu0 }
 0x34b   : > { %v7404_v38 = vpop.f32.mrf.mxu0 }
 0x3ca   : > { %v1413_v39 = vpop.xlane.xlu1 %1412 }
 0x3cb   : > { %v1414_v40 = vsub.f32 %v1410_v28, %v1413_v39 }
 0x3cd   : > { %v1415_v41 = vmul.f32 1.442695, %v1414_v40 }
 0x3cf   : > { %8074 = vpow2.f32 %v1415_v41 }
 0x3d2   : > { %v1527_v42 = vpop.xlane.xlu0 %1526 }
 0x3d3   : > { %v1528_v43 = vsub.f32 %v1524_v34, %v1527_v42 }
 0x3d5   : > { %v1529_v44 = vmul.f32 1.442695, %v1528_v43 }
 0x3d7   : > { %8076 = vpow2.f32 %v1529_v44 }
 0x3dc   : > { %v8075_v45 = vpop.eup %8074 }
 0x3dd   : > { %v1417_v46 = vsel %vm1363_vm3, %v8075_v45, 0.0 }
 0x3de   : > { %1418 = vadd.xlane.f32.xlu0 %v1417_v46 }
 0x3e4   : > { %v8077_v47 = vpop.eup %8076 }
 0x3e5   : > { %v1531_v48 = vsel %vm1363_vm3, %v8077_v47, 0.0 }
 0x3e6   : > { %1532 = vadd.xlane.f32.xlu1 %v1531_v48  ;;  %v1357_v48 = vld [vmem:[%s9468_s8 + $0x10] sm:$0xff] }
 0x3f4   : > { %1423 = vrot.lane.b32.xlu0 %v8505_v19, %s9401_s15 }
 0x3f7   : > { %1537 = vrot.lane.b32.xlu1 %v8505_v19, %s9393_s16 }
 0x3f8   : > { %1679 = vrot.lane.b32.xlu0 %v8505_v19, %s9391_s18 }
 0x3fb   : > { %1681 = vrot.lane.b32.xlu1 %v8505_v19, %s9385_s22 }
 0x467   : > { %v1419_v49 = vpop.xlane.xlu0 %1418 }
 0x468   : > { %8078 = vrcp.f32 %v1419_v49  ;;  %v1791_v49 = vpack.c.bf16 %v1357_v48, %v1357_v48 }
 0x46b   : > { %v1424_v50 = vpop.permute.xlu0 %1423 }
 0x46c   : > { %v1430_v51 = vsel %vm1428_vm4, %v1424_v50, 0  ;;  %v1796_v50 = vsel %vm1428_vm4, %v1791_v49, 0 }
 0x46d   : > { %7394 = vmatpush3.bf16.msra.mxu1 %v1430_v51 }
 0x46e   : > { %7405 = vmatprep.subr.bf16.mxu1 %v8244_v1 }
 0x46f   : > { %v1533_v52 = vpop.xlane.xlu1 %1532  ;;  %v1680_v17 = vpop.permute.xlu0 %1679 }
 0x470   : > { %8080 = vrcp.f32 %v1533_v52 }
 0x473   : > { %v1538_v55 = vpop.permute.xlu1 %1537 }
 0x474   : > { %v1543_v57 = vsel %vm1428_vm4, %v1538_v55, 0 }
 0x475   : > { %v8079_v53 = vpop.eup %8078 }
 0x476   : > { %v1421_v54 = vmul.f32 %v8079_v53, %v8075_v45 }
 0x477   : > { %v1682_v9 = vpop.permute.xlu1 %1681 }
 0x478   : > { %v1422_v56 = vpack.c.bf16 %v1421_v54, %v1421_v54  ;;  %v1687_v14 = vsel %vm1363_vm3, %v1682_v9, 0  ;;  %v1358_v9 = vld [vmem:[%s9468_s8 + $0x18] sm:$0xff] }
 0x47a   : > { %7396 = vmatmul.mubr.msk.bf16.vlgmr.msra.gmra.mxu1 %vm1363_vm3, %v1422_v56 }
 0x47b   : > { %7406 = vmatpush3.bf16.msra.mxu1 %v1543_v57  ;;  %7407 = vmatprep.mubr.msk.bf16.mxu1 %vm8245_vm0, %v8244_v1 }
 0x47c   : > { %7417 = vmatprep.subr.bf16.mxu1 %v8244_v1 }
 0x47d   : > { %v8081_v58 = vpop.eup %8080 }
 0x47e   : > { %v1535_v59 = vmul.f32 %v8081_v58, %v8077_v47 }
 0x480   : > { %v1536_v60 = vpack.c.bf16 %v1535_v59, %v1535_v59 }
 0x482   : > { %7408 = vmatmul.mubr.msk.bf16.vlgmr.msra.gmra.mxu1 %vm1363_vm3, %v1536_v60 }
 0x483   : > { %7419 = vmatprep.mubr.msk.bf16.mxu1 %vm8245_vm0, %v8244_v1  ;;  %7418 = vmatpush3.bf16.msra.mxu1 %v1637_v63 }
 0x484   : > { %7429 = vmatprep.subr.bf16.mxu1 %v8244_v1 }
 0x53a   : > { %v1466_v4 = vpop.f32.mrf.mxu1 }
 0x53b   : > { %v1472_v5 = vpack.c.bf16 %v1466_v4, %v1466_v4 }
 0x53c   : > { %v7397_v6 = vpop.f32.mrf.mxu1 }
 0x53d   : > { %7420 = vmatmul.mubr.msk.bf16.vlgmr.msra.gmra.mxu1 %vm1363_vm3, %v1472_v5 }
 0x53e   : > { %v1469_v7 = vpop.f32.mrf.mxu1  ;;  %7431 = vmatprep.mubr.msk.bf16.mxu1 %vm8245_vm0, %v8244_v1 }
 0x540   : > { %v7398_v8 = vpop.f32.mrf.mxu1 }
 0x542   : > { %v1579_v10 = vpop.f32.mrf.mxu1 }
 0x543   : > { %v1585_v12 = vpack.c.bf16 %v1579_v10, %v1579_v10 }
 0x544   : > { %v7409_v13 = vpop.f32.mrf.mxu1 }
 0x545   : > { %7414 = vmatmul.mubr.msk.bf16.vlgmr.msra.gmra.mxu0 %vm1363_vm3, %v1585_v12 }
 0x546   : > { %7424 = vmatpush3.bf16.xpose.msra.mxu0 %v1687_v14  ;;  %v1582_v15 = vpop.f32.mrf.mxu1  ;;  %7425 = vmatprep.mubr.msk.bf16.mxu0 %vm8245_vm0, %v8244_v1 }
 0x547   : > { %7435 = vmatprep.subr.bf16.mxu0 %v8244_v1 }
 0x548   : > { %v7410_v16 = vpop.f32.mrf.mxu1 }
 0x54d   : > { %7426 = vmatmul.mubr.msk.bf16.vlgmr.msra.gmra.mxu0 %vm1363_vm3, %v1680_v17 }
 0x54e   : > { %7437 = vmatprep.mubr.msk.bf16.mxu0 %vm8245_vm0, %v8244_v1  ;;  %7436 = vmatpush3.bf16.msra.mxu0 %v1796_v50 }
 0x54f   : > { %7447 = vmatprep.subr.bf16.mxu0 %v8244_v1 }
 0x5fd   : > { %v1673_v18 = vpop.f32.mrf.mxu1 }
 0x5ff   : > { %v7421_v20 = vpop.f32.mrf.mxu1 }
 0x601   : > { %v1676_v21 = vpop.f32.mrf.mxu1 }
 0x603   : > { %v7422_v22 = vpop.f32.mrf.mxu1 }
 0x605   : > { %v1627_v23 = vpop.f32.mrf.mxu0 }
 0x606   : > { %v8563_v24 = vadd.f32 %v1673_v18, %v1627_v23 }
 0x607   : > { %v7415_v25 = vpop.f32.mrf.mxu0 }
 0x608   : > { %v6932_v25 = vld [vmem:[%s9466_s14] ss:$0 sm:$0xff] }
 0x609   : > { %v1630_v26 = vpop.f32.mrf.mxu0 }
 0x60b   : > { %v7416_v27 = vpop.f32.mrf.mxu0 }
 0x60d   : > { %v1723_v28 = vpop.f32.mrf.mxu0 }
 0x60e   : > { %v1729_v29 = vmul.f32 0.35355338, %v1723_v28 }
 0x60f   : > { %v7427_v30 = vpop.f32.mrf.mxu0 }
 0x610   : > { %v1730_v31 = vsel %vm1363_vm3, %v1729_v29, -inf }
 0x611   : > { %1731 = vmax.xlane.f32.xlu1 %v1730_v31  ;;  %v1726_v32 = vpop.f32.mrf.mxu0 }
 0x613   : > { %v7428_v33 = vpop.f32.mrf.mxu0 }
 0x622   : > { %1841 = vrot.lane.b32.xlu1 %v8505_v19, %s9383_s23  ;;  %s9476_s23 = sld [smem:[#allocation19_spill]] }
 0x626   : > { %1839 = vrot.lane.b32.xlu1 %v8505_v19, %s9389_s26 }
 0x69a   : > { %v1732_v34 = vpop.xlane.xlu1 %1731 }
 0x69b   : > { %v1733_v35 = vsub.f32 %v1729_v29, %v1732_v34 }
 0x69d   : > { %v1734_v36 = vmul.f32 1.442695, %v1733_v35 }
 0x69e   : > { %v1842_v44 = vpop.permute.xlu1 %1841 }
 0x69f   : > { %8082 = vpow2.f32 %v1734_v36  ;;  %v1847_v46 = vsel %vm1363_vm3, %v1842_v44, 0 }
 0x6a2   : > { %v1840_v47 = vpop.permute.xlu1 %1839 }
 0x6ac   : > { %v8083_v37 = vpop.eup %8082 }
 0x6ad   : > { %v1736_v38 = vsel %vm1363_vm3, %v8083_v37, 0.0 }
 0x6ae   : > { %1737 = vadd.xlane.f32.xlu0 %v1736_v38  ;;  %v8034_v38 = vld [vmem:[%s9459_s30 + $0x8] sm:$0xff]  }
 0x6c4   : > { %1742 = vrot.lane.b32.xlu0 %v8505_v19, %s9387_s1 }
 0x737   : > { %v1738_v39 = vpop.xlane.xlu0 %1737 }
 0x738   : > { %8084 = vrcp.f32 %v1738_v39  ;;  %v8035_v39 = vld [vmem:[%s9459_s30] sm:$0xff]  }
 0x73b   : > { %v1743_v40 = vpop.permute.xlu0 %1742 }
 0x73c   : > { %v1748_v41 = vsel %vm1428_vm4, %v1743_v40, 0  ;;  %v8037_v40 = vld [vmem:[%s9467_s12 + $0x10] sm:$0xff]  }
 0x73d   : > { %7430 = vmatpush3.bf16.msra.mxu1 %v1748_v41 }
 0x73e   : > { %7441 = vmatprep.subr.bf16.mxu1 %v8244_v1 }
 0x745   : > { %v8085_v42 = vpop.eup %8084 }
 0x746   : > { %v1740_v43 = vmul.f32 %v8085_v42, %v8083_v37 }
 0x748   : > { %v1741_v45 = vpack.c.bf16 %v1740_v43, %v1740_v43 }
 0x74a   : > { %7432 = vmatmul.mubr.msk.bf16.vlgmr.msra.gmra.mxu1 %vm1363_vm3, %v1741_v45  ;;  %v6933_v45 = vld [vmem:[%s9465_s19] ss:$0 sm:$0xff] }
 0x74b   : > { %7442 = vmatpush3.bf16.xpose.msra.mxu1 %v1847_v46  ;;  %7443 = vmatprep.mubr.msk.bf16.mxu1 %vm8245_vm0, %v8244_v1 }
 0x74c   : > { %7453 = vmatprep.subr.bf16.mxu1 %v8244_v1 }
 0x752   : > { %7444 = vmatmul.mubr.msk.bf16.vlgmr.msra.gmra.mxu1 %vm1363_vm3, %v1840_v47  ;;  %v6934_v47 = vld [vmem:[%s9462_s24] ss:$0 sm:$0xff] }
 0x753   : > { %7455 = vmatprep.mubr.msk.bf16.mxu1 %vm8245_vm0, %v8244_v1 }
 0x80a   : > { %v1784_v51 = vpop.f32.mrf.mxu1 }
 0x80b   : > { %v1790_v52 = vpack.c.bf16 %v1784_v51, %v1784_v51  ;;  %v8038_v51 = vld [vmem:[%s9467_s12 + $0x8] sm:$0xff]  }
 0x80c   : > { %v7433_v53 = vpop.f32.mrf.mxu1 }
 0x80d   : > { %7438 = vmatmul.mubr.msk.bf16.vlgmr.msra.gmra.mxu0 %vm1363_vm3, %v1790_v52  ;;  %v8039_v52 = vld [vmem:[%s9467_s12] sm:$0xff]  }
 0x80e   : > { %v1787_v54 = vpop.f32.mrf.mxu1  ;;  %7449 = vmatprep.mubr.msk.bf16.mxu0 %vm8245_vm0, %v8244_v1  ;;  %v6935_v53 = vld [vmem:[%s9469_s6] ss:$0 sm:$0xff] }
 0x810   : > { %v7434_v55 = vpop.f32.mrf.mxu1 }
 0x812   : > { %v1883_v56 = vpop.f32.mrf.mxu1 }
 0x813   : > { %v1889_v57 = vmul.f32 0.35355338, %v1883_v56 }
 0x814   : > { %v7445_v58 = vpop.f32.mrf.mxu1 }
 0x815   : > { %v1890_v59 = vsel %vm1363_vm3, %v1889_v57, -inf }
 0x816   : > { %1891 = vmax.xlane.f32.xlu0 %v1890_v59  ;;  %v1886_v60 = vpop.f32.mrf.mxu1 }
 0x818   : > { %v7446_v61 = vpop.f32.mrf.mxu1 }
 0x819   : > { %v6939_v61 = vld [vmem:[%s9464_s20] ss:$0 sm:$0xff] }
 0x82c   : > { %1902 = vrot.lane.b32.xlu0 %v8505_v19, %s9381_s2  ;;  %v1951_v19 = vpack.c.bf16 %v1358_v9, %v1358_v9  ;;  %s9475_s2 = sld [smem:[#allocation18_spill]] }
 0x82e   : > { %v1956_v12 = vsel %vm1428_vm4, %v1951_v19, 0 }
 0x82f   : > { %7454 = vmatpush3.bf16.msra.mxu1 %v1956_v12  ;;  %v8041_v12 = vld [vmem:[%s9460_s29 + $0x10] sm:$0xff]  }
 0x830   : > { %7467 = vmatprep.subr.bf16.mxu1 %v8244_v1 }
 0x89f   : > { %v1892_v62 = vpop.xlane.xlu0 %1891 }
 0x8a0   : > { %v1893_v63 = vsub.f32 %v1889_v57, %v1892_v62 }
 0x8a2   : > { %v1894_v0 = vmul.f32 1.442695, %v1893_v63 }
 0x8a3   : > { %v1903_v2 = vpop.permute.xlu0 %1902 }
 0x8a4   : > { %8086 = vpow2.f32 %v1894_v0  ;;  %v1908_v3 = vsel %vm1428_vm4, %v1903_v2, 0 }
 0x8a5   : > { %7448 = vmatpush3.bf16.msra.mxu0 %v1908_v3 }
 0x8a6   : > { %7459 = vmatprep.subr.bf16.mxu0 %v8244_v1 }
 0x8b1   : > { %v8087_v4 = vpop.eup %8086 }
 0x8b2   : > { %v1896_v5 = vsel %vm1363_vm3, %v8087_v4, 0.0 }
 0x8b3   : > { %1897 = vadd.xlane.f32.xlu1 %v1896_v5 }
 0x8cd   : > { %v1832_v6 = vpop.f32.mrf.mxu0 }
 0x8ce   : > { %v1838_v7 = vadd.f32 %v1832_v6, %v8563_v24 }
 0x8cf   : > { %v7439_v8 = vpop.f32.mrf.mxu0 }
 0x8d1   : > { %v1835_v10 = vpop.f32.mrf.mxu0 }
 0x8d2   : > { %v8040_v10 = vld [vmem:[%s9460_s29 + $0x18] sm:$0xff]   ;;  %s9502_s29 = sld [smem:[#allocation36_spill]] }
 0x8d3   : > { %v7440_v13 = vpop.f32.mrf.mxu0 }
 0x93c   : > { %v1898_v14 = vpop.xlane.xlu1 %1897 }
 0x93d   : > { %8088 = vrcp.f32 %v1898_v14 }
 0x94a   : > { %v8089_v15 = vpop.eup %8088 }
 0x94b   : > { %v1900_v16 = vmul.f32 %v8089_v15, %v8087_v4 }
 0x94d   : > { %v1901_v17 = vpack.c.bf16 %v1900_v16, %v1900_v16 }
 0x94f   : > { %7450 = vmatmul.mubr.msk.bf16.vlgmr.msra.gmra.mxu0 %vm1363_vm3, %v1901_v17  ;;  %v6945_v17 = vld [vmem:[%s9475_s2] ss:$0 sm:$0xff] }
 0x950   : > { %7463 = vmatprep.mubr.msk.bf16.mxu0 %vm8245_vm0, %v8244_v1  ;;  %7460 = vmatpush3.bf16.msra.mxu0 %v8034_v38 }
 0x951   : > { %7461 = vmatprep.subr.bf16.mxu0 %v8244_v1 }
 0x954   : > { %7462 = vmatpush3.bf16.msra.mxu0 %v8035_v39 }
 0x955   : > { %7479 = vmatprep.subr.bf16.mxu0 %v8244_v1 }
 0xa0f   : > { %v1944_v18 = vpop.f32.mrf.mxu0 }
 0xa10   : > { %v1950_v20 = vpack.c.bf16 %v1944_v18, %v1944_v18 }
 0xa11   : > { %v7451_v21 = vpop.f32.mrf.mxu0 }
 0xa12   : > { %7456 = vmatmul.mubr.msk.bf16.vlgmr.msra.gmra.mxu1 %vm1363_vm3, %v1950_v20  ;;  %v6946_v20 = vld [vmem:[%s9476_s23] ss:$0 sm:$0xff] }
 0xa13   : > { %v1947_v22 = vpop.f32.mrf.mxu0  ;;  %7475 = vmatprep.mubr.msk.bf16.mxu1 %vm8245_vm0, %v8244_v1 }
 0xa15   : > { %v7452_v23 = vpop.f32.mrf.mxu0 }
 0xad2   : > { %v1992_v24 = vpop.f32.mrf.mxu1 }
 0xad3   : > { %v1998_v26 = vadd.f32 %v1992_v24, %v1838_v7  ;;  %v6952_v24 = vld [vmem:[%s9470_s3 + $0x1] ss:$0 sm:$0xff]  ;;  %s9488_s3 = smov 48  }
 0xad4   : > { %v7457_v27 = vpop.f32.mrf.mxu1 }
 0xad5   : > { %v2006_v28 = vadd.f32 %v6932_v25, %v1998_v26 }
 0xad6   : > { %v1995_v29 = vpop.f32.mrf.mxu1 }
 0xad7   : > { %v2007_v30 = vadd.f32 %v2006_v28, %v8497_v11  ;;  %v8036_v11 = vld [vmem:[%s9467_s12 + $0x18] sm:$0xff]  }
 0xad8   : > { %v7458_v31 = vpop.f32.mrf.mxu1  ;;  %7468 = vmatpush3.bf16.msra.mxu1 %v8036_v11 }
 0xad9   : > { %v2010_v32 = vsel %vm1311_vm2, %v2007_v30, 0.0  ;;  %7469 = vmatprep.subr.bf16.mxu1 %v8244_v1 }
 0xada   : > { %2011 = vadd.xlane.f32.xlu1 %v2010_v32 }
 0xadc   : > { %7470 = vmatpush3.bf16.msra.mxu1 %v8037_v40 }
 0xadd   : > { %7471 = vmatprep.subr.bf16.mxu1 %v8244_v1 }
 0xae0   : > { %7472 = vmatpush3.bf16.msra.mxu1 %v8038_v51 }
 0xae1   : > { %7473 = vmatprep.subr.bf16.mxu1 %v8244_v1 }
 0xae4   : > { %7474 = vmatpush3.bf16.msra.mxu1 %v8039_v52 }
 0xae5   : > { %7493 = vmatprep.subr.bf16.mxu1 %v8244_v1 }
 0xb63   : > { %v2012_v33 = vpop.xlane.xlu1 %2011 }
 0xb64   : > { %v2014_v34 = vmul.f32 0.03125, %v2012_v33 }
 0xb66   : > { %v2015_v35 = vsub.f32 %v2007_v30, %v2014_v34 }
 0xb68   : > { %v2016_v36 = vmul.f32 %v2015_v35, %v2015_v35 }
 0xb6a   : > { %v2017_v37 = vsel %vm1311_vm2, %v2016_v36, 0.0 }
 0xb6b   : > { %2018 = vadd.xlane.f32.xlu1 %v2017_v37 }
 0xbf4   : > { %v2019_v41 = vpop.xlane.xlu1 %2018 }
 0xbf5   : > { %v2020_v42 = vmul.f32 0.03125, %v2019_v41 }
 0xbf7   : > { %v2021_v43 = vadd.f32 1e-05, %v2020_v42 }
 0xbf9   : > { %8090 = vrsqrt.f32 %v2021_v43 }
 0xc06   : > { %v8091_v44 = vpop.eup %8090 }
 0xc07   : > { %v2023_v46 = vmul.f32 %v8091_v44, %v2015_v35 }
 0xc09   : > { %v2030_v48 = vmul.f32 %v6933_v45, %v2023_v46 }
 0xc0b   : > { %v2037_v49 = vadd.f32 %v6934_v47, %v2030_v48 }
 0xc0d   : > { %v2042_v50 = vpack.c.bf16 %v2037_v49, %v2037_v49 }
 0xc0f   : > { %7464 = vmatmul.mubr.msk.bf16.vlgmr.msra.gmra.mxu0 %vm1311_vm2, %v2042_v50 }
 0xc10   : > { %7483 = vmatprep.mubr.msk.bf16.mxu0 %vm8245_vm0, %v8244_v1  ;;  %7480 = vmatpush3.bf16.msra.mxu0 %v8040_v10 }
 0xc11   : > { %7481 = vmatprep.subr.bf16.mxu0 %v8244_v1 }
 0xc14   : > { %7482 = vmatpush3.bf16.msra.mxu0 %v8041_v12 }
 0xc15   : > { %7487 = vmatprep.subr.bf16.mxu0 %v8244_v1 }
 0xccf   : > { %v2099_v54 = vpop.f32.mrf.mxu0 }
 0xcd0   : > { %v2100_v55 = vadd.f32 %v6935_v53, %v2099_v54 }
 0xcd1   : > { %v7465_v56 = vpop.f32.mrf.mxu0 }
 0xcd2   : > { %v2105_v57 = vmax.f32 %v2100_v55, 0.0 }
 0xcd3   : > { %v2102_v58 = vpop.f32.mrf.mxu0 }
 0xcd4   : > { %v2114_v59 = vpack.c.bf16 %v2105_v57, %v2105_v57 }
 0xcd5   : > { %v7466_v60 = vpop.f32.mrf.mxu0 }
 0xcd6   : > { %7476 = vmatmul.mubr.msk.bf16.vlgmr.msra.gmra.mxu1 %vm2146_vm5, %v2114_v59 }
 0xcd7   : > { %7495 = vmatprep.mubr.msk.bf16.mxu1 %vm8245_vm0, %v8244_v1 }
 0xd96   : > { %v2184_v62 = vpop.f32.mrf.mxu1 }
 0xd97   : > { %v2185_v63 = vadd.f32 %v6939_v61, %v2184_v62 }
 0xd98   : > { %v7477_v0 = vpop.f32.mrf.mxu1 }
 0xd99   : > { %v2190_v2 = vadd.f32 %v2185_v63, %v2037_v49 }
 0xd9a   : > { %v2187_v3 = vpop.f32.mrf.mxu1 }
 0xd9b   : > { %v2193_v4 = vsel %vm1311_vm2, %v2190_v2, 0.0 }
 0xd9c   : > { %2194 = vadd.xlane.f32.xlu1 %v2193_v4  ;;  %v7478_v5 = vpop.f32.mrf.mxu1 }
 0xe25   : > { %v2195_v6 = vpop.xlane.xlu1 %2194 }
 0xe26   : > { %v2196_v7 = vmul.f32 0.03125, %v2195_v6  ;;  %v6956_v6 = vld [vmem:[%s9468_s8 + $0x20] sm:$0xff] }
 0xe28   : > { %v2197_v8 = vsub.f32 %v2190_v2, %v2196_v7  ;;  %v2406_v7 = vpack.c.bf16 %v6956_v6, %v6956_v6 }
 0xe2a   : > { %v2198_v9 = vmul.f32 %v2197_v8, %v2197_v8 }
 0xe2c   : > { %v2199_v19 = vsel %vm1311_vm2, %v2198_v9, 0.0  ;;  %v6957_v9 = vld [vmem:[%s9468_s8 + $0x28] sm:$0xff] }
 0xe2d   : > { %2200 = vadd.xlane.f32.xlu1 %v2199_v19  ;;  %v2519_v19 = vpack.c.bf16 %v6957_v9, %v6957_v9 }
 0xe2f   : > { %v2524_v10 = vsel %vm1428_vm4, %v2519_v19, 0 }
 0xeb6   : > { %v2201_v13 = vpop.xlane.xlu1 %2200 }
 0xeb7   : > { %v2202_v14 = vmul.f32 0.03125, %v2201_v13 }
 0xeb9   : > { %v2203_v15 = vadd.f32 1e-05, %v2202_v14 }
 0xebb   : > { %8092 = vrsqrt.f32 %v2203_v15 }
 0xec8   : > { %v8093_v16 = vpop.eup %8092 }
 0xec9   : > { %v2205_v18 = vmul.f32 %v8093_v16, %v2197_v8  ;;  %v2570_v8 = vsel %vm1428_vm4, %v2406_v7, 0 }
 0xecb   : > { %v2212_v21 = vmul.f32 %v6945_v17, %v2205_v18 }
 0xecd   : > { %v8639_v22 = vadd.f32 %v6946_v20, %v2212_v21 }
 0xecf   : > { %v2225_v23 = vpack.c.bf16 %v8639_v22, %v8639_v22 }
 0xed1   : > { %7484 = vmatmul.mubr.msk.bf16.vlgmr.msra.gmra.mxu0 %vm1311_vm2, %v2225_v23 }
 0xed2   : > { %7489 = vmatprep.mubr.msk.bf16.mxu0 %vm8245_vm0, %v8244_v1 }
 0xf91   : > { %v2283_v25 = vpop.f32.mrf.mxu0 }
 0xf92   : > { %v2284_v26 = vadd.f32 %v6952_v24, %v2283_v25 }
 0xf93   : > { %v7485_v27 = vpop.f32.mrf.mxu0 }
 0xf94   : > { %v8647_v28 = vpack.c.bf16 %v2284_v26, %v2284_v26 }
 0xf95   : > { %v2286_v29 = vpop.f32.mrf.mxu0 }
 0xf96   : > { %2409 = vrot.lane.b32.xlu0 %v8647_v28, %s9397_s11  ;;  %2296 = vrot.lane.b32.xlu1 %v8647_v28, %s9395_s10 }
 0xf97   : > { %v7486_v30 = vpop.f32.mrf.mxu0 }
 0xf9a   : > { %2407 = vrot.lane.b32.xlu0 %v8647_v28, %s9399_s7 }
0x1008   : > { %v2297_v31 = vpop.permute.xlu1 %2296  ;;  %v2410_v33 = vpop.permute.xlu0 %2409 }
0x1009   : > { %v2302_v32 = vsel %vm1363_vm3, %v2297_v31, 0  ;;  %v2415_v34 = vsel %vm1363_vm3, %v2410_v33, 0 }
0x100a   : > { %7488 = vmatpush3.bf16.xpose.msra.mxu0 %v2302_v32 }
0x100b   : > { %7499 = vmatprep.subr.bf16.mxu0 %v8244_v1 }
0x100c   : > { %v2408_v35 = vpop.permute.xlu0 %2407 }
0x1011   : > { %7490 = vmatmul.mubr.msk.bf16.vlgmr.msra.gmra.mxu0 %vm1363_vm3, %v8647_v28 }
0x1012   : > { %7500 = vmatpush3.bf16.xpose.msra.mxu0 %v2415_v34  ;;  %7501 = vmatprep.mubr.msk.bf16.mxu0 %vm8245_vm0, %v8244_v1 }
0x1013   : > { %7511 = vmatprep.subr.bf16.mxu0 %v8244_v1 }
0x1019   : > { %7502 = vmatmul.mubr.msk.bf16.vlgmr.msra.gmra.mxu0 %vm1363_vm3, %v2408_v35 }
0x101a   : > { %7513 = vmatprep.mubr.msk.bf16.mxu0 %vm8245_vm0, %v8244_v1  ;;  %7512 = vmatpush3.bf16.msra.mxu0 %v2524_v10 }
0x101b   : > { %7523 = vmatprep.subr.bf16.mxu0 %v8244_v1 }
0x10d1   : > { %v2338_v36 = vpop.f32.mrf.mxu0 }
0x10d2   : > { %v2344_v37 = vmul.f32 0.35355338, %v2338_v36 }
0x10d3   : > { %v7491_v38 = vpop.f32.mrf.mxu0 }
0x10d4   : > { %v2345_v39 = vsel %vm1363_vm3, %v2344_v37, -inf }
0x10d5   : > { %2346 = vmax.xlane.f32.xlu0 %v2345_v39  ;;  %v2341_v11 = vpop.f32.mrf.mxu0 }
0x10d7   : > { %v7492_v40 = vpop.f32.mrf.mxu0 }
0x10d9   : > { %v2451_v41 = vpop.f32.mrf.mxu0 }
0x10da   : > { %v2457_v42 = vmul.f32 0.35355338, %v2451_v41 }
0x10db   : > { %v7503_v43 = vpop.f32.mrf.mxu0 }
0x10dc   : > { %v2458_v44 = vsel %vm1363_vm3, %v2457_v42, -inf }
0x10dd   : > { %2459 = vmax.xlane.f32.xlu1 %v2458_v44  ;;  %v2454_v45 = vpop.f32.mrf.mxu0 }
0x10df   : > { %v7504_v46 = vpop.f32.mrf.mxu0 }
0x10ee   : > { %2470 = vrot.lane.b32.xlu1 %v8647_v28, %s9393_s16  ;;  %s9480_s16 = sld [smem:[#allocation20_spill]] }
0x10f2   : > { %2612 = vrot.lane.b32.xlu1 %v8647_v28, %s9391_s18 }
0x115e   : > { %v2347_v47 = vpop.xlane.xlu0 %2346 }
0x115f   : > { %v2348_v48 = vsub.f32 %v2344_v37, %v2347_v47 }
0x1161   : > { %v2349_v49 = vmul.f32 1.442695, %v2348_v48 }
0x1163   : > { %8094 = vpow2.f32 %v2349_v49 }
0x1166   : > { %v2460_v50 = vpop.xlane.xlu1 %2459 }
0x1167   : > { %v2461_v51 = vsub.f32 %v2457_v42, %v2460_v50 }
0x1169   : > { %v2462_v52 = vmul.f32 1.442695, %v2461_v51 }
0x116a   : > { %v2471_v63 = vpop.permute.xlu1 %2470 }
0x116b   : > { %8096 = vpow2.f32 %v2462_v52  ;;  %v2476_v2 = vsel %vm1428_vm4, %v2471_v63, 0 }
0x116e   : > { %v2613_v26 = vpop.permute.xlu1 %2612 }
0x1170   : > { %v8095_v53 = vpop.eup %8094 }
0x1171   : > { %v2351_v54 = vsel %vm1363_vm3, %v8095_v53, 0.0 }
0x1172   : > { %2352 = vadd.xlane.f32.xlu0 %v2351_v54 }
0x1178   : > { %v8097_v55 = vpop.eup %8096 }
0x1179   : > { %v2464_v56 = vsel %vm1363_vm3, %v8097_v55, 0.0 }
0x117a   : > { %2465 = vadd.xlane.f32.xlu0 %v2464_v56  ;;  %v6958_v56 = vld [vmem:[%s9468_s8 + $0x30] sm:$0xff] }
0x1190   : > { %2357 = vrot.lane.b32.xlu0 %v8647_v28, %s9401_s15 }
0x1194   : > { %2614 = vrot.lane.b32.xlu0 %v8647_v28, %s9385_s22  ;;  %s9477_s22 = smov 72  }
0x11fb   : > { %v2353_v57 = vpop.xlane.xlu0 %2352 }
0x11fc   : > { %8098 = vrcp.f32 %v2353_v57  ;;  %v2724_v57 = vpack.c.bf16 %v6958_v56, %v6958_v56 }
0x1203   : > { %v2466_v58 = vpop.xlane.xlu0 %2465 }
0x1204   : > { %8100 = vrcp.f32 %v2466_v58  ;;  %v2729_v58 = vsel %vm1428_vm4, %v2724_v57, 0 }
0x1207   : > { %v2358_v59 = vpop.permute.xlu0 %2357 }
0x1208   : > { %v2363_v60 = vsel %vm1428_vm4, %v2358_v59, 0 }
0x1209   : > { %v8099_v61 = vpop.eup %8098  ;;  %7494 = vmatpush3.bf16.msra.mxu1 %v2363_v60 }
0x120a   : > { %7505 = vmatprep.subr.bf16.mxu1 %v8244_v1  ;;  %v2355_v62 = vmul.f32 %v8099_v61, %v8095_v53 }
0x120b   : > { %v2615_v17 = vpop.permute.xlu0 %2614 }
0x120c   : > { %v2356_v0 = vpack.c.bf16 %v2355_v62, %v2355_v62  ;;  %v2620_v23 = vsel %vm1363_vm3, %v2615_v17, 0 }
0x120e   : > { %7496 = vmatmul.mubr.msk.bf16.vlgmr.msra.gmra.mxu1 %vm1363_vm3, %v2356_v0 }
0x120f   : > { %7506 = vmatpush3.bf16.msra.mxu1 %v2476_v2  ;;  %7507 = vmatprep.mubr.msk.bf16.mxu1 %vm8245_vm0, %v8244_v1 }
0x1210   : > { %7517 = vmatprep.subr.bf16.mxu1 %v8244_v1 }
0x1211   : > { %v8101_v3 = vpop.eup %8100 }
0x1212   : > { %v2468_v4 = vmul.f32 %v8101_v3, %v8097_v55 }
0x1214   : > { %v2469_v5 = vpack.c.bf16 %v2468_v4, %v2468_v4 }
0x1216   : > { %7508 = vmatmul.mubr.msk.bf16.vlgmr.msra.gmra.mxu1 %vm1363_vm3, %v2469_v5 }
0x1217   : > { %7519 = vmatprep.mubr.msk.bf16.mxu1 %vm8245_vm0, %v8244_v1  ;;  %7518 = vmatpush3.bf16.msra.mxu1 %v2570_v8 }
0x1218   : > { %7529 = vmatprep.subr.bf16.mxu1 %v8244_v1 }
0x12ce   : > { %v2399_v12 = vpop.f32.mrf.mxu1 }
0x12cf   : > { %v2405_v13 = vpack.c.bf16 %v2399_v12, %v2399_v12 }
0x12d0   : > { %v7497_v14 = vpop.f32.mrf.mxu1 }
0x12d1   : > { %7520 = vmatmul.mubr.msk.bf16.vlgmr.msra.gmra.mxu1 %vm1363_vm3, %v2405_v13 }
0x12d2   : > { %v2402_v15 = vpop.f32.mrf.mxu1  ;;  %7531 = vmatprep.mubr.msk.bf16.mxu1 %vm8245_vm0, %v8244_v1 }
0x12d3   : > { %v6959_v15 = vld [vmem:[%s9468_s8 + $0x38] sm:$0xff]  ;;  %s9491_s8 = sld [smem:[#allocation26_spill]] }
0x12d4   : > { %v7498_v16 = vpop.f32.mrf.mxu1 }
0x12d5   : > { %v2884_v16 = vpack.c.bf16 %v6959_v15, %v6959_v15 }
0x12d6   : > { %v2512_v18 = vpop.f32.mrf.mxu1 }
0x12d7   : > { %v2518_v20 = vpack.c.bf16 %v2512_v18, %v2512_v18  ;;  %v2889_v18 = vsel %vm1428_vm4, %v2884_v16, 0 }
0x12d8   : > { %v7509_v21 = vpop.f32.mrf.mxu1 }
0x12d9   : > { %7514 = vmatmul.mubr.msk.bf16.vlgmr.msra.gmra.mxu0 %vm1363_vm3, %v2518_v20 }
0x12da   : > { %7524 = vmatpush3.bf16.xpose.msra.mxu0 %v2620_v23  ;;  %v2515_v24 = vpop.f32.mrf.mxu1  ;;  %7525 = vmatprep.mubr.msk.bf16.mxu0 %vm8245_vm0, %v8244_v1 }
0x12db   : > { %7535 = vmatprep.subr.bf16.mxu0 %v8244_v1 }
0x12dc   : > { %v7510_v25 = vpop.f32.mrf.mxu1 }
0x12e1   : > { %7526 = vmatmul.mubr.msk.bf16.vlgmr.msra.gmra.mxu0 %vm1363_vm3, %v2613_v26 }
0x12e2   : > { %7537 = vmatprep.mubr.msk.bf16.mxu0 %vm8245_vm0, %v8244_v1  ;;  %7536 = vmatpush3.bf16.msra.mxu0 %v2729_v58 }
0x12e3   : > { %7547 = vmatprep.subr.bf16.mxu0 %v8244_v1 }
0x1391   : > { %v2606_v27 = vpop.f32.mrf.mxu1 }
0x1393   : > { %v7521_v29 = vpop.f32.mrf.mxu1 }
0x1395   : > { %v2609_v30 = vpop.f32.mrf.mxu1 }
0x1397   : > { %v7522_v31 = vpop.f32.mrf.mxu1 }
0x1399   : > { %v2560_v32 = vpop.f32.mrf.mxu0 }
0x139a   : > { %v8705_v33 = vadd.f32 %v2606_v27, %v2560_v32 }
0x139b   : > { %v7515_v34 = vpop.f32.mrf.mxu0 }
0x139c   : > { %v6973_v34 = vld [vmem:[%s9466_s14 + $0x1] ss:$0 sm:$0xff]  ;;  %s9495_s14 = sld [smem:[#allocation27_spill]] }
0x139d   : > { %v2563_v35 = vpop.f32.mrf.mxu0 }
0x139f   : > { %v7516_v36 = vpop.f32.mrf.mxu0 }
0x13a1   : > { %v2656_v37 = vpop.f32.mrf.mxu0 }
0x13a2   : > { %v2662_v38 = vmul.f32 0.35355338, %v2656_v37 }
0x13a3   : > { %v7527_v39 = vpop.f32.mrf.mxu0 }
0x13a4   : > { %v2663_v11 = vsel %vm1363_vm3, %v2662_v38, -inf }
0x13a5   : > { %2664 = vmax.xlane.f32.xlu0 %v2663_v11  ;;  %v2659_v40 = vpop.f32.mrf.mxu0 }
0x13a7   : > { %v7528_v41 = vpop.f32.mrf.mxu0 }
0x13bb   : > { %2675 = vrot.lane.b32.xlu0 %v8647_v28, %s9387_s1  ;;  %s9478_s1 = smov 40  }
0x13bf   : > { %2772 = vrot.lane.b32.xlu0 %v8647_v28, %s9389_s26  ;;  %s9479_s26 = sld [smem:[#allocation3_spill]] }
0x13c5   : > { %s1218_s18 = scalar_lea.vmem %s9479_s26, %s8484_s0  ;;  %s9481_s26 = sld [smem:[#allocation5_spill]] }
0x13c6   : > { %s9506_s0 = sld [smem:[#allocation35_spill]] }
0x142e   : > { %v2665_v42 = vpop.xlane.xlu0 %2664 }
0x142f   : > { %v2666_v43 = vsub.f32 %v2662_v38, %v2665_v42 }
0x1431   : > { %v2667_v44 = vmul.f32 1.442695, %v2666_v43 }
0x1432   : > { %v2676_v45 = vpop.permute.xlu0 %2675 }
0x1433   : > { %8102 = vpow2.f32 %v2667_v44  ;;  %v2681_v46 = vsel %vm1428_vm4, %v2676_v45, 0 }
0x1434   : > { %7530 = vmatpush3.bf16.msra.mxu1 %v2681_v46  ;;  %v8042_v46 = vld [vmem:[%s9459_s30 + $0x18] sm:$0xff]  }
0x1435   : > { %7541 = vmatprep.subr.bf16.mxu1 %v8244_v1 }
0x1436   : > { %v2773_v55 = vpop.permute.xlu0 %2772 }
0x1440   : > { %v8103_v47 = vpop.eup %8102 }
0x1441   : > { %v2669_v48 = vsel %vm1363_vm3, %v8103_v47, 0.0 }
0x1442   : > { %2670 = vadd.xlane.f32.xlu1 %v2669_v48  ;;  %v8045_v48 = vld [vmem:[%s9467_s12 + $0x30] sm:$0xff]  }
0x1453   : > { %2774 = vrot.lane.b32.xlu1 %v8647_v28, %s9477_s22 }
0x14cb   : > { %v2671_v49 = vpop.xlane.xlu1 %2670 }
0x14cc   : > { %8104 = vrcp.f32 %v2671_v49 }
0x14cf   : > { %v2775_v52 = vpop.permute.xlu1 %2774 }
0x14d0   : > { %v2780_v54 = vsel %vm1363_vm3, %v2775_v52, 0 }
0x14d9   : > { %v8105_v50 = vpop.eup %8104 }
0x14da   : > { %v2673_v51 = vmul.f32 %v8105_v50, %v8103_v47  ;;  %v8043_v47 = vld [vmem:[%s9459_s30 + $0x10] sm:$0xff]   ;;  %s9503_s30 = sld [smem:[#allocation32_spill]] }
0x14dc   : > { %v2674_v53 = vpack.c.bf16 %v2673_v51, %v2673_v51 }
0x14de   : > { %7532 = vmatmul.mubr.msk.bf16.vlgmr.msra.gmra.mxu1 %vm1363_vm3, %v2674_v53  ;;  %v6976_v53 = vld [vmem:[%s9465_s19 + $0x1] ss:$0 sm:$0xff]  ;;  %s9496_s19 = smov 120  }
0x14df   : > { %7542 = vmatpush3.bf16.xpose.msra.mxu1 %v2780_v54  ;;  %7543 = vmatprep.mubr.msk.bf16.mxu1 %vm8245_vm0, %v8244_v1 }
0x14e0   : > { %7553 = vmatprep.subr.bf16.mxu1 %v8244_v1 }
0x14e6   : > { %7544 = vmatmul.mubr.msk.bf16.vlgmr.msra.gmra.mxu1 %vm1363_vm3, %v2773_v55  ;;  %v6977_v55 = vld [vmem:[%s9462_s24 + $0x1] ss:$0 sm:$0xff]  ;;  %s9500_s24 = sld [smem:[#allocation31_spill]] }
0x14e7   : > { %7555 = vmatprep.mubr.msk.bf16.mxu1 %vm8245_vm0, %v8244_v1  ;;  %7554 = vmatpush3.bf16.msra.mxu1 %v2889_v18 }
0x14e8   : > { %7567 = vmatprep.subr.bf16.mxu1 %v8244_v1 }
0x159e   : > { %v2717_v59 = vpop.f32.mrf.mxu1 }
0x159f   : > { %v2723_v60 = vpack.c.bf16 %v2717_v59, %v2717_v59  ;;  %v8194_v59 = vld [vmem:[%s9463_s21] sm:$0xff]   ;;  %s9498_s21 = smov 96  }
0x15a0   : > { %v7533_v61 = vpop.f32.mrf.mxu1 }
0x15a1   : > { %7538 = vmatmul.mubr.msk.bf16.vlgmr.msra.gmra.mxu0 %vm1363_vm3, %v2723_v60  ;;  %v3160_v60 = vld [vmem:[%s1218_s18] sm:$0xff]  ;;  %s9482_s18 = sld [smem:[#allocation21_spill]] }
0x15a2   : > { %v2720_v62 = vpop.f32.mrf.mxu1  ;;  %7549 = vmatprep.mubr.msk.bf16.mxu0 %vm8245_vm0, %v8244_v1  ;;  %v3161_v61 = vpack.c.bf16 %v3160_v60, %v3160_v60 }
0x15a3   : > { %v8046_v62 = vld [vmem:[%s9467_s12 + $0x28] sm:$0xff]  }
0x15a4   : > { %v7534_v63 = vpop.f32.mrf.mxu1 }
0x15a5   : > { %v8047_v63 = vld [vmem:[%s9467_s12 + $0x20] sm:$0xff]  }
0x15a6   : > { %v2816_v0 = vpop.f32.mrf.mxu1 }
0x15a7   : > { %v2822_v2 = vmul.f32 0.35355338, %v2816_v0  ;;  %v8048_v0 = vld [vmem:[%s9480_s16 + $0x8] sm:$0xff]  }
0x15a8   : > { %v7545_v3 = vpop.f32.mrf.mxu1 }
0x15a9   : > { %v2823_v4 = vsel %vm1363_vm3, %v2822_v2, -inf  ;;  %v6983_v3 = vld [vmem:[%s9469_s6 + $0x1] ss:$0 sm:$0xff]  ;;  %s9490_s6 = sld [smem:[#allocation28_spill]] }
0x15aa   : > { %2824 = vmax.xlane.f32.xlu1 %v2823_v4  ;;  %v2819_v5 = vpop.f32.mrf.mxu1 }
0x15ac   : > { %v7546_v6 = vpop.f32.mrf.mxu1 }
0x1633   : > { %v2825_v7 = vpop.xlane.xlu1 %2824 }
0x1634   : > { %v2826_v8 = vsub.f32 %v2822_v2, %v2825_v7  ;;  %v8049_v2 = vld [vmem:[%s9480_s16] sm:$0xff]  }
0x1636   : > { %v2827_v9 = vmul.f32 1.442695, %v2826_v8 }
0x1638   : > { %8106 = vpow2.f32 %v2827_v9 }
0x1645   : > { %v8107_v19 = vpop.eup %8106 }
0x1646   : > { %v2829_v10 = vsel %vm1363_vm3, %v8107_v19, 0.0 }
0x1647   : > { %2830 = vadd.xlane.f32.xlu0 %v2829_v10 }
0x165d   : > { %2835 = vrot.lane.b32.xlu0 %v8647_v28, %s9478_s1 }
0x1661   : > { %v2765_v12 = vpop.f32.mrf.mxu0 }
0x1662   : > { %v2771_v13 = vadd.f32 %v2765_v12, %v8705_v33  ;;  %v3205_v12 = vld [vmem:[%s9481_s26] sm:$0xff]  ;;  %s9483_s26 = smov 56  }
0x1663   : > { %v7539_v14 = vpop.f32.mrf.mxu0 }
0x1665   : > { %v2768_v17 = vpop.f32.mrf.mxu0 }
0x1667   : > { %v7540_v20 = vpop.f32.mrf.mxu0 }
0x16d0   : > { %v2831_v21 = vpop.xlane.xlu0 %2830 }
0x16d1   : > { %8108 = vrcp.f32 %v2831_v21 }
0x16d4   : > { %v2836_v23 = vpop.permute.xlu0 %2835 }
0x16d5   : > { %v2841_v24 = vsel %vm1428_vm4, %v2836_v23, 0 }
0x16d6   : > { %7548 = vmatpush3.bf16.msra.mxu0 %v2841_v24 }
0x16d7   : > { %7559 = vmatprep.subr.bf16.mxu0 %v8244_v1 }
0x16de   : > { %v8109_v28 = vpop.eup %8108 }
0x16df   : > { %v2833_v25 = vmul.f32 %v8109_v28, %v8107_v19 }
0x16e1   : > { %v2834_v26 = vpack.c.bf16 %v2833_v25, %v2833_v25  ;;  %v7007_v25 = vld [vmem:[%s9482_s18] ss:$0 sm:$0xff] }
0x16e3   : > { %7550 = vmatmul.mubr.msk.bf16.vlgmr.msra.gmra.mxu0 %vm1363_vm3, %v2834_v26 }
0x16e4   : > { %7563 = vmatprep.mubr.msk.bf16.mxu0 %vm8245_vm0, %v8244_v1  ;;  %7560 = vmatpush3.bf16.msra.mxu0 %v8042_v46 }
0x16e5   : > { %7561 = vmatprep.subr.bf16.mxu0 %v8244_v1 }
0x16e8   : > { %7562 = vmatpush3.bf16.msra.mxu0 %v8043_v47 }
0x16e9   : > { %7579 = vmatprep.subr.bf16.mxu0 %v8244_v1 }
0x17a3   : > { %v2877_v27 = vpop.f32.mrf.mxu0 }
0x17a4   : > { %v2883_v29 = vpack.c.bf16 %v2877_v27, %v2877_v27 }
0x17a5   : > { %v7551_v30 = vpop.f32.mrf.mxu0 }
0x17a6   : > { %7556 = vmatmul.mubr.msk.bf16.vlgmr.msra.gmra.mxu1 %vm1363_vm3, %v2883_v29 }
0x17a7   : > { %v2880_v31 = vpop.f32.mrf.mxu0  ;;  %7575 = vmatprep.mubr.msk.bf16.mxu1 %vm8245_vm0, %v8244_v1 }
0x17a9   : > { %v7552_v32 = vpop.f32.mrf.mxu0 }
0x1866   : > { %v2925_v33 = vpop.f32.mrf.mxu1 }
0x1867   : > { %v2931_v35 = vadd.f32 %v2925_v33, %v2771_v13  ;;  %v8195_v13 = vld [vmem:[%s9461_s25] ss:$0 sm:$0xff]  ;;  %s9501_s25 = sld [smem:[#allocation34_spill]] }
0x1868   : > { %v7557_v36 = vpop.f32.mrf.mxu1 }
0x1869   : > { %v2940_v37 = vadd.f32 %v6973_v34, %v2931_v35 }
0x186a   : > { %v2928_v38 = vpop.f32.mrf.mxu1 }
0x186b   : > { %v2941_v39 = vadd.f32 %v2940_v37, %v8639_v22  ;;  %v8044_v22 = vld [vmem:[%s9467_s12 + $0x38] sm:$0xff]   ;;  %v3278_v38 = vlaneseq  ;;  %s9492_s12 = sld [smem:[#allocation24_spill]] }
0x186c   : > { %v7558_v11 = vpop.f32.mrf.mxu1  ;;  %7568 = vmatpush3.bf16.msra.mxu1 %v8044_v22 }
0x186d   : > { %v2946_v40 = vsel %vm1311_vm2, %v2941_v39, 0.0  ;;  %7569 = vmatprep.subr.bf16.mxu1 %v8244_v1  ;;  %v3281_v11 = vand.u32 127, %v3278_v38 }
0x186e   : > { %2947 = vadd.xlane.f32.xlu1 %v2946_v40 }
0x1870   : > { %7570 = vmatpush3.bf16.msra.mxu1 %v8045_v48 }
0x1871   : > { %7571 = vmatprep.subr.bf16.mxu1 %v8244_v1 }
0x1874   : > { %7572 = vmatpush3.bf16.msra.mxu1 %v8046_v62 }
0x1875   : > { %7573 = vmatprep.subr.bf16.mxu1 %v8244_v1 }
0x1878   : > { %7574 = vmatpush3.bf16.msra.mxu1 %v8047_v63 }
0x1879   : > { %7593 = vmatprep.subr.bf16.mxu1 %v8244_v1 }
0x18f7   : > { %v2948_v41 = vpop.xlane.xlu1 %2947 }
0x18f8   : > { %v2949_v42 = vmul.f32 0.03125, %v2948_v41  ;;  %v8257_v41 = vmov -1e+30  }
0x18fa   : > { %v2950_v43 = vsub.f32 %v2941_v39, %v2949_v42  ;;  %v3279_v39 = vshrl.u32 %v3278_v38, 7 }
0x18fc   : > { %v2951_v44 = vmul.f32 %v2950_v43, %v2950_v43  ;;  %vm3282_vm6 = vcmp.le.s32.totalorder %v3281_v11, %v3279_v39 }
0x18fd   : > { %v8818_v42 = vsel %vm3282_vm6, 0.0, %v8257_v41 }
0x18fe   : > { %v2952_v45 = vsel %vm1311_vm2, %v2951_v44, 0.0 }
0x18ff   : > { %2953 = vadd.xlane.f32.xlu1 %v2952_v45 }
0x1988   : > { %v2954_v49 = vpop.xlane.xlu1 %2953 }
0x1989   : > { %v2955_v50 = vmul.f32 0.03125, %v2954_v49 }
0x198b   : > { %v2956_v51 = vadd.f32 1e-05, %v2955_v50 }
0x198d   : > { %8110 = vrsqrt.f32 %v2956_v51 }
0x199a   : > { %v8111_v52 = vpop.eup %8110 }
0x199b   : > { %v2958_v54 = vmul.f32 %v8111_v52, %v2950_v43 }
0x199d   : > { %v2965_v56 = vmul.f32 %v6976_v53, %v2958_v54 }
0x199f   : > { %v8761_v57 = vadd.f32 %v6977_v55, %v2965_v56 }
0x19a1   : > { %v2978_v58 = vpack.c.bf16 %v8761_v57, %v8761_v57 }
0x19a3   : > { %7564 = vmatmul.mubr.msk.bf16.vlgmr.msra.gmra.mxu0 %vm1311_vm2, %v2978_v58 }
0x19a4   : > { %7580 = vmatpush3.bf16.msra.mxu0 %v8194_v59  ;;  %7581 = vmatprep.mubr.msk.bf16.mxu0 %vm8245_vm0, %v8244_v1 }
0x19a5   : > { %7585 = vmatprep.subr.bf16.mxu0 %v8244_v1 }
0x19ab   : > { %7582 = vmatmul.mubr.msk.bf16.vlgmr.msra.gmra.mxu0 %vm1241_vm1, %v3161_v61 }
0x19ac   : > { %7589 = vmatprep.mubr.msk.bf16.mxu0 %vm8245_vm0, %v8244_v1  ;;  %7586 = vmatpush3.bf16.msra.mxu0 %v8048_v0 }
0x19ad   : > { %7587 = vmatprep.subr.bf16.mxu0 %v8244_v1 }
0x19b0   : > { %7588 = vmatpush3.bf16.msra.mxu0 %v8049_v2 }
0x19b1   : > { %7599 = vmatprep.subr.bf16.mxu0 %v8244_v1 }
0x1a63   : > { %v3036_v4 = vpop.f32.mrf.mxu0 }
0x1a64   : > { %v3037_v5 = vadd.f32 %v6983_v3, %v3036_v4 }
0x1a65   : > { %v7565_v6 = vpop.f32.mrf.mxu0 }
0x1a66   : > { %v3042_v7 = vmax.f32 %v3037_v5, 0.0 }
0x1a67   : > { %v3039_v8 = vpop.f32.mrf.mxu0 }
0x1a68   : > { %v3052_v9 = vpack.c.bf16 %v3042_v7, %v3042_v7 }
0x1a69   : > { %v7566_v19 = vpop.f32.mrf.mxu0 }
0x1a6a   : > { %7576 = vmatmul.mubr.msk.bf16.vlgmr.msra.gmra.mxu1 %vm2146_vm5, %v3052_v9 }
0x1a6b   : > { %v3199_v10 = vpop.f32.mrf.mxu0  ;;  %7595 = vmatprep.mubr.msk.bf16.mxu1 %vm8245_vm0, %v8244_v1 }
0x1a6c   : > { %v3200_v14 = vadd.f32 %v8195_v13, %v3199_v10 }
0x1a6d   : > { %v7583_v15 = vpop.f32.mrf.mxu0 }
0x1a6e   : > { %v8789_v16 = vadd.f32 %v3205_v12, %v3200_v14 }
0x1a6f   : > { %v3202_v17 = vpop.f32.mrf.mxu0 }
0x1a70   : > { %v3211_v18 = vpack.c.bf16 %v8789_v16, %v8789_v16 }
0x1a71   : > { %v7584_v20 = vpop.f32.mrf.mxu0 }
0x1a72   : > { %7590 = vmatmul.mubr.msk.bf16.vlgmr.msra.gmra.mxu0 %vm1311_vm2, %v3211_v18 }
0x1a73   : > { %7601 = vmatprep.mubr.msk.bf16.mxu0 %vm8245_vm0, %v8244_v1 }
0x1b2a   : > { %v8796_v21 = vpop.f32.mrf.mxu1 }
0x1b2c   : > { %v7577_v23 = vpop.f32.mrf.mxu1 }
0x1b2e   : > { %v3125_v24 = vpop.f32.mrf.mxu1 }
0x1b30   : > { %v7578_v28 = vpop.f32.mrf.mxu1 }
0x1b32   : > { %v3268_v26 = vpop.f32.mrf.mxu0 }
0x1b33   : > { %v3269_v27 = vadd.f32 %v7007_v25, %v3268_v26 }
0x1b34   : > { %v7591_v29 = vpop.f32.mrf.mxu0 }
0x1b35   : > { %v8799_v30 = vpack.c.bf16 %v3269_v27, %v3269_v27 }
0x1b36   : > { %v3271_v31 = vpop.f32.mrf.mxu0 }
0x1b37   : > { %3400 = vrot.lane.b32.xlu0 %v8799_v30, %s9397_s11  ;;  %3286 = vrot.lane.b32.xlu1 %v8799_v30, %s9395_s10  ;;  %s9484_s10 = smov 112   ;;  %s9485_s11 = smov 80  }
0x1b38   : > { %v7592_v32 = vpop.f32.mrf.mxu0 }
0x1b3b   : > { %3398 = vrot.lane.b32.xlu0 %v8799_v30, %s9399_s7  ;;  %s9486_s7 = sld [smem:[#allocation22_spill]] }
0x1b41   : > { %v3274_v15 = vld [vmem:[%s9486_s7] sm:$0xff]  ;;  %v3275_v20 = vld [vmem:[%s9486_s7 + $0x8] sm:$0xff] }
0x1b42   : > { %v3397_v17 = vpack.c.bf16 %v3274_v15, %v3274_v15  ;;  %v3511_v23 = vpack.c.bf16 %v3275_v20, %v3275_v20 }
0x1b44   : > { %v3562_v18 = vsel %vm1428_vm4, %v3397_v17, 0  ;;  %v3516_v24 = vsel %vm1428_vm4, %v3511_v23, 0 }
0x1ba9   : > { %v3287_v33 = vpop.permute.xlu1 %3286  ;;  %v3401_v35 = vpop.permute.xlu0 %3400 }
0x1baa   : > { %v3292_v34 = vsel %vm1363_vm3, %v3287_v33, 0  ;;  %v3406_v36 = vsel %vm1363_vm3, %v3401_v35, 0 }
0x1bab   : > { %7594 = vmatpush3.bf16.xpose.msra.mxu1 %v3292_v34 }
0x1bac   : > { %7605 = vmatprep.subr.bf16.mxu1 %v8244_v1 }
0x1bad   : > { %v3399_v37 = vpop.permute.xlu0 %3398 }
0x1bb2   : > { %7596 = vmatmul.mubr.msk.bf16.vlgmr.msra.gmra.mxu1 %vm1363_vm3, %v8799_v30 }
0x1bb3   : > { %7606 = vmatpush3.bf16.xpose.msra.mxu1 %v3406_v36  ;;  %7607 = vmatprep.mubr.msk.bf16.mxu1 %vm8245_vm0, %v8244_v1 }
0x1bb4   : > { %7617 = vmatprep.subr.bf16.mxu1 %v8244_v1 }
0x1bba   : > { %7608 = vmatmul.mubr.msk.bf16.vlgmr.msra.gmra.mxu1 %vm1363_vm3, %v3399_v37 }
0x1bbb   : > { %7619 = vmatprep.mubr.msk.bf16.mxu1 %vm8245_vm0, %v8244_v1  ;;  %7618 = vmatpush3.bf16.msra.mxu1 %v3516_v24 }
0x1bbc   : > { %7629 = vmatprep.subr.bf16.mxu1 %v8244_v1 }
0x1c72   : > { %v3328_v40 = vpop.f32.mrf.mxu1 }
0x1c73   : > { %v3334_v43 = vmul.f32 0.35355338, %v3328_v40 }
0x1c74   : > { %v7597_v44 = vpop.f32.mrf.mxu1 }
0x1c75   : > { %v3335_v45 = vadd.f32 %v3334_v43, %v8818_v42 }
0x1c76   : > { %v3331_v46 = vpop.f32.mrf.mxu1 }
0x1c77   : > { %v3336_v47 = vsel %vm1363_vm3, %v3335_v45, -inf }
0x1c78   : > { %3337 = vmax.xlane.f32.xlu1 %v3336_v47  ;;  %v7598_v22 = vpop.f32.mrf.mxu1 }
0x1c7a   : > { %v3442_v48 = vpop.f32.mrf.mxu1 }
0x1c7b   : > { %v3448_v49 = vmul.f32 0.35355338, %v3442_v48 }
0x1c7c   : > { %v7609_v50 = vpop.f32.mrf.mxu1 }
0x1c7d   : > { %v3449_v51 = vadd.f32 %v3448_v49, %v8818_v42 }
0x1c7e   : > { %v3445_v52 = vpop.f32.mrf.mxu1 }
0x1c7f   : > { %v3450_v53 = vsel %vm1363_vm3, %v3449_v51, -inf }
0x1c80   : > { %3451 = vmax.xlane.f32.xlu0 %v3450_v53  ;;  %v7610_v54 = vpop.f32.mrf.mxu1 }
0x1d01   : > { %v3338_v55 = vpop.xlane.xlu1 %3337 }
0x1d02   : > { %v3339_v56 = vsub.f32 %v3335_v45, %v3338_v55 }
0x1d04   : > { %v3340_v58 = vmul.f32 1.442695, %v3339_v56 }
0x1d06   : > { %8112 = vpow2.f32 %v3340_v58 }
0x1d09   : > { %v3452_v59 = vpop.xlane.xlu0 %3451 }
0x1d0a   : > { %v3453_v60 = vsub.f32 %v3449_v51, %v3452_v59 }
0x1d0c   : > { %v3454_v61 = vmul.f32 1.442695, %v3453_v60 }
0x1d0e   : > { %8114 = vpow2.f32 %v3454_v61 }
0x1d13   : > { %v8113_v62 = vpop.eup %8112 }
0x1d14   : > { %v3342_v63 = vsel %vm1363_vm3, %v8113_v62, 0.0 }
0x1d15   : > { %3343 = vadd.xlane.f32.xlu0 %v3342_v63 }
0x1d1b   : > { %v8115_v0 = vpop.eup %8114 }
0x1d1c   : > { %v3456_v2 = vsel %vm1363_vm3, %v8115_v0, 0.0 }
0x1d1d   : > { %3457 = vadd.xlane.f32.xlu1 %v3456_v2 }
0x1d2b   : > { %3348 = vrot.lane.b32.xlu0 %v8799_v30, %s9401_s15  ;;  %s9487_s15 = smov 104  }
0x1d2e   : > { %3462 = vrot.lane.b32.xlu1 %v8799_v30, %s9483_s26 }
0x1d2f   : > { %3604 = vrot.lane.b32.xlu0 %v8799_v30, %s9484_s10 }
0x1d32   : > { %3606 = vrot.lane.b32.xlu1 %v8799_v30, %s9485_s11 }
0x1d9e   : > { %v3344_v3 = vpop.xlane.xlu0 %3343 }
0x1d9f   : > { %8116 = vrcp.f32 %v3344_v3 }
0x1da2   : > { %v3349_v4 = vpop.permute.xlu0 %3348 }
0x1da3   : > { %v3354_v5 = vsel %vm1428_vm4, %v3349_v4, 0 }
0x1da4   : > { %7600 = vmatpush3.bf16.msra.mxu0 %v3354_v5 }
0x1da5   : > { %7611 = vmatprep.subr.bf16.mxu0 %v8244_v1 }
0x1da6   : > { %v3458_v6 = vpop.xlane.xlu1 %3457  ;;  %v3605_v38 = vpop.permute.xlu0 %3604 }
0x1da7   : > { %8118 = vrcp.f32 %v3458_v6  ;;  %v3276_v6 = vld [vmem:[%s9486_s7 + $0x10] sm:$0xff] }
0x1daa   : > { %v3463_v9 = vpop.permute.xlu1 %3462 }
0x1dab   : > { %v3468_v10 = vsel %vm1428_vm4, %v3463_v9, 0 }
0x1dac   : > { %v8117_v7 = vpop.eup %8116 }
0x1dad   : > { %v3346_v8 = vmul.f32 %v8117_v7, %v8113_v62  ;;  %v3717_v7 = vpack.c.bf16 %v3276_v6, %v3276_v6 }
0x1dae   : > { %v3607_v31 = vpop.permute.xlu1 %3606 }
0x1daf   : > { %v3347_v19 = vpack.c.bf16 %v3346_v8, %v3346_v8  ;;  %v3612_v35 = vsel %vm1363_vm3, %v3607_v31, 0  ;;  %v3722_v8 = vsel %vm1428_vm4, %v3717_v7, 0  ;;  %v6996_v31 = vld [vmem:[%s9464_s20 + $0x1] ss:$0 sm:$0xff]  ;;  %s9497_s20 = smov 88  }
0x1db1   : > { %7602 = vmatmul.mubr.msk.bf16.vlgmr.msra.gmra.mxu0 %vm1363_vm3, %v3347_v19 }
0x1db2   : > { %7612 = vmatpush3.bf16.msra.mxu0 %v3468_v10  ;;  %7613 = vmatprep.mubr.msk.bf16.mxu0 %vm8245_vm0, %v8244_v1 }
0x1db3   : > { %7623 = vmatprep.subr.bf16.mxu0 %v8244_v1 }
0x1db4   : > { %v8119_v12 = vpop.eup %8118 }
0x1db5   : > { %v3460_v13 = vmul.f32 %v8119_v12, %v8115_v0 }
0x1db7   : > { %v3461_v14 = vpack.c.bf16 %v3460_v13, %v3460_v13 }
0x1db9   : > { %7614 = vmatmul.mubr.msk.bf16.vlgmr.msra.gmra.mxu0 %vm1363_vm3, %v3461_v14 }
0x1dba   : > { %7625 = vmatprep.mubr.msk.bf16.mxu0 %vm8245_vm0, %v8244_v1  ;;  %7624 = vmatpush3.bf16.msra.mxu0 %v3562_v18 }
0x1dbb   : > { %7635 = vmatprep.subr.bf16.mxu0 %v8244_v1 }
0x1e71   : > { %v3390_v28 = vpop.f32.mrf.mxu0 }
0x1e72   : > { %v3396_v25 = vpack.c.bf16 %v3390_v28, %v3390_v28 }
0x1e73   : > { %v7603_v26 = vpop.f32.mrf.mxu0 }
0x1e74   : > { %7626 = vmatmul.mubr.msk.bf16.vlgmr.msra.gmra.mxu0 %vm1363_vm3, %v3396_v25 }
0x1e75   : > { %v3393_v27 = vpop.f32.mrf.mxu0  ;;  %7637 = vmatprep.mubr.msk.bf16.mxu0 %vm8245_vm0, %v8244_v1 }
0x1e77   : > { %v7604_v29 = vpop.f32.mrf.mxu0 }
0x1e79   : > { %v3504_v32 = vpop.f32.mrf.mxu0 }
0x1e7a   : > { %v3510_v33 = vpack.c.bf16 %v3504_v32, %v3504_v32  ;;  %v3123_v32 = vadd.f32 %v6996_v31, %v8796_v21  ;;  %v7025_v31 = vld [vmem:[%s9493_s13] ss:$0 sm:$0xff] }
0x1e7b   : > { %v7615_v34 = vpop.f32.mrf.mxu0 }
0x1e7c   : > { %7620 = vmatmul.mubr.msk.bf16.vlgmr.msra.gmra.mxu1 %vm1363_vm3, %v3510_v33 }
0x1e7d   : > { %7630 = vmatpush3.bf16.xpose.msra.mxu1 %v3612_v35  ;;  %v3507_v36 = vpop.f32.mrf.mxu0  ;;  %7631 = vmatprep.mubr.msk.bf16.mxu1 %vm8245_vm0, %v8244_v1  ;;  %v3128_v35 = vadd.f32 %v3123_v32, %v8761_v57 }
0x1e7e   : > { %7641 = vmatprep.subr.bf16.mxu1 %v8244_v1 }
0x1e7f   : > { %v7616_v37 = vpop.f32.mrf.mxu0 }
0x1e84   : > { %7632 = vmatmul.mubr.msk.bf16.vlgmr.msra.gmra.mxu1 %vm1363_vm3, %v3605_v38 }
0x1e85   : > { %7643 = vmatprep.mubr.msk.bf16.mxu1 %vm8245_vm0, %v8244_v1  ;;  %7642 = vmatpush3.bf16.msra.mxu1 %v3722_v8 }
0x1e86   : > { %7653 = vmatprep.subr.bf16.mxu1 %v8244_v1 }
0x1f34   : > { %v3598_v39 = vpop.f32.mrf.mxu0 }
0x1f36   : > { %v7627_v11 = vpop.f32.mrf.mxu0 }
0x1f37   : > { %v3277_v11 = vld [vmem:[%s9486_s7 + $0x18] sm:$0xff] }
0x1f38   : > { %v3601_v40 = vpop.f32.mrf.mxu0 }
0x1f39   : > { %v3878_v40 = vpack.c.bf16 %v3277_v11, %v3277_v11 }
0x1f3a   : > { %v7628_v41 = vpop.f32.mrf.mxu0 }
0x1f3c   : > { %v3552_v43 = vpop.f32.mrf.mxu1 }
0x1f3d   : > { %v8861_v44 = vadd.f32 %v3598_v39, %v3552_v43  ;;  %v3883_v43 = vsel %vm1428_vm4, %v3878_v40, 0 }
0x1f3e   : > { %v7621_v45 = vpop.f32.mrf.mxu1 }
0x1f40   : > { %v3555_v46 = vpop.f32.mrf.mxu1 }
0x1f42   : > { %v7622_v47 = vpop.f32.mrf.mxu1 }
0x1f44   : > { %v3648_v22 = vpop.f32.mrf.mxu1 }
0x1f45   : > { %v3654_v48 = vmul.f32 0.35355338, %v3648_v22 }
0x1f46   : > { %v7633_v49 = vpop.f32.mrf.mxu1 }
0x1f47   : > { %v3655_v50 = vadd.f32 %v3654_v48, %v8818_v42 }
0x1f48   : > { %v3651_v51 = vpop.f32.mrf.mxu1 }
0x1f49   : > { %v3656_v52 = vsel %vm1363_vm3, %v3655_v50, -inf }
0x1f4a   : > { %3657 = vmax.xlane.f32.xlu1 %v3656_v52  ;;  %v7634_v53 = vpop.f32.mrf.mxu1 }
0x1f4b   : > { %v7023_v53 = vld [vmem:[%s9489_s5] ss:$0 sm:$0xff] }
0x1f5b   : > { %3767 = vrot.lane.b32.xlu1 %v8799_v30, %s9477_s22 }
0x1f5f   : > { %3765 = vrot.lane.b32.xlu1 %v8799_v30, %s9487_s15 }
0x1fd3   : > { %v3658_v54 = vpop.xlane.xlu1 %3657 }
0x1fd4   : > { %v3659_v55 = vsub.f32 %v3655_v50, %v3658_v54 }
0x1fd6   : > { %v3660_v56 = vmul.f32 1.442695, %v3659_v55 }
0x1fd7   : > { %v3768_v2 = vpop.permute.xlu1 %3767 }
0x1fd8   : > { %8120 = vpow2.f32 %v3660_v56  ;;  %v3773_v4 = vsel %vm1363_vm3, %v3768_v2, 0  ;;  %v8050_v2 = vld [vmem:[%s9490_s6 + $0x8] sm:$0xff]  }
0x1fdb   : > { %v3766_v5 = vpop.permute.xlu1 %3765 }
0x1fe5   : > { %v8121_v58 = vpop.eup %8120 }
0x1fe6   : > { %v3662_v59 = vsel %vm1363_vm3, %v8121_v58, 0.0 }
0x1fe7   : > { %3663 = vadd.xlane.f32.xlu0 %v3662_v59 }
0x1ffd   : > { %3668 = vrot.lane.b32.xlu0 %v8799_v30, %s9488_s3 }
0x2070   : > { %v3664_v60 = vpop.xlane.xlu0 %3663 }
0x2071   : > { %8122 = vrcp.f32 %v3664_v60 }
0x2074   : > { %v3669_v61 = vpop.permute.xlu0 %3668 }
0x2075   : > { %v3674_v62 = vsel %vm1428_vm4, %v3669_v61, 0 }
0x2076   : > { %7636 = vmatpush3.bf16.msra.mxu0 %v3674_v62 }
0x2077   : > { %7647 = vmatprep.subr.bf16.mxu0 %v8244_v1 }
0x207e   : > { %v8123_v63 = vpop.eup %8122 }
0x207f   : > { %v3666_v0 = vmul.f32 %v8123_v63, %v8121_v58 }
0x2081   : > { %v3667_v3 = vpack.c.bf16 %v3666_v0, %v3666_v0 }
0x2083   : > { %7638 = vmatmul.mubr.msk.bf16.vlgmr.msra.gmra.mxu0 %vm1363_vm3, %v3667_v3  ;;  %v8051_v3 = vld [vmem:[%s9490_s6] sm:$0xff]  }
0x2084   : > { %7648 = vmatpush3.bf16.xpose.msra.mxu0 %v3773_v4  ;;  %7649 = vmatprep.mubr.msk.bf16.mxu0 %vm8245_vm0, %v8244_v1 }
0x2085   : > { %7659 = vmatprep.subr.bf16.mxu0 %v8244_v1 }
0x208b   : > { %7650 = vmatmul.mubr.msk.bf16.vlgmr.msra.gmra.mxu0 %vm1363_vm3, %v3766_v5 }
0x208c   : > { %7661 = vmatprep.mubr.msk.bf16.mxu0 %vm8245_vm0, %v8244_v1  ;;  %7660 = vmatpush3.bf16.msra.mxu0 %v3883_v43 }
0x208d   : > { %7673 = vmatprep.subr.bf16.mxu0 %v8244_v1 }
0x2143   : > { %v3710_v9 = vpop.f32.mrf.mxu0 }
0x2144   : > { %v3716_v19 = vpack.c.bf16 %v3710_v9, %v3710_v9 }
0x2145   : > { %v7639_v10 = vpop.f32.mrf.mxu0 }
0x2146   : > { %7644 = vmatmul.mubr.msk.bf16.vlgmr.msra.gmra.mxu1 %vm1363_vm3, %v3716_v19 }
0x2147   : > { %v3713_v12 = vpop.f32.mrf.mxu0  ;;  %7655 = vmatprep.mubr.msk.bf16.mxu1 %vm8245_vm0, %v8244_v1 }
0x2148   : > { %v7004_v12 = vld [vmem:[%s9475_s2 + $0x1] ss:$0 sm:$0xff]  ;;  %s9494_s2 = sld [smem:[#allocation29_spill]] }
0x2149   : > { %v7640_v13 = vpop.f32.mrf.mxu0 }
0x214b   : > { %v3809_v14 = vpop.f32.mrf.mxu0 }
0x214c   : > { %v3815_v15 = vmul.f32 0.35355338, %v3809_v14  ;;  %v7005_v14 = vld [vmem:[%s9476_s23 + $0x1] ss:$0 sm:$0xff]  ;;  %s9499_s23 = sld [smem:[#allocation30_spill]] }
0x214d   : > { %v7651_v17 = vpop.f32.mrf.mxu0 }
0x214e   : > { %v3816_v18 = vadd.f32 %v3815_v15, %v8818_v42 }
0x214f   : > { %v3812_v20 = vpop.f32.mrf.mxu0 }
0x2150   : > { %v3817_v23 = vsel %vm1363_vm3, %v3816_v18, -inf  ;;  %v8052_v20 = vld [vmem:[%s9491_s8 + $0x8] sm:$0xff]  }
0x2151   : > { %3818 = vmax.xlane.f32.xlu0 %v3817_v23  ;;  %v7652_v24 = vpop.f32.mrf.mxu0  ;;  %v8053_v23 = vld [vmem:[%s9491_s8] sm:$0xff]  }
0x2167   : > { %3829 = vrot.lane.b32.xlu0 %v8799_v30, %s9478_s1  ;;  %v3133_v30 = vsel %vm1311_vm2, %v3128_v35, 0.0 }
0x21da   : > { %v3819_v28 = vpop.xlane.xlu0 %3818 }
0x21db   : > { %v3820_v25 = vsub.f32 %v3816_v18, %v3819_v28 }
0x21dd   : > { %v3821_v26 = vmul.f32 1.442695, %v3820_v25 }
0x21de   : > { %v3830_v27 = vpop.permute.xlu0 %3829 }
0x21df   : > { %8124 = vpow2.f32 %v3821_v26  ;;  %v3835_v29 = vsel %vm1428_vm4, %v3830_v27, 0  ;;  %v7024_v27 = vld [vmem:[%s9492_s12] ss:$0 sm:$0xff] }
0x21e0   : > { %7654 = vmatpush3.bf16.msra.mxu1 %v3835_v29 }
0x21e1   : > { %7665 = vmatprep.subr.bf16.mxu1 %v8244_v1 }
0x21ec   : > { %v8125_v33 = vpop.eup %8124 }
0x21ed   : > { %v3823_v34 = vsel %vm1363_vm3, %v8125_v33, 0.0 }
0x21ee   : > { %3824 = vadd.xlane.f32.xlu1 %v3823_v34 }
0x21f2   : > { %3134 = vadd.xlane.f32.xlu1 %v3133_v30 }
0x2206   : > { %v3758_v36 = vpop.f32.mrf.mxu1 }
0x2207   : > { %v3764_v37 = vadd.f32 %v3758_v36, %v8861_v44 }
0x2208   : > { %v7645_v38 = vpop.f32.mrf.mxu1 }
0x220a   : > { %v3761_v39 = vpop.f32.mrf.mxu1 }
0x220c   : > { %v7646_v41 = vpop.f32.mrf.mxu1 }
0x220d   : > { %v7026_v41 = vld [vmem:[%s9495_s14] ss:$0 sm:$0xff] }
0x2277   : > { %v3825_v21 = vpop.xlane.xlu1 %3824 }
0x2278   : > { %8126 = vrcp.f32 %v3825_v21 }
0x227b   : > { %v3135_v50 = vpop.xlane.xlu1 %3134 }
0x227c   : > { %v3136_v51 = vmul.f32 0.03125, %v3135_v50 }
0x227e   : > { %v3137_v56 = vsub.f32 %v3128_v35, %v3136_v51  ;;  %v7030_v35 = vld [vmem:[%s9494_s2] ss:$0 sm:$0xff] }
0x2280   : > { %v3138_v63 = vmul.f32 %v3137_v56, %v3137_v56 }
0x2282   : > { %v3139_v0 = vsel %vm1311_vm2, %v3138_v63, 0.0 }
0x2285   : > { %v8127_v57 = vpop.eup %8126 }
0x2286   : > { %v3827_v45 = vmul.f32 %v8127_v57, %v8125_v33 }
0x2288   : > { %v3828_v46 = vpack.c.bf16 %v3827_v45, %v3827_v45 }
0x228a   : > { %7656 = vmatmul.mubr.msk.bf16.vlgmr.msra.gmra.mxu1 %vm1363_vm3, %v3828_v46 }
0x228b   : > { %7669 = vmatprep.mubr.msk.bf16.mxu1 %vm8245_vm0, %v8244_v1  ;;  %7666 = vmatpush3.bf16.msra.mxu1 %v8052_v20 }
0x228c   : > { %7667 = vmatprep.subr.bf16.mxu1 %v8244_v1 }
0x228f   : > { %7668 = vmatpush3.bf16.msra.mxu1 %v8053_v23 }
0x2290   : > { %7681 = vmatprep.subr.bf16.mxu1 %v8244_v1 }
0x234a   : > { %v3871_v44 = vpop.f32.mrf.mxu1 }
0x234b   : > { %v3877_v47 = vpack.c.bf16 %v3871_v44, %v3871_v44 }
0x234c   : > { %v7657_v22 = vpop.f32.mrf.mxu1 }
0x234d   : > { %7662 = vmatmul.mubr.msk.bf16.vlgmr.msra.gmra.mxu0 %vm1363_vm3, %v3877_v47 }
0x234e   : > { %v3874_v48 = vpop.f32.mrf.mxu1  ;;  %7677 = vmatprep.mubr.msk.bf16.mxu0 %vm8245_vm0, %v8244_v1  ;;  %7674 = vmatpush3.bf16.msra.mxu0 %v8050_v2 }
0x234f   : > { %7675 = vmatprep.subr.bf16.mxu0 %v8244_v1 }
0x2350   : > { %v7658_v49 = vpop.f32.mrf.mxu1 }
0x2352   : > { %7676 = vmatpush3.bf16.msra.mxu0 %v8051_v3 }
0x2353   : > { %7687 = vmatprep.subr.bf16.mxu0 %v8244_v1 }
0x240d   : > { %v3919_v52 = vpop.f32.mrf.mxu0 }
0x240e   : > { %v3925_v54 = vadd.f32 %v3919_v52, %v3764_v37 }
0x240f   : > { %v7663_v55 = vpop.f32.mrf.mxu0 }
0x2410   : > { %v3933_v58 = vadd.f32 %v7023_v53, %v3925_v54 }
0x2411   : > { %v3922_v59 = vpop.f32.mrf.mxu0 }
0x2412   : > { %v3934_v60 = vadd.f32 %v3933_v58, %v8789_v16 }
0x2413   : > { %v7664_v61 = vpop.f32.mrf.mxu0 }
0x2414   : > { %v3937_v62 = vsel %vm1311_vm2, %v3934_v60, 0.0 }
0x2415   : > { %3938 = vadd.xlane.f32.xlu1 %v3937_v62 }
0x2419   : > { %3140 = vadd.xlane.f32.xlu1 %v3139_v0 }
0x249e   : > { %v3939_v4 = vpop.xlane.xlu1 %3938 }
0x249f   : > { %v3940_v16 = vmul.f32 0.03125, %v3939_v4 }
0x24a1   : > { %v3941_v5 = vsub.f32 %v3934_v60, %v3940_v16 }
0x24a2   : > { %v3141_v6 = vpop.xlane.xlu1 %3140 }
0x24a3   : > { %v3142_v7 = vmul.f32 0.03125, %v3141_v6  ;;  %v3942_v8 = vmul.f32 %v3941_v5, %v3941_v5 }
0x24a5   : > { %v3143_v9 = vadd.f32 1e-05, %v3142_v7  ;;  %v3943_v19 = vsel %vm1311_vm2, %v3942_v8, 0.0 }
0x24a6   : > { %3944 = vadd.xlane.f32.xlu1 %v3943_v19 }
0x24a7   : > { %8128 = vrsqrt.f32 %v3143_v9 }
0x24b4   : > { %v8129_v10 = vpop.eup %8128 }
0x24b5   : > { %v3145_v13 = vmul.f32 %v8129_v10, %v3137_v56 }
0x24b7   : > { %v3152_v15 = vmul.f32 %v7004_v12, %v3145_v13 }
0x24b9   : > { %v3159_v17 = vadd.f32 %v7005_v14, %v3152_v15 }
0x24bb   : > { %v8920_v18 = vpack.c.bf16 %v3159_v17, %v3159_v17 }
0x24bd   : > { %7678 = vmatmul.mubr.msk.bf16.vlgmr.msra.gmra.mxu0 %vm1311_vm2, %v8920_v18 }
0x24be   : > { %7689 = vmatprep.mubr.msk.bf16.mxu0 %vm8245_vm0, %v8244_v1 }
0x252f   : > { %v3945_v24 = vpop.xlane.xlu1 %3944 }
0x2530   : > { %v3946_v28 = vmul.f32 0.03125, %v3945_v24 }
0x2532   : > { %v3947_v25 = vadd.f32 1e-05, %v3946_v28  ;;  %v4098_v28 = vld [vmem:[%s9499_s23] sm:$0xff] }
0x2534   : > { %8130 = vrsqrt.f32 %v3947_v25  ;;  %v4213_v25 = vpack.c.bf16 %v4098_v28, %v4098_v28 }
0x2541   : > { %v8131_v26 = vpop.eup %8130 }
0x2542   : > { %v3949_v29 = vmul.f32 %v8131_v26, %v3941_v5  ;;  %v4378_v26 = vsel %vm1428_vm4, %v4213_v25, 0 }
0x2544   : > { %v3956_v32 = vmul.f32 %v7024_v27, %v3949_v29  ;;  %v4099_v27 = vld [vmem:[%s9499_s23 + $0x8] sm:$0xff] }
0x2545   : > { %v4327_v29 = vpack.c.bf16 %v4099_v27, %v4099_v27 }
0x2546   : > { %v8932_v33 = vadd.f32 %v7025_v31, %v3956_v32 }
0x2547   : > { %v4332_v31 = vsel %vm1428_vm4, %v4327_v29, 0 }
0x2548   : > { %v3968_v34 = vpack.c.bf16 %v8932_v33, %v8932_v33 }
0x254a   : > { %7670 = vmatmul.mubr.msk.bf16.vlgmr.msra.gmra.mxu1 %vm1311_vm2, %v3968_v34 }
0x254b   : > { %7683 = vmatprep.mubr.msk.bf16.mxu1 %vm8245_vm0, %v8244_v1 }
0x257d   : > { %v4092_v30 = vpop.f32.mrf.mxu0 }
0x257e   : > { %v4093_v36 = vadd.f32 %v7030_v35, %v4092_v30 }
0x257f   : > { %v7679_v37 = vpop.f32.mrf.mxu0 }
0x2580   : > { %v8940_v38 = vpack.c.bf16 %v4093_v36, %v4093_v36 }
0x2581   : > { %v4095_v39 = vpop.f32.mrf.mxu0 }
0x2582   : > { %4217 = vrot.lane.b32.xlu1 %v8940_v38, %s9496_s19  ;;  %v4108_v11 = vsel %vm1363_vm3, %v8940_v38, 0 }
0x2583   : > { %v7680_v40 = vpop.f32.mrf.mxu0  ;;  %7682 = vmatpush3.bf16.xpose.msra.mxu1 %v4108_v11 }
0x2584   : > { %7693 = vmatprep.subr.bf16.mxu1 %v8244_v1 }
0x25f4   : > { %v4218_v57 = vpop.permute.xlu1 %4217 }
0x25f5   : > { %v4223_v47 = vsel %vm1363_vm3, %v4218_v57, 0 }
0x260a   : > { %v4025_v43 = vpop.f32.mrf.mxu1 }
0x260b   : > { %v4026_v21 = vadd.f32 %v7026_v41, %v4025_v43 }
0x260c   : > { %v7671_v45 = vpop.f32.mrf.mxu1 }
0x260d   : > { %v8948_v46 = vpack.c.bf16 %v4026_v21, %v4026_v21 }
0x260e   : > { %v4028_v44 = vpop.f32.mrf.mxu1 }
0x260f   : > { %4215 = vrot.lane.b32.xlu0 %v8948_v46, %s9496_s19  ;;  %7684 = vmatmul.mubr.msk.bf16.vlgmr.msra.gmra.mxu1 %vm1363_vm3, %v8948_v46 }
0x2610   : > { %7694 = vmatpush3.bf16.xpose.msra.mxu1 %v4223_v47  ;;  %v7672_v22 = vpop.f32.mrf.mxu1  ;;  %7695 = vmatprep.mubr.msk.bf16.mxu1 %vm8245_vm0, %v8244_v1 }
0x2611   : > { %7705 = vmatprep.subr.bf16.mxu1 %v8244_v1 }
0x2681   : > { %v4216_v48 = vpop.permute.xlu0 %4215 }
0x2682   : > { %7696 = vmatmul.mubr.msk.bf16.vlgmr.msra.gmra.mxu1 %vm1363_vm3, %v4216_v48 }
0x2683   : > { %7707 = vmatprep.mubr.msk.bf16.mxu1 %vm8245_vm0, %v8244_v1  ;;  %7706 = vmatpush3.bf16.msra.mxu1 %v4332_v31 }
0x2684   : > { %7717 = vmatprep.subr.bf16.mxu1 %v8244_v1 }
0x26cf   : > { %v4144_v49 = vpop.f32.mrf.mxu1 }
0x26d0   : > { %v4150_v50 = vmul.f32 0.35355338, %v4144_v49 }
0x26d1   : > { %v7685_v51 = vpop.f32.mrf.mxu1 }
0x26d2   : > { %v4151_v52 = vsel %vm1363_vm3, %v4150_v50, -inf }
0x26d3   : > { %4152 = vmax.xlane.f32.xlu0 %v4151_v52  ;;  %v4147_v53 = vpop.f32.mrf.mxu1 }
0x26d5   : > { %v7686_v54 = vpop.f32.mrf.mxu1 }
0x2742   : > { %v4259_v55 = vpop.f32.mrf.mxu1 }
0x2743   : > { %v4265_v56 = vmul.f32 0.35355338, %v4259_v55 }
0x2744   : > { %v7697_v58 = vpop.f32.mrf.mxu1 }
0x2745   : > { %v4266_v59 = vsel %vm1363_vm3, %v4265_v56, -inf }
0x2746   : > { %4267 = vmax.xlane.f32.xlu1 %v4266_v59  ;;  %v4262_v60 = vpop.f32.mrf.mxu1 }
0x2748   : > { %v7698_v61 = vpop.f32.mrf.mxu1 }
0x2757   : > { %4278 = vrot.lane.b32.xlu1 %v8940_v38, %s9497_s20 }
0x275c   : > { %v4153_v62 = vpop.xlane.xlu0 %4152 }
0x275d   : > { %v4154_v63 = vsub.f32 %v4150_v50, %v4153_v62 }
0x275f   : > { %v4155_v0 = vmul.f32 1.442695, %v4154_v63 }
0x2761   : > { %8132 = vpow2.f32 %v4155_v0 }
0x276e   : > { %v8133_v2 = vpop.eup %8132 }
0x276f   : > { %v4157_v3 = vsel %vm1363_vm3, %v8133_v2, 0.0 }
0x2770   : > { %4158 = vadd.xlane.f32.xlu0 %v4157_v3 }
0x27cf   : > { %v4268_v4 = vpop.xlane.xlu1 %4267 }
0x27d0   : > { %v4269_v16 = vsub.f32 %v4265_v56, %v4268_v4 }
0x27d2   : > { %v4270_v5 = vmul.f32 1.442695, %v4269_v16 }
0x27d3   : > { %v4279_v14 = vpop.permute.xlu1 %4278 }
0x27d4   : > { %8134 = vpow2.f32 %v4270_v5  ;;  %v4284_v17 = vsel %vm1428_vm4, %v4279_v14, 0 }
0x27e1   : > { %v8135_v6 = vpop.eup %8134 }
0x27e2   : > { %v4272_v7 = vsel %vm1363_vm3, %v8135_v6, 0.0 }
0x27e3   : > { %4273 = vadd.xlane.f32.xlu0 %v4272_v7 }
0x27f9   : > { %4164 = vrot.lane.b32.xlu0 %v8940_v38, %s9498_s21  ;;  %v4159_v8 = vpop.xlane.xlu0 %4158 }
0x27fa   : > { %8136 = vrcp.f32 %v4159_v8 }
0x27fd   : > { %4422 = vrot.lane.b32.xlu0 %v8940_v38, %s9484_s10 }
0x2801   : > { %4420 = vrot.lane.b32.xlu0 %v8948_v46, %s9484_s10 }
0x2807   : > { %v8137_v9 = vpop.eup %8136 }
0x2808   : > { %v4161_v10 = vmul.f32 %v8137_v9, %v8133_v2  ;;  %v4100_v9 = vld [vmem:[%s9499_s23 + $0x10] sm:$0xff] }
0x280a   : > { %v4162_v15 = vpack.c.bf16 %v4161_v10, %v4161_v10 }
0x286c   : > { %v4274_v19 = vpop.xlane.xlu0 %4273 }
0x286d   : > { %8138 = vrcp.f32 %v4274_v19  ;;  %v4532_v19 = vpack.c.bf16 %v4100_v9, %v4100_v9 }
0x286f   : > { %v4537_v10 = vsel %vm1428_vm4, %v4532_v19, 0  ;;  %v7048_v19 = vld [vmem:[%s9504_s28] ss:$0 sm:$0xff]  ;;  %s9508_s28 = sld [smem:[#allocation38_spill]] }
0x2870   : > { %v4165_v12 = vpop.permute.xlu0 %4164 }
0x2871   : > { %v4170_v13 = vsel %vm1428_vm4, %v4165_v12, 0 }
0x2872   : > { %7688 = vmatpush3.bf16.msra.mxu0 %v4170_v13 }
0x2873   : > { %7699 = vmatprep.subr.bf16.mxu0 %v8244_v1 }
0x2874   : > { %v4423_v37 = vpop.permute.xlu0 %4422 }
0x2875   : > { %7690 = vmatmul.mubr.msk.bf16.vlgmr.msra.gmra.mxu0 %vm1363_vm3, %v4162_v15  ;;  %v4428_v41 = vsel %vm1363_vm3, %v4423_v37, 0  ;;  %s9509_s17 = smov %s9508_s28 }
0x2876   : > { %7700 = vmatpush3.bf16.msra.mxu0 %v4284_v17  ;;  %7701 = vmatprep.mubr.msk.bf16.mxu0 %vm8245_vm0, %v8244_v1 }
0x2877   : > { %7711 = vmatprep.subr.bf16.mxu0 %v8244_v1 }
0x2878   : > { %v4421_v57 = vpop.permute.xlu0 %4420 }
0x287a   : > { %v8139_v20 = vpop.eup %8138 }
0x287b   : > { %v4276_v23 = vmul.f32 %v8139_v20, %v8135_v6 }
0x287d   : > { %v4277_v24 = vpack.c.bf16 %v4276_v23, %v4276_v23 }
0x287f   : > { %7702 = vmatmul.mubr.msk.bf16.vlgmr.msra.gmra.mxu0 %vm1363_vm3, %v4277_v24 }
0x2880   : > { %7713 = vmatprep.mubr.msk.bf16.mxu0 %vm8245_vm0, %v8244_v1  ;;  %7712 = vmatpush3.bf16.msra.mxu0 %v4378_v26 }
0x2881   : > { %7723 = vmatprep.subr.bf16.mxu0 %v8244_v1 }
0x2935   : > { %v4206_v32 = vpop.f32.mrf.mxu0 }
0x2936   : > { %v4212_v34 = vpack.c.bf16 %v4206_v32, %v4206_v32 }
0x2937   : > { %v7691_v35 = vpop.f32.mrf.mxu0 }
0x2938   : > { %7714 = vmatmul.mubr.msk.bf16.vlgmr.msra.gmra.mxu0 %vm1363_vm3, %v4212_v34 }
0x2939   : > { %v4209_v30 = vpop.f32.mrf.mxu0  ;;  %7725 = vmatprep.mubr.msk.bf16.mxu0 %vm8245_vm0, %v8244_v1 }
0x293b   : > { %v7692_v36 = vpop.f32.mrf.mxu0 }
0x293f   : > { %v4320_v39 = vpop.f32.mrf.mxu0 }
0x2940   : > { %v4326_v11 = vpack.c.bf16 %v4320_v39, %v4320_v39 }
0x2941   : > { %v7703_v40 = vpop.f32.mrf.mxu0 }
0x2942   : > { %7708 = vmatmul.mubr.msk.bf16.vlgmr.msra.gmra.mxu1 %vm1363_vm3, %v4326_v11  ;;  %v4101_v11 = vld [vmem:[%s9499_s23 + $0x18] sm:$0xff] }
0x2943   : > { %7718 = vmatpush3.bf16.xpose.msra.mxu1 %v4428_v41  ;;  %v4323_v43 = vpop.f32.mrf.mxu0  ;;  %7719 = vmatprep.mubr.msk.bf16.mxu1 %vm8245_vm0, %v8244_v1 }
0x2944   : > { %7729 = vmatprep.subr.bf16.mxu1 %v8244_v1 }
0x2945   : > { %v7704_v21 = vpop.f32.mrf.mxu0 }
0x294a   : > { %7720 = vmatmul.mubr.msk.bf16.vlgmr.msra.gmra.mxu1 %vm1363_vm3, %v4421_v57 }
0x294b   : > { %7731 = vmatprep.mubr.msk.bf16.mxu1 %vm8245_vm0, %v8244_v1  ;;  %7730 = vmatpush3.bf16.msra.mxu1 %v4537_v10 }
0x294c   : > { %7741 = vmatprep.subr.bf16.mxu1 %v8244_v1 }
0x29f8   : > { %v4414_v45 = vpop.f32.mrf.mxu0 }
0x29fa   : > { %v7715_v44 = vpop.f32.mrf.mxu0 }
0x29fc   : > { %v4417_v47 = vpop.f32.mrf.mxu0 }
0x29fe   : > { %v7716_v22 = vpop.f32.mrf.mxu0 }
0x2a02   : > { %v4368_v48 = vpop.f32.mrf.mxu1 }
0x2a03   : > { %v9000_v49 = vadd.f32 %v4414_v45, %v4368_v48 }
0x2a04   : > { %v7709_v50 = vpop.f32.mrf.mxu1 }
0x2a06   : > { %v4371_v51 = vpop.f32.mrf.mxu1 }
0x2a08   : > { %v7710_v52 = vpop.f32.mrf.mxu1 }
0x2a09   : > { %v7046_v52 = vld [vmem:[%s9500_s24] ss:$0 sm:$0xff] }
0x2a0a   : > { %v4464_v53 = vpop.f32.mrf.mxu1 }
0x2a0b   : > { %v4470_v54 = vmul.f32 0.35355338, %v4464_v53 }
0x2a0c   : > { %v7721_v55 = vpop.f32.mrf.mxu1 }
0x2a0d   : > { %v4471_v56 = vsel %vm1363_vm3, %v4470_v54, -inf }
0x2a0e   : > { %4472 = vmax.xlane.f32.xlu1 %v4471_v56  ;;  %v4467_v58 = vpop.f32.mrf.mxu1 }
0x2a10   : > { %v7722_v59 = vpop.f32.mrf.mxu1 }
0x2a1f   : > { %4582 = vrot.lane.b32.xlu1 %v8940_v38, %s9487_s15 }
0x2a23   : > { %4580 = vrot.lane.b32.xlu1 %v8948_v46, %s9487_s15 }
0x2a97   : > { %v4473_v60 = vpop.xlane.xlu1 %4472 }
0x2a98   : > { %v4474_v61 = vsub.f32 %v4470_v54, %v4473_v60 }
0x2a9a   : > { %v4475_v62 = vmul.f32 1.442695, %v4474_v61 }
0x2a9b   : > { %v4583_v5 = vpop.permute.xlu1 %4582 }
0x2a9c   : > { %8140 = vpow2.f32 %v4475_v62  ;;  %v4588_v7 = vsel %vm1363_vm3, %v4583_v5, 0 }
0x2a9f   : > { %v4581_v8 = vpop.permute.xlu1 %4580 }
0x2aa9   : > { %v8141_v63 = vpop.eup %8140 }
0x2aaa   : > { %v4477_v0 = vsel %vm1363_vm3, %v8141_v63, 0.0 }
0x2aab   : > { %4478 = vadd.xlane.f32.xlu0 %v4477_v0 }
0x2ac1   : > { %4483 = vrot.lane.b32.xlu0 %v8940_v38, %s9485_s11 }
0x2b34   : > { %v4479_v2 = vpop.xlane.xlu0 %4478 }
0x2b35   : > { %8142 = vrcp.f32 %v4479_v2 }
0x2b38   : > { %v4484_v3 = vpop.permute.xlu0 %4483 }
0x2b39   : > { %v4489_v4 = vsel %vm1428_vm4, %v4484_v3, 0  ;;  %v8054_v3 = vld [vmem:[%s9501_s25 + $0x8] sm:$0xff]  }
0x2b3a   : > { %7724 = vmatpush3.bf16.msra.mxu0 %v4489_v4  ;;  %v8055_v4 = vld [vmem:[%s9501_s25] sm:$0xff]  }
0x2b3b   : > { %7735 = vmatprep.subr.bf16.mxu0 %v8244_v1 }
0x2b42   : > { %v8143_v46 = vpop.eup %8142 }
0x2b43   : > { %v4481_v16 = vmul.f32 %v8143_v46, %v8141_v63  ;;  %v8057_v46 = vld [vmem:[%s9502_s29 + $0x10] sm:$0xff]  }
0x2b45   : > { %v4482_v6 = vpack.c.bf16 %v4481_v16, %v4481_v16 }
0x2b47   : > { %7726 = vmatmul.mubr.msk.bf16.vlgmr.msra.gmra.mxu0 %vm1363_vm3, %v4482_v6 }
0x2b48   : > { %7736 = vmatpush3.bf16.xpose.msra.mxu0 %v4588_v7  ;;  %7737 = vmatprep.mubr.msk.bf16.mxu0 %vm8245_vm0, %v8244_v1 }
0x2b49   : > { %7747 = vmatprep.subr.bf16.mxu0 %v8244_v1 }
0x2b4f   : > { %7738 = vmatmul.mubr.msk.bf16.vlgmr.msra.gmra.mxu0 %vm1363_vm3, %v4581_v8  ;;  %v7047_v8 = vld [vmem:[%s9503_s30] ss:$0 sm:$0xff] }
0x2b50   : > { %7749 = vmatprep.mubr.msk.bf16.mxu0 %vm8245_vm0, %v8244_v1 }
0x2c07   : > { %v4525_v12 = vpop.f32.mrf.mxu0 }
0x2c08   : > { %v4531_v13 = vpack.c.bf16 %v4525_v12, %v4525_v12 }
0x2c09   : > { %v7727_v14 = vpop.f32.mrf.mxu0 }
0x2c0a   : > { %7732 = vmatmul.mubr.msk.bf16.vlgmr.msra.gmra.mxu1 %vm1363_vm3, %v4531_v13  ;;  %v8058_v14 = vld [vmem:[%s9502_s29 + $0x8] sm:$0xff]  }
0x2c0b   : > { %v4528_v15 = vpop.f32.mrf.mxu0  ;;  %7743 = vmatprep.mubr.msk.bf16.mxu1 %vm8245_vm0, %v8244_v1 }
0x2c0c   : > { %v8059_v15 = vld [vmem:[%s9502_s29] sm:$0xff]  }
0x2c0d   : > { %v7728_v17 = vpop.f32.mrf.mxu0 }
0x2c0e   : > { %v7049_v17 = vld [vmem:[%s9506_s0] ss:$0 sm:$0xff] }
0x2c0f   : > { %v4624_v20 = vpop.f32.mrf.mxu0 }
0x2c10   : > { %v4630_v23 = vmul.f32 0.35355338, %v4624_v20 }
0x2c11   : > { %v7739_v24 = vpop.f32.mrf.mxu0 }
0x2c12   : > { %v4631_v28 = vsel %vm1363_vm3, %v4630_v23, -inf }
0x2c13   : > { %4632 = vmax.xlane.f32.xlu0 %v4631_v28  ;;  %v4627_v25 = vpop.f32.mrf.mxu0 }
0x2c15   : > { %v7740_v26 = vpop.f32.mrf.mxu0 }
0x2c29   : > { %4643 = vrot.lane.b32.xlu0 %v8940_v38, %s9477_s22  ;;  %v4692_v38 = vpack.c.bf16 %v4101_v11, %v4101_v11 }
0x2c2b   : > { %v4697_v41 = vsel %vm1428_vm4, %v4692_v38, 0 }
0x2c2c   : > { %7748 = vmatpush3.bf16.msra.mxu0 %v4697_v41 }
0x2c2d   : > { %7761 = vmatprep.subr.bf16.mxu0 %v8244_v1 }
0x2c9c   : > { %v4633_v27 = vpop.xlane.xlu0 %4632 }
0x2c9d   : > { %v4634_v29 = vsub.f32 %v4630_v23, %v4633_v27 }
0x2c9f   : > { %v4635_v31 = vmul.f32 1.442695, %v4634_v29  ;;  %v7053_v29 = vld [vmem:[%s9507_s9] ss:$0 sm:$0xff] }
0x2ca0   : > { %v4644_v32 = vpop.permute.xlu0 %4643 }
0x2ca1   : > { %8144 = vpow2.f32 %v4635_v31  ;;  %v4649_v34 = vsel %vm1428_vm4, %v4644_v32, 0 }
0x2ca2   : > { %7742 = vmatpush3.bf16.msra.mxu1 %v4649_v34 }
0x2ca3   : > { %7753 = vmatprep.subr.bf16.mxu1 %v8244_v1 }
0x2cae   : > { %v8145_v35 = vpop.eup %8144 }
0x2caf   : > { %v4637_v30 = vsel %vm1363_vm3, %v8145_v35, 0.0 }
0x2cb0   : > { %4638 = vadd.xlane.f32.xlu1 %v4637_v30 }
0x2cca   : > { %v4573_v36 = vpop.f32.mrf.mxu1 }
0x2ccb   : > { %v4579_v37 = vadd.f32 %v4573_v36, %v9000_v49 }
0x2ccc   : > { %v7733_v39 = vpop.f32.mrf.mxu1 }
0x2cce   : > { %v4576_v40 = vpop.f32.mrf.mxu1 }
0x2cd0   : > { %v7734_v43 = vpop.f32.mrf.mxu1 }
0x2cd1   : > { %v8060_v43 = vld [vmem:[%s9480_s16 + $0x18] sm:$0xff]  }
0x2d39   : > { %v4639_v21 = vpop.xlane.xlu1 %4638 }
0x2d3a   : > { %8146 = vrcp.f32 %v4639_v21  ;;  %v8061_v21 = vld [vmem:[%s9480_s16 + $0x10] sm:$0xff]  }
0x2d47   : > { %v8147_v57 = vpop.eup %8146 }
0x2d48   : > { %v4641_v45 = vmul.f32 %v8147_v57, %v8145_v35 }
0x2d4a   : > { %v4642_v44 = vpack.c.bf16 %v4641_v45, %v4641_v45 }
0x2d4c   : > { %7744 = vmatmul.mubr.msk.bf16.vlgmr.msra.gmra.mxu1 %vm1363_vm3, %v4642_v44 }
0x2d4d   : > { %7757 = vmatprep.mubr.msk.bf16.mxu1 %vm8245_vm0, %v8244_v1  ;;  %7754 = vmatpush3.bf16.msra.mxu1 %v8054_v3 }
0x2d4e   : > { %7755 = vmatprep.subr.bf16.mxu1 %v8244_v1 }
0x2d51   : > { %7756 = vmatpush3.bf16.msra.mxu1 %v8055_v4 }
0x2d52   : > { %7773 = vmatprep.subr.bf16.mxu1 %v8244_v1 }
0x2e0c   : > { %v4685_v47 = vpop.f32.mrf.mxu1 }
0x2e0d   : > { %v4691_v22 = vpack.c.bf16 %v4685_v47, %v4685_v47 }
0x2e0e   : > { %v7745_v48 = vpop.f32.mrf.mxu1 }
0x2e0f   : > { %7750 = vmatmul.mubr.msk.bf16.vlgmr.msra.gmra.mxu0 %vm1363_vm3, %v4691_v22  ;;  %v7059_v22 = vld [vmem:[%s9508_s28] ss:$0 sm:$0xff] }
0x2e10   : > { %v4688_v49 = vpop.f32.mrf.mxu1  ;;  %7769 = vmatprep.mubr.msk.bf16.mxu0 %vm8245_vm0, %v8244_v1 }
0x2e11   : > { %v7060_v49 = vld [vmem:[%s8451_s4] ss:$0 sm:$0xff] }
0x2e12   : > { %v7746_v50 = vpop.f32.mrf.mxu1 }
0x2ecf   : > { %v4733_v51 = vpop.f32.mrf.mxu0 }
0x2ed0   : > { %v4739_v53 = vadd.f32 %v4733_v51, %v4579_v37 }
0x2ed1   : > { %v7751_v54 = vpop.f32.mrf.mxu0 }
0x2ed2   : > { %v4747_v55 = vadd.f32 %v7046_v52, %v4739_v53  ;;  %v7066_v53 = vld [vmem:[%s9482_s18 + $0x1] ss:$0 sm:$0xff] }
0x2ed3   : > { %v4736_v56 = vpop.f32.mrf.mxu0 }
0x2ed4   : > { %v4748_v58 = vadd.f32 %v4747_v55, %v8932_v33  ;;  %v8056_v33 = vld [vmem:[%s9502_s29 + $0x18] sm:$0xff]  }
0x2ed5   : > { %v7752_v59 = vpop.f32.mrf.mxu0  ;;  %7762 = vmatpush3.bf16.msra.mxu0 %v8056_v33 }
0x2ed6   : > { %v4751_v60 = vsel %vm1311_vm2, %v4748_v58, 0.0  ;;  %7763 = vmatprep.subr.bf16.mxu0 %v8244_v1 }
0x2ed7   : > { %4752 = vadd.xlane.f32.xlu1 %v4751_v60 }
0x2ed9   : > { %7764 = vmatpush3.bf16.msra.mxu0 %v8057_v46 }
0x2eda   : > { %7765 = vmatprep.subr.bf16.mxu0 %v8244_v1 }
0x2edd   : > { %7766 = vmatpush3.bf16.msra.mxu0 %v8058_v14 }
0x2ede   : > { %7767 = vmatprep.subr.bf16.mxu0 %v8244_v1 }
0x2ee1   : > { %7768 = vmatpush3.bf16.msra.mxu0 %v8059_v15 }
0x2ee2   : > { %7787 = vmatprep.subr.bf16.mxu0 %v8244_v1 }
0x2f60   : > { %v4753_v61 = vpop.xlane.xlu1 %4752 }
0x2f61   : > { %v4754_v62 = vmul.f32 0.03125, %v4753_v61 }
0x2f63   : > { %v4755_v63 = vsub.f32 %v4748_v58, %v4754_v62 }
0x2f65   : > { %v4756_v0 = vmul.f32 %v4755_v63, %v4755_v63 }
0x2f67   : > { %v4757_v2 = vsel %vm1311_vm2, %v4756_v0, 0.0 }
0x2f68   : > { %4758 = vadd.xlane.f32.xlu1 %v4757_v2 }
0x2ff1   : > { %v4759_v16 = vpop.xlane.xlu1 %4758 }
0x2ff2   : > { %v4760_v5 = vmul.f32 0.03125, %v4759_v16 }
0x2ff4   : > { %v4761_v6 = vadd.f32 1e-05, %v4760_v5 }
0x2ff6   : > { %8148 = vrsqrt.f32 %v4761_v6 }
0x3003   : > { %v8149_v7 = vpop.eup %8148 }
0x3004   : > { %v4763_v9 = vmul.f32 %v8149_v7, %v4755_v63 }
0x3006   : > { %v4770_v10 = vmul.f32 %v7047_v8, %v4763_v9 }
0x3008   : > { %v4777_v12 = vadd.f32 %v7048_v19, %v4770_v10 }
0x300a   : > { %v4782_v13 = vpack.c.bf16 %v4777_v12, %v4777_v12 }
0x300c   : > { %7758 = vmatmul.mubr.msk.bf16.vlgmr.msra.gmra.mxu1 %vm1311_vm2, %v4782_v13 }
0x300d   : > { %7777 = vmatprep.mubr.msk.bf16.mxu1 %vm8245_vm0, %v8244_v1  ;;  %7774 = vmatpush3.bf16.msra.mxu1 %v8060_v43 }
0x300e   : > { %7775 = vmatprep.subr.bf16.mxu1 %v8244_v1 }
0x3011   : > { %7776 = vmatpush3.bf16.msra.mxu1 %v8061_v21 }
0x3012   : > { %7781 = vmatprep.subr.bf16.mxu1 %v8244_v1 }
0x30cc   : > { %v4839_v20 = vpop.f32.mrf.mxu1 }
0x30cd   : > { %v4840_v23 = vadd.f32 %v7049_v17, %v4839_v20 }
0x30ce   : > { %v7759_v24 = vpop.f32.mrf.mxu1 }
0x30cf   : > { %v4845_v28 = vmax.f32 %v4840_v23, 0.0 }
0x30d0   : > { %v4842_v25 = vpop.f32.mrf.mxu1 }
0x30d1   : > { %v4854_v26 = vpack.c.bf16 %v4845_v28, %v4845_v28 }
0x30d2   : > { %v7760_v27 = vpop.f32.mrf.mxu1 }
0x30d3   : > { %7770 = vmatmul.mubr.msk.bf16.vlgmr.msra.gmra.mxu0 %vm2146_vm5, %v4854_v26 }
0x30d4   : > { %7789 = vmatprep.mubr.msk.bf16.mxu0 %vm8245_vm0, %v8244_v1 }
0x3193   : > { %v4923_v31 = vpop.f32.mrf.mxu0 }
0x3194   : > { %v4924_v32 = vadd.f32 %v7053_v29, %v4923_v31 }
0x3195   : > { %v7771_v34 = vpop.f32.mrf.mxu0 }
0x3196   : > { %v4929_v35 = vadd.f32 %v4924_v32, %v4777_v12 }
0x3197   : > { %v4926_v30 = vpop.f32.mrf.mxu0 }
0x3198   : > { %v4932_v36 = vsel %vm1311_vm2, %v4929_v35, 0.0 }
0x3199   : > { %4933 = vadd.xlane.f32.xlu1 %v4932_v36  ;;  %v7772_v37 = vpop.f32.mrf.mxu0 }
0x3222   : > { %v4934_v39 = vpop.xlane.xlu1 %4933 }
0x3223   : > { %v4935_v11 = vmul.f32 0.03125, %v4934_v39 }
0x3225   : > { %v4936_v38 = vsub.f32 %v4929_v35, %v4935_v11 }
0x3227   : > { %v4937_v40 = vmul.f32 %v4936_v38, %v4936_v38 }
0x3229   : > { %v4938_v41 = vsel %vm1311_vm2, %v4937_v40, 0.0 }
0x322a   : > { %4939 = vadd.xlane.f32.xlu1 %v4938_v41  ;;  %v7070_v41 = vld [vmem:[%s9486_s7 + $0x20] sm:$0xff] }
0x322b   : > { %v5146_v43 = vpack.c.bf16 %v7070_v41, %v7070_v41 }
0x322d   : > { %v5311_v21 = vsel %vm1428_vm4, %v5146_v43, 0 }
0x32b3   : > { %v4940_v57 = vpop.xlane.xlu1 %4939 }
0x32b4   : > { %v4941_v45 = vmul.f32 0.03125, %v4940_v57  ;;  %v7071_v57 = vld [vmem:[%s9486_s7 + $0x28] sm:$0xff] }
0x32b6   : > { %v4942_v44 = vadd.f32 1e-05, %v4941_v45  ;;  %v5260_v45 = vpack.c.bf16 %v7071_v57, %v7071_v57 }
0x32b8   : > { %8150 = vrsqrt.f32 %v4942_v44  ;;  %v5265_v44 = vsel %vm1428_vm4, %v5260_v45, 0 }
0x32c5   : > { %v8151_v47 = vpop.eup %8150 }
0x32c6   : > { %v4944_v48 = vmul.f32 %v8151_v47, %v4936_v38 }
0x32c8   : > { %v4951_v50 = vmul.f32 %v7059_v22, %v4944_v48 }
0x32ca   : > { %v9076_v51 = vadd.f32 %v7060_v49, %v4951_v50 }
0x32cc   : > { %v4964_v52 = vpack.c.bf16 %v9076_v51, %v9076_v51 }
0x32ce   : > { %7778 = vmatmul.mubr.msk.bf16.vlgmr.msra.gmra.mxu1 %vm1311_vm2, %v4964_v52 }
0x32cf   : > { %7783 = vmatprep.mubr.msk.bf16.mxu1 %vm8245_vm0, %v8244_v1 }
0x338e   : > { %v5022_v54 = vpop.f32.mrf.mxu1 }
0x338f   : > { %v5023_v55 = vadd.f32 %v7066_v53, %v5022_v54 }
0x3390   : > { %v7779_v56 = vpop.f32.mrf.mxu1 }
0x3391   : > { %v9084_v58 = vpack.c.bf16 %v5023_v55, %v5023_v55 }
0x3392   : > { %v5025_v59 = vpop.f32.mrf.mxu1 }
0x3393   : > { %5149 = vrot.lane.b32.xlu0 %v9084_v58, %s9497_s20  ;;  %5035 = vrot.lane.b32.xlu1 %v9084_v58, %s9498_s21 }
0x3394   : > { %v7780_v60 = vpop.f32.mrf.mxu1 }
0x3397   : > { %5147 = vrot.lane.b32.xlu0 %v9084_v58, %s9496_s19 }
0x3405   : > { %v5036_v61 = vpop.permute.xlu1 %5035  ;;  %v5150_v63 = vpop.permute.xlu0 %5149 }
0x3406   : > { %v5041_v62 = vsel %vm1363_vm3, %v5036_v61, 0  ;;  %v5155_v0 = vsel %vm1363_vm3, %v5150_v63, 0 }
0x3407   : > { %7782 = vmatpush3.bf16.xpose.msra.mxu1 %v5041_v62 }
0x3408   : > { %7793 = vmatprep.subr.bf16.mxu1 %v8244_v1 }
0x3409   : > { %v5148_v2 = vpop.permute.xlu0 %5147 }
0x340e   : > { %7784 = vmatmul.mubr.msk.bf16.vlgmr.msra.gmra.mxu1 %vm1363_vm3, %v9084_v58 }
0x340f   : > { %7794 = vmatpush3.bf16.xpose.msra.mxu1 %v5155_v0  ;;  %7795 = vmatprep.mubr.msk.bf16.mxu1 %vm8245_vm0, %v8244_v1 }
0x3410   : > { %7805 = vmatprep.subr.bf16.mxu1 %v8244_v1 }
0x3416   : > { %7796 = vmatmul.mubr.msk.bf16.vlgmr.msra.gmra.mxu1 %vm1363_vm3, %v5148_v2 }
0x3417   : > { %7807 = vmatprep.mubr.msk.bf16.mxu1 %vm8245_vm0, %v8244_v1  ;;  %7806 = vmatpush3.bf16.msra.mxu1 %v5265_v44 }
0x3418   : > { %7817 = vmatprep.subr.bf16.mxu1 %v8244_v1 }
0x34ce   : > { %v5077_v3 = vpop.f32.mrf.mxu1 }
0x34cf   : > { %v5083_v4 = vmul.f32 0.35355338, %v5077_v3 }
0x34d0   : > { %v7785_v33 = vpop.f32.mrf.mxu1 }
0x34d1   : > { %v5084_v46 = vadd.f32 %v5083_v4, %v8818_v42 }
0x34d2   : > { %v5080_v16 = vpop.f32.mrf.mxu1 }
0x34d3   : > { %v5085_v5 = vsel %vm1363_vm3, %v5084_v46, -inf }
0x34d4   : > { %5086 = vmax.xlane.f32.xlu0 %v5085_v5  ;;  %v7786_v6 = vpop.f32.mrf.mxu1 }
0x34d6   : > { %v5191_v7 = vpop.f32.mrf.mxu1 }
0x34d7   : > { %v5197_v8 = vmul.f32 0.35355338, %v5191_v7 }
0x34d8   : > { %v7797_v9 = vpop.f32.mrf.mxu1 }
0x34d9   : > { %v5198_v19 = vadd.f32 %v5197_v8, %v8818_v42 }
0x34da   : > { %v5194_v10 = vpop.f32.mrf.mxu1 }
0x34db   : > { %v5199_v12 = vsel %vm1363_vm3, %v5198_v19, -inf }
0x34dc   : > { %5200 = vmax.xlane.f32.xlu1 %v5199_v12  ;;  %v7798_v13 = vpop.f32.mrf.mxu1 }
0x34ed   : > { %5211 = vrot.lane.b32.xlu1 %v9084_v58, %s9483_s26  ;;  %s9510_s26 = smov 64  }
0x34f1   : > { %5353 = vrot.lane.b32.xlu1 %v9084_v58, %s9484_s10 }
0x355d   : > { %v5087_v14 = vpop.xlane.xlu0 %5086 }
0x355e   : > { %v5088_v15 = vsub.f32 %v5084_v46, %v5087_v14 }
0x3560   : > { %v5089_v17 = vmul.f32 1.442695, %v5088_v15 }
0x3562   : > { %8152 = vpow2.f32 %v5089_v17 }
0x3565   : > { %v5201_v20 = vpop.xlane.xlu1 %5200 }
0x3566   : > { %v5202_v23 = vsub.f32 %v5198_v19, %v5201_v20 }
0x3568   : > { %v5203_v24 = vmul.f32 1.442695, %v5202_v23 }
0x3569   : > { %v5212_v36 = vpop.permute.xlu1 %5211 }
0x356a   : > { %8154 = vpow2.f32 %v5203_v24  ;;  %v5217_v39 = vsel %vm1428_vm4, %v5212_v36, 0 }
0x356d   : > { %v5354_v61 = vpop.permute.xlu1 %5353 }
0x356f   : > { %v8153_v28 = vpop.eup %8152 }
0x3570   : > { %v5091_v25 = vsel %vm1363_vm3, %v8153_v28, 0.0 }
0x3571   : > { %5092 = vadd.xlane.f32.xlu0 %v5091_v25 }
0x3577   : > { %v8155_v26 = vpop.eup %8154 }
0x3578   : > { %v5205_v27 = vsel %vm1363_vm3, %v8155_v26, 0.0 }
0x3579   : > { %5206 = vadd.xlane.f32.xlu0 %v5205_v27 }
0x358f   : > { %5097 = vrot.lane.b32.xlu0 %v9084_v58, %s9510_s26 }
0x3593   : > { %5355 = vrot.lane.b32.xlu0 %v9084_v58, %s9485_s11 }
0x35fa   : > { %v5093_v29 = vpop.xlane.xlu0 %5092 }
0x35fb   : > { %8156 = vrcp.f32 %v5093_v29 }
0x3602   : > { %v5207_v31 = vpop.xlane.xlu0 %5206 }
0x3603   : > { %8158 = vrcp.f32 %v5207_v31 }
0x3606   : > { %v5098_v32 = vpop.permute.xlu0 %5097 }
0x3607   : > { %v5103_v34 = vsel %vm1428_vm4, %v5098_v32, 0  ;;  %v7072_v32 = vld [vmem:[%s9486_s7 + $0x30] sm:$0xff] }
0x3608   : > { %v8157_v35 = vpop.eup %8156  ;;  %7788 = vmatpush3.bf16.msra.mxu0 %v5103_v34  ;;  %v5466_v34 = vpack.c.bf16 %v7072_v32, %v7072_v32  ;;  %v8065_v32 = vld [vmem:[%s9491_s8 + $0x10] sm:$0xff]  }
0x3609   : > { %v5095_v30 = vmul.f32 %v8157_v35, %v8153_v28  ;;  %7799 = vmatprep.subr.bf16.mxu0 %v8244_v1 }
0x360a   : > { %v5356_v52 = vpop.permute.xlu0 %5355  ;;  %v5471_v35 = vsel %vm1428_vm4, %v5466_v34, 0 }
0x360b   : > { %v5096_v37 = vpack.c.bf16 %v5095_v30, %v5095_v30  ;;  %v5361_v56 = vsel %vm1363_vm3, %v5356_v52, 0 }
0x360d   : > { %7790 = vmatmul.mubr.msk.bf16.vlgmr.msra.gmra.mxu0 %vm1363_vm3, %v5096_v37 }
0x360e   : > { %7800 = vmatpush3.bf16.msra.mxu0 %v5217_v39  ;;  %7801 = vmatprep.mubr.msk.bf16.mxu0 %vm8245_vm0, %v8244_v1 }
0x360f   : > { %7811 = vmatprep.subr.bf16.mxu0 %v8244_v1 }
0x3610   : > { %v8159_v11 = vpop.eup %8158 }
0x3611   : > { %v5209_v38 = vmul.f32 %v8159_v11, %v8155_v26 }
0x3613   : > { %v5210_v40 = vpack.c.bf16 %v5209_v38, %v5209_v38 }
0x3615   : > { %7802 = vmatmul.mubr.msk.bf16.vlgmr.msra.gmra.mxu0 %vm1363_vm3, %v5210_v40 }
0x3616   : > { %7813 = vmatprep.mubr.msk.bf16.mxu0 %vm8245_vm0, %v8244_v1  ;;  %7812 = vmatpush3.bf16.msra.mxu0 %v5311_v21 }
0x3617   : > { %7823 = vmatprep.subr.bf16.mxu0 %v8244_v1 }
0x36cd   : > { %v5139_v47 = vpop.f32.mrf.mxu0 }
0x36ce   : > { %v5145_v22 = vpack.c.bf16 %v5139_v47, %v5139_v47 }
0x36cf   : > { %v7791_v48 = vpop.f32.mrf.mxu0 }
0x36d0   : > { %7814 = vmatmul.mubr.msk.bf16.vlgmr.msra.gmra.mxu0 %vm1363_vm3, %v5145_v22 }
0x36d1   : > { %v5142_v49 = vpop.f32.mrf.mxu0  ;;  %7825 = vmatprep.mubr.msk.bf16.mxu0 %vm8245_vm0, %v8244_v1 }
0x36d3   : > { %v7792_v50 = vpop.f32.mrf.mxu0 }
0x36d5   : > { %v5253_v53 = vpop.f32.mrf.mxu0 }
0x36d6   : > { %v5259_v54 = vpack.c.bf16 %v5253_v53, %v5253_v53 }
0x36d7   : > { %v7803_v55 = vpop.f32.mrf.mxu0 }
0x36d8   : > { %7808 = vmatmul.mubr.msk.bf16.vlgmr.msra.gmra.mxu1 %vm1363_vm3, %v5259_v54  ;;  %v7073_v54 = vld [vmem:[%s9486_s7 + $0x38] sm:$0xff] }
0x36d9   : > { %7818 = vmatpush3.bf16.xpose.msra.mxu1 %v5361_v56  ;;  %v5256_v59 = vpop.f32.mrf.mxu0  ;;  %7819 = vmatprep.mubr.msk.bf16.mxu1 %vm8245_vm0, %v8244_v1  ;;  %v5627_v55 = vpack.c.bf16 %v7073_v54, %v7073_v54 }
0x36da   : > { %7829 = vmatprep.subr.bf16.mxu1 %v8244_v1 }
0x36db   : > { %v7804_v60 = vpop.f32.mrf.mxu0  ;;  %v5632_v59 = vsel %vm1428_vm4, %v5627_v55, 0 }
0x36e0   : > { %7820 = vmatmul.mubr.msk.bf16.vlgmr.msra.gmra.mxu1 %vm1363_vm3, %v5354_v61 }
0x36e1   : > { %7831 = vmatprep.mubr.msk.bf16.mxu1 %vm8245_vm0, %v8244_v1  ;;  %7830 = vmatpush3.bf16.msra.mxu1 %v5471_v35 }
0x36e2   : > { %7841 = vmatprep.subr.bf16.mxu1 %v8244_v1 }
0x3790   : > { %v5347_v62 = vpop.f32.mrf.mxu0 }
0x3792   : > { %v7815_v63 = vpop.f32.mrf.mxu0 }
0x3794   : > { %v5350_v0 = vpop.f32.mrf.mxu0 }
0x3796   : > { %v7816_v2 = vpop.f32.mrf.mxu0 }
0x3798   : > { %v5301_v3 = vpop.f32.mrf.mxu1 }
0x3799   : > { %v9144_v4 = vadd.f32 %v5347_v62, %v5301_v3  ;;  %v8062_v3 = vld [vmem:[%s9490_s6 + $0x18] sm:$0xff]  }
0x379a   : > { %v7809_v33 = vpop.f32.mrf.mxu1 }
0x379c   : > { %v5304_v46 = vpop.f32.mrf.mxu1 }
0x379e   : > { %v7810_v16 = vpop.f32.mrf.mxu1 }
0x379f   : > { %v8063_v16 = vld [vmem:[%s9490_s6 + $0x10] sm:$0xff]  }
0x37a0   : > { %v5397_v5 = vpop.f32.mrf.mxu1 }
0x37a1   : > { %v5403_v6 = vmul.f32 0.35355338, %v5397_v5 }
0x37a2   : > { %v7821_v7 = vpop.f32.mrf.mxu1 }
0x37a3   : > { %v5404_v8 = vadd.f32 %v5403_v6, %v8818_v42  ;;  %v7087_v7 = vld [vmem:[%s9489_s5 + $0x1] ss:$0 sm:$0xff] }
0x37a4   : > { %v5400_v9 = vpop.f32.mrf.mxu1 }
0x37a5   : > { %v5405_v19 = vsel %vm1363_vm3, %v5404_v8, -inf }
0x37a6   : > { %5406 = vmax.xlane.f32.xlu0 %v5405_v19  ;;  %v7822_v10 = vpop.f32.mrf.mxu1 }
0x37bc   : > { %5417 = vrot.lane.b32.xlu0 %v9084_v58, %s9488_s3  ;;  %s9512_s3 = sld [smem:[#allocation40_spill]] }
0x37c0   : > { %5514 = vrot.lane.b32.xlu0 %v9084_v58, %s9487_s15 }
0x382f   : > { %v5407_v12 = vpop.xlane.xlu0 %5406 }
0x3830   : > { %v5408_v13 = vsub.f32 %v5404_v8, %v5407_v12 }
0x3832   : > { %v5409_v14 = vmul.f32 1.442695, %v5408_v13 }
0x3833   : > { %v5418_v15 = vpop.permute.xlu0 %5417 }
0x3834   : > { %8160 = vpow2.f32 %v5409_v14  ;;  %v5423_v17 = vsel %vm1428_vm4, %v5418_v15, 0 }
0x3835   : > { %7824 = vmatpush3.bf16.msra.mxu0 %v5423_v17 }
0x3836   : > { %7835 = vmatprep.subr.bf16.mxu0 %v8244_v1 }
0x3837   : > { %v5515_v31 = vpop.permute.xlu0 %5514 }
0x3841   : > { %v8161_v20 = vpop.eup %8160 }
0x3842   : > { %v5411_v23 = vsel %vm1363_vm3, %v8161_v20, 0.0 }
0x3843   : > { %5412 = vadd.xlane.f32.xlu1 %v5411_v23 }
0x3854   : > { %5516 = vrot.lane.b32.xlu1 %v9084_v58, %s9477_s22 }
0x38cc   : > { %v5413_v24 = vpop.xlane.xlu1 %5412 }
0x38cd   : > { %8162 = vrcp.f32 %v5413_v24 }
0x38d0   : > { %v5517_v26 = vpop.permute.xlu1 %5516 }
0x38d1   : > { %v5522_v29 = vsel %vm1363_vm3, %v5517_v26, 0 }
0x38da   : > { %v8163_v28 = vpop.eup %8162 }
0x38db   : > { %v5415_v25 = vmul.f32 %v8163_v28, %v8161_v20 }
0x38dd   : > { %v5416_v27 = vpack.c.bf16 %v5415_v25, %v5415_v25 }
0x38df   : > { %7826 = vmatmul.mubr.msk.bf16.vlgmr.msra.gmra.mxu0 %vm1363_vm3, %v5416_v27  ;;  %v7106_v27 = vld [vmem:[%s9494_s2 + $0x1] ss:$0 sm:$0xff] }
0x38e0   : > { %7836 = vmatpush3.bf16.xpose.msra.mxu0 %v5522_v29  ;;  %7837 = vmatprep.mubr.msk.bf16.mxu0 %vm8245_vm0, %v8244_v1 }
0x38e1   : > { %7847 = vmatprep.subr.bf16.mxu0 %v8244_v1 }
0x38e7   : > { %7838 = vmatmul.mubr.msk.bf16.vlgmr.msra.gmra.mxu0 %vm1363_vm3, %v5515_v31  ;;  %v8064_v31 = vld [vmem:[%s9491_s8 + $0x18] sm:$0xff]  }
0x38e8   : > { %7849 = vmatprep.mubr.msk.bf16.mxu0 %vm8245_vm0, %v8244_v1  ;;  %7848 = vmatpush3.bf16.msra.mxu0 %v5632_v59 }
0x38e9   : > { %7861 = vmatprep.subr.bf16.mxu0 %v8244_v1 }
0x399f   : > { %v5459_v30 = vpop.f32.mrf.mxu0 }
0x39a0   : > { %v5465_v36 = vpack.c.bf16 %v5459_v30, %v5459_v30 }
0x39a1   : > { %v7827_v37 = vpop.f32.mrf.mxu0 }
0x39a2   : > { %7832 = vmatmul.mubr.msk.bf16.vlgmr.msra.gmra.mxu1 %vm1363_vm3, %v5465_v36  ;;  %v7090_v37 = vld [vmem:[%s9492_s12 + $0x1] ss:$0 sm:$0xff] }
0x39a3   : > { %v5462_v39 = vpop.f32.mrf.mxu0  ;;  %7843 = vmatprep.mubr.msk.bf16.mxu1 %vm8245_vm0, %v8244_v1 }
0x39a5   : > { %v7828_v11 = vpop.f32.mrf.mxu0 }
0x39a6   : > { %v7091_v11 = vld [vmem:[%s9493_s13 + $0x1] ss:$0 sm:$0xff] }
0x39a7   : > { %v5558_v38 = vpop.f32.mrf.mxu0 }
0x39a8   : > { %v5564_v40 = vmul.f32 0.35355338, %v5558_v38 }
0x39a9   : > { %v7839_v41 = vpop.f32.mrf.mxu0 }
0x39aa   : > { %v5565_v43 = vadd.f32 %v5564_v40, %v8818_v42 }
0x39ab   : > { %v5561_v21 = vpop.f32.mrf.mxu0 }
0x39ac   : > { %v5566_v57 = vsel %vm1363_vm3, %v5565_v43, -inf  ;;  %v7097_v21 = vld [vmem:[%s9495_s14 + $0x1] ss:$0 sm:$0xff] }
0x39ad   : > { %5567 = vmax.xlane.f32.xlu1 %v5566_v57  ;;  %v7840_v45 = vpop.f32.mrf.mxu0 }
0x3a36   : > { %v5568_v44 = vpop.xlane.xlu1 %5567 }
0x3a37   : > { %v5569_v47 = vsub.f32 %v5565_v43, %v5568_v44 }
0x3a39   : > { %v5570_v22 = vmul.f32 1.442695, %v5569_v47 }
0x3a3b   : > { %8164 = vpow2.f32 %v5570_v22 }
0x3a48   : > { %v8165_v48 = vpop.eup %8164 }
0x3a49   : > { %v5572_v49 = vsel %vm1363_vm3, %v8165_v48, 0.0 }
0x3a4a   : > { %5573 = vadd.xlane.f32.xlu0 %v5572_v49 }
0x3a60   : > { %5578 = vrot.lane.b32.xlu0 %v9084_v58, %s9478_s1 }
0x3a62   : > { %v5507_v50 = vpop.f32.mrf.mxu1 }
0x3a63   : > { %v5513_v42 = vadd.f32 %v5507_v50, %v9144_v4 }
0x3a64   : > { %v7833_v52 = vpop.f32.mrf.mxu1 }
0x3a66   : > { %v5510_v53 = vpop.f32.mrf.mxu1 }
0x3a68   : > { %v7834_v56 = vpop.f32.mrf.mxu1 }
0x3ad3   : > { %v5574_v60 = vpop.xlane.xlu0 %5573 }
0x3ad4   : > { %8166 = vrcp.f32 %v5574_v60 }
0x3ad7   : > { %v5579_v61 = vpop.permute.xlu0 %5578 }
0x3ad8   : > { %v5584_v58 = vsel %vm1428_vm4, %v5579_v61, 0 }
0x3ad9   : > { %7842 = vmatpush3.bf16.msra.mxu1 %v5584_v58 }
0x3ada   : > { %7853 = vmatprep.subr.bf16.mxu1 %v8244_v1 }
0x3ae1   : > { %v8167_v62 = vpop.eup %8166 }
0x3ae2   : > { %v5576_v63 = vmul.f32 %v8167_v62, %v8165_v48 }
0x3ae4   : > { %v5577_v0 = vpack.c.bf16 %v5576_v63, %v5576_v63 }
0x3ae6   : > { %7844 = vmatmul.mubr.msk.bf16.vlgmr.msra.gmra.mxu1 %vm1363_vm3, %v5577_v0 }
0x3ae7   : > { %7857 = vmatprep.mubr.msk.bf16.mxu1 %vm8245_vm0, %v8244_v1  ;;  %7854 = vmatpush3.bf16.msra.mxu1 %v8064_v31 }
0x3ae8   : > { %7855 = vmatprep.subr.bf16.mxu1 %v8244_v1 }
0x3aeb   : > { %7856 = vmatpush3.bf16.msra.mxu1 %v8065_v32 }
0x3aec   : > { %7869 = vmatprep.subr.bf16.mxu1 %v8244_v1 }
0x3ba6   : > { %v5620_v2 = vpop.f32.mrf.mxu1 }
0x3ba7   : > { %v5626_v4 = vpack.c.bf16 %v5620_v2, %v5620_v2 }
0x3ba8   : > { %v7845_v33 = vpop.f32.mrf.mxu1 }
0x3ba9   : > { %7850 = vmatmul.mubr.msk.bf16.vlgmr.msra.gmra.mxu0 %vm1363_vm3, %v5626_v4 }
0x3baa   : > { %v5623_v46 = vpop.f32.mrf.mxu1  ;;  %7862 = vmatpush3.bf16.msra.mxu0 %v8062_v3  ;;  %7865 = vmatprep.mubr.msk.bf16.mxu0 %vm8245_vm0, %v8244_v1 }
0x3bab   : > { %7863 = vmatprep.subr.bf16.mxu0 %v8244_v1 }
0x3bac   : > { %v7846_v5 = vpop.f32.mrf.mxu1 }
0x3bae   : > { %7864 = vmatpush3.bf16.msra.mxu0 %v8063_v16 }
0x3baf   : > { %7875 = vmatprep.subr.bf16.mxu0 %v8244_v1 }
0x3bb1   : > { %7866 = vmatmul.mubr.msk.bf16.vlgmr.msra.gmra.mxu0 %vm1311_vm2, %v8920_v18 }
0x3bb2   : > { %7877 = vmatprep.mubr.msk.bf16.mxu0 %vm8245_vm0, %v8244_v1 }
0x3c69   : > { %v5668_v6 = vpop.f32.mrf.mxu0 }
0x3c6a   : > { %v5674_v8 = vadd.f32 %v5668_v6, %v5513_v42 }
0x3c6b   : > { %v7851_v9 = vpop.f32.mrf.mxu0 }
0x3c6c   : > { %v5683_v19 = vadd.f32 %v7087_v7, %v5674_v8 }
0x3c6d   : > { %v5671_v10 = vpop.f32.mrf.mxu0 }
0x3c6e   : > { %v5684_v12 = vadd.f32 %v5683_v19, %v9076_v51 }
0x3c6f   : > { %v7852_v13 = vpop.f32.mrf.mxu0 }
0x3c70   : > { %v5689_v14 = vsel %vm1311_vm2, %v5684_v12, 0.0 }
0x3c71   : > { %5690 = vadd.xlane.f32.xlu1 %v5689_v14  ;;  %v5844_v15 = vpop.f32.mrf.mxu0 }
0x3c72   : > { %v5845_v51 = vadd.f32 %v7106_v27, %v5844_v15  ;;  %v7111_v15 = vld [vmem:[%s9499_s23 + $0x28] sm:$0xff] }
0x3c73   : > { %v7867_v17 = vpop.f32.mrf.mxu0 }
0x3c74   : > { %v9201_v29 = vpack.c.bf16 %v5845_v51, %v5845_v51  ;;  %v6080_v17 = vpack.c.bf16 %v7111_v15, %v7111_v15 }
0x3c75   : > { %v5847_v18 = vpop.f32.mrf.mxu0 }
0x3c76   : > { %v5861_v43 = vsel %vm1363_vm3, %v9201_v29, 0  ;;  %v6085_v18 = vsel %vm1428_vm4, %v6080_v17, 0 }
0x3c77   : > { %v7868_v20 = vpop.f32.mrf.mxu0 }
0x3cfa   : > { %v5691_v23 = vpop.xlane.xlu1 %5690 }
0x3cfb   : > { %v5692_v24 = vmul.f32 0.03125, %v5691_v23 }
0x3cfd   : > { %v5693_v28 = vsub.f32 %v5684_v12, %v5692_v24 }
0x3cff   : > { %v5694_v25 = vmul.f32 %v5693_v28, %v5693_v28 }
0x3d01   : > { %v5695_v26 = vsel %vm1311_vm2, %v5694_v25, 0.0 }
0x3d02   : > { %5696 = vadd.xlane.f32.xlu1 %v5695_v26 }
0x3d13   : > { %5970 = vrot.lane.b32.xlu1 %v9201_v29, %s9496_s19 }
0x3d8b   : > { %v5697_v34 = vpop.xlane.xlu1 %5696 }
0x3d8c   : > { %v5698_v35 = vmul.f32 0.03125, %v5697_v34 }
0x3d8e   : > { %v5699_v30 = vadd.f32 1e-05, %v5698_v35 }
0x3d8f   : > { %v5971_v44 = vpop.permute.xlu1 %5970 }
0x3d90   : > { %8168 = vrsqrt.f32 %v5699_v30  ;;  %v5976_v49 = vsel %vm1363_vm3, %v5971_v44, 0 }
0x3d9d   : > { %v8169_v36 = vpop.eup %8168 }
0x3d9e   : > { %v5701_v39 = vmul.f32 %v8169_v36, %v5693_v28  ;;  %v7110_v28 = vld [vmem:[%s9499_s23 + $0x20] sm:$0xff] }
0x3d9f   : > { %v5966_v25 = vpack.c.bf16 %v7110_v28, %v7110_v28 }
0x3da0   : > { %v5708_v38 = vmul.f32 %v7090_v37, %v5701_v39 }
0x3da1   : > { %v6131_v31 = vsel %vm1428_vm4, %v5966_v25, 0 }
0x3da2   : > { %v9211_v40 = vadd.f32 %v7091_v11, %v5708_v38 }
0x3da4   : > { %v5721_v41 = vpack.c.bf16 %v9211_v40, %v9211_v40 }
0x3da6   : > { %7858 = vmatmul.mubr.msk.bf16.vlgmr.msra.gmra.mxu1 %vm1311_vm2, %v5721_v41 }
0x3da7   : > { %7870 = vmatpush3.bf16.xpose.msra.mxu1 %v5861_v43  ;;  %7871 = vmatprep.mubr.msk.bf16.mxu1 %vm8245_vm0, %v8244_v1 }
0x3da8   : > { %7881 = vmatprep.subr.bf16.mxu1 %v8244_v1 }
0x3e66   : > { %v5779_v57 = vpop.f32.mrf.mxu1 }
0x3e67   : > { %v5780_v45 = vadd.f32 %v7097_v21, %v5779_v57 }
0x3e68   : > { %v7859_v47 = vpop.f32.mrf.mxu1 }
0x3e69   : > { %v9222_v22 = vpack.c.bf16 %v5780_v45, %v5780_v45 }
0x3e6a   : > { %v5782_v48 = vpop.f32.mrf.mxu1 }
0x3e6b   : > { %5968 = vrot.lane.b32.xlu0 %v9222_v22, %s9496_s19  ;;  %7872 = vmatmul.mubr.msk.bf16.vlgmr.msra.gmra.mxu1 %vm1363_vm3, %v9222_v22  ;;  %s9513_s19 = sld [smem:[#allocation43_spill]] }
0x3e6c   : > { %7882 = vmatpush3.bf16.xpose.msra.mxu1 %v5976_v49  ;;  %v7860_v50 = vpop.f32.mrf.mxu1  ;;  %7883 = vmatprep.mubr.msk.bf16.mxu1 %vm8245_vm0, %v8244_v1 }
0x3e6d   : > { %7893 = vmatprep.subr.bf16.mxu1 %v8244_v1 }
0x3edd   : > { %v5969_v42 = vpop.permute.xlu0 %5968 }
0x3ede   : > { %7884 = vmatmul.mubr.msk.bf16.vlgmr.msra.gmra.mxu1 %vm1363_vm3, %v5969_v42 }
0x3edf   : > { %7895 = vmatprep.mubr.msk.bf16.mxu1 %vm8245_vm0, %v8244_v1  ;;  %7894 = vmatpush3.bf16.msra.mxu1 %v6085_v18 }
0x3ee0   : > { %7905 = vmatprep.subr.bf16.mxu1 %v8244_v1 }
0x3f2b   : > { %v5897_v52 = vpop.f32.mrf.mxu1 }
0x3f2c   : > { %v5903_v53 = vmul.f32 0.35355338, %v5897_v52 }
0x3f2d   : > { %v7873_v54 = vpop.f32.mrf.mxu1 }
0x3f2e   : > { %v5904_v55 = vsel %vm1363_vm3, %v5903_v53, -inf }
0x3f2f   : > { %5905 = vmax.xlane.f32.xlu0 %v5904_v55  ;;  %v5900_v56 = vpop.f32.mrf.mxu1 }
0x3f31   : > { %v7874_v59 = vpop.f32.mrf.mxu1 }
0x3f9e   : > { %v6012_v60 = vpop.f32.mrf.mxu1 }
0x3f9f   : > { %v6018_v61 = vmul.f32 0.35355338, %v6012_v60 }
0x3fa0   : > { %v7885_v58 = vpop.f32.mrf.mxu1 }
0x3fa1   : > { %v6019_v62 = vsel %vm1363_vm3, %v6018_v61, -inf }
0x3fa2   : > { %6020 = vmax.xlane.f32.xlu1 %v6019_v62  ;;  %v6015_v63 = vpop.f32.mrf.mxu1 }
0x3fa4   : > { %v7886_v0 = vpop.f32.mrf.mxu1 }
0x3fb3   : > { %5917 = vrot.lane.b32.xlu1 %v9201_v29, %s9498_s21  ;;  %s9511_s21 = sld [smem:[#allocation39_spill]] }
0x3fb7   : > { %6175 = vrot.lane.b32.xlu1 %v9201_v29, %s9484_s10 }
0x3fb8   : > { %v5906_v2 = vpop.xlane.xlu0 %5905 }
0x3fb9   : > { %v5907_v3 = vsub.f32 %v5903_v53, %v5906_v2 }
0x3fbb   : > { %v5908_v4 = vmul.f32 1.442695, %v5907_v3  ;;  %6173 = vrot.lane.b32.xlu1 %v9222_v22, %s9484_s10 }
0x3fbd   : > { %8170 = vpow2.f32 %v5908_v4 }
0x3fca   : > { %v8171_v33 = vpop.eup %8170 }
0x3fcb   : > { %v5910_v46 = vsel %vm1363_vm3, %v8171_v33, 0.0 }
0x3fcc   : > { %5911 = vadd.xlane.f32.xlu0 %v5910_v46 }
0x402b   : > { %v6021_v16 = vpop.xlane.xlu1 %6020 }
0x402c   : > { %v6022_v5 = vsub.f32 %v6018_v61, %v6021_v16 }
0x402e   : > { %v6023_v6 = vmul.f32 1.442695, %v6022_v5 }
0x402f   : > { %v5918_v7 = vpop.permute.xlu1 %5917 }
0x4030   : > { %8172 = vpow2.f32 %v6023_v6  ;;  %v5923_v8 = vsel %vm1428_vm4, %v5918_v7, 0  ;;  %v7112_v7 = vld [vmem:[%s9499_s23 + $0x30] sm:$0xff] }
0x4031   : > { %7876 = vmatpush3.bf16.msra.mxu0 %v5923_v8  ;;  %v6285_v8 = vpack.c.bf16 %v7112_v7, %v7112_v7  ;;  %v7131_v7 = vld [vmem:[%s9505_s27 + $0x1] ss:$0 sm:$0xff] }
0x4032   : > { %7887 = vmatprep.subr.bf16.mxu0 %v8244_v1 }
0x4033   : > { %v6176_v37 = vpop.permute.xlu1 %6175 }
0x4034   : > { %v6181_v41 = vsel %vm1363_vm3, %v6176_v37, 0 }
0x4037   : > { %v6174_v57 = vpop.permute.xlu1 %6173 }
0x403d   : > { %v8173_v9 = vpop.eup %8172 }
0x403e   : > { %v6025_v19 = vsel %vm1363_vm3, %v8173_v9, 0.0 }
0x403f   : > { %6026 = vadd.xlane.f32.xlu0 %v6025_v19 }
0x4055   : > { %v5912_v10 = vpop.xlane.xlu0 %5911  ;;  %6031 = vrot.lane.b32.xlu0 %v9201_v29, %s9497_s20  ;;  %s9514_s20 = sld [smem:[#allocation41_spill]] }
0x4056   : > { %8174 = vrcp.f32 %v5912_v10 }
0x405b   : > { %s1222_s10 = scalar_lea.vmem %s9514_s20, %s9513_s19 }
0x4063   : > { %v8175_v12 = vpop.eup %8174 }
0x4064   : > { %v5914_v13 = vmul.f32 %v8175_v12, %v8171_v33 }
0x4066   : > { %v5915_v14 = vpack.c.bf16 %v5914_v13, %v5914_v13 }
0x4068   : > { %7878 = vmatmul.mubr.msk.bf16.vlgmr.msra.gmra.mxu0 %vm1363_vm3, %v5915_v14 }
0x4069   : > { %7889 = vmatprep.mubr.msk.bf16.mxu0 %vm8245_vm0, %v8244_v1 }
0x40c8   : > { %v6027_v20 = vpop.xlane.xlu0 %6026 }
0x40c9   : > { %8176 = vrcp.f32 %v6027_v20 }
0x40cc   : > { %v6032_v23 = vpop.permute.xlu0 %6031 }
0x40cd   : > { %v6037_v24 = vsel %vm1428_vm4, %v6032_v23, 0 }
0x40ce   : > { %7888 = vmatpush3.bf16.msra.mxu0 %v6037_v24 }
0x40cf   : > { %7899 = vmatprep.subr.bf16.mxu0 %v8244_v1 }
0x40d6   : > { %v8177_v26 = vpop.eup %8176 }
0x40d7   : > { %v6029_v27 = vmul.f32 %v8177_v26, %v8173_v9  ;;  %v6290_v9 = vsel %vm1428_vm4, %v6285_v8, 0 }
0x40d9   : > { %v6030_v51 = vpack.c.bf16 %v6029_v27, %v6029_v27 }
0x40db   : > { %7890 = vmatmul.mubr.msk.bf16.vlgmr.msra.gmra.mxu0 %vm1363_vm3, %v6030_v51 }
0x40dc   : > { %7900 = vmatpush3.bf16.msra.mxu0 %v6131_v31  ;;  %7901 = vmatprep.mubr.msk.bf16.mxu0 %vm8245_vm0, %v8244_v1 }
0x40dd   : > { %7911 = vmatprep.subr.bf16.mxu0 %v8244_v1 }
0x4128   : > { %v5959_v32 = vpop.f32.mrf.mxu0 }
0x4129   : > { %v5965_v34 = vpack.c.bf16 %v5959_v32, %v5959_v32 }
0x412a   : > { %v7879_v35 = vpop.f32.mrf.mxu0 }
0x412b   : > { %7902 = vmatmul.mubr.msk.bf16.vlgmr.msra.gmra.mxu0 %vm1363_vm3, %v5965_v34 }
0x412c   : > { %v5962_v30 = vpop.f32.mrf.mxu0  ;;  %7913 = vmatprep.mubr.msk.bf16.mxu0 %vm8245_vm0, %v8244_v1 }
0x412d   : > { %v7113_v30 = vld [vmem:[%s9499_s23 + $0x38] sm:$0xff] }
0x412e   : > { %v7880_v36 = vpop.f32.mrf.mxu0 }
0x412f   : > { %v6445_v36 = vpack.c.bf16 %v7113_v30, %v7113_v30 }
0x419b   : > { %v6073_v39 = vpop.f32.mrf.mxu0 }
0x419c   : > { %v6079_v11 = vpack.c.bf16 %v6073_v39, %v6073_v39  ;;  %v6450_v39 = vsel %vm1428_vm4, %v6445_v36, 0 }
0x419d   : > { %v7891_v38 = vpop.f32.mrf.mxu0 }
0x419e   : > { %7896 = vmatmul.mubr.msk.bf16.vlgmr.msra.gmra.mxu1 %vm1363_vm3, %v6079_v11 }
0x419f   : > { %7906 = vmatpush3.bf16.xpose.msra.mxu1 %v6181_v41  ;;  %v6076_v43 = vpop.f32.mrf.mxu0  ;;  %7907 = vmatprep.mubr.msk.bf16.mxu1 %vm8245_vm0, %v8244_v1 }
0x41a0   : > { %7917 = vmatprep.subr.bf16.mxu1 %v8244_v1 }
0x41a1   : > { %v7892_v21 = vpop.f32.mrf.mxu0 }
0x41a6   : > { %7908 = vmatmul.mubr.msk.bf16.vlgmr.msra.gmra.mxu1 %vm1363_vm3, %v6174_v57 }
0x41a7   : > { %7919 = vmatprep.mubr.msk.bf16.mxu1 %vm8245_vm0, %v8244_v1  ;;  %7918 = vmatpush3.bf16.msra.mxu1 %v6290_v9 }
0x41a8   : > { %7929 = vmatprep.subr.bf16.mxu1 %v8244_v1 }
0x41eb   : > { %v9274_v45 = vpop.f32.mrf.mxu0 }
0x41ed   : > { %v7903_v44 = vpop.f32.mrf.mxu0 }
0x41ef   : > { %v6170_v47 = vpop.f32.mrf.mxu0 }
0x41f1   : > { %v7904_v48 = vpop.f32.mrf.mxu0 }
0x425e   : > { %v9276_v49 = vpop.f32.mrf.mxu1 }
0x425f   : > { %v6168_v31 = vadd.f32 %v9274_v45, %v9276_v49 }
0x4260   : > { %v7897_v50 = vpop.f32.mrf.mxu1 }
0x4262   : > { %v6124_v42 = vpop.f32.mrf.mxu1 }
0x4263   : > { %v7127_v42 = vld [vmem:[%s9500_s24 + $0x1] ss:$0 sm:$0xff] }
0x4264   : > { %v7898_v52 = vpop.f32.mrf.mxu1 }
0x4266   : > { %v6217_v53 = vpop.f32.mrf.mxu1 }
0x4267   : > { %v6223_v54 = vmul.f32 0.35355338, %v6217_v53 }
0x4268   : > { %v7909_v55 = vpop.f32.mrf.mxu1 }
0x4269   : > { %v6224_v56 = vsel %vm1363_vm3, %v6223_v54, -inf }
0x426a   : > { %6225 = vmax.xlane.f32.xlu0 %v6224_v56  ;;  %v6220_v59 = vpop.f32.mrf.mxu1 }
0x426c   : > { %v7910_v60 = vpop.f32.mrf.mxu1 }
0x4280   : > { %6236 = vrot.lane.b32.xlu0 %v9201_v29, %s9485_s11 }
0x4284   : > { %6333 = vrot.lane.b32.xlu0 %v9222_v22, %s9487_s15 }
0x42f3   : > { %v6226_v61 = vpop.xlane.xlu0 %6225 }
0x42f4   : > { %v6227_v58 = vsub.f32 %v6223_v54, %v6226_v61 }
0x42f6   : > { %v6228_v62 = vmul.f32 1.442695, %v6227_v58 }
0x42f7   : > { %v6237_v63 = vpop.permute.xlu0 %6236 }
0x42f8   : > { %8178 = vpow2.f32 %v6228_v62  ;;  %v6242_v0 = vsel %vm1428_vm4, %v6237_v63, 0 }
0x42f9   : > { %7912 = vmatpush3.bf16.msra.mxu0 %v6242_v0 }
0x42fa   : > { %7923 = vmatprep.subr.bf16.mxu0 %v8244_v1 }
0x42fb   : > { %v6334_v6 = vpop.permute.xlu0 %6333 }
0x4305   : > { %v8179_v2 = vpop.eup %8178 }
0x4306   : > { %v6230_v3 = vsel %vm1363_vm3, %v8179_v2, 0.0 }
0x4307   : > { %6231 = vadd.xlane.f32.xlu1 %v6230_v3  ;;  %v8067_v3 = vld [vmem:[%s9501_s25 + $0x10] sm:$0xff]  }
0x4318   : > { %6335 = vrot.lane.b32.xlu1 %v9201_v29, %s9487_s15 }
0x4390   : > { %v6232_v4 = vpop.xlane.xlu1 %6231 }
0x4391   : > { %8180 = vrcp.f32 %v6232_v4  ;;  %v8069_v4 = vld [vmem:[%s9502_s29 + $0x30] sm:$0xff]  }
0x4394   : > { %v6336_v46 = vpop.permute.xlu1 %6335 }
0x4395   : > { %v6341_v5 = vsel %vm1363_vm3, %v6336_v46, 0 }
0x439e   : > { %v8181_v22 = vpop.eup %8180 }
0x439f   : > { %v6234_v33 = vmul.f32 %v8181_v22, %v8179_v2  ;;  %v8066_v2 = vld [vmem:[%s9501_s25 + $0x18] sm:$0xff]  }
0x43a1   : > { %v6235_v16 = vpack.c.bf16 %v6234_v33, %v6234_v33 }
0x43a3   : > { %7914 = vmatmul.mubr.msk.bf16.vlgmr.msra.gmra.mxu0 %vm1363_vm3, %v6235_v16 }
0x43a4   : > { %7924 = vmatpush3.bf16.xpose.msra.mxu0 %v6341_v5  ;;  %7925 = vmatprep.mubr.msk.bf16.mxu0 %vm8245_vm0, %v8244_v1  ;;  %v7130_v5 = vld [vmem:[%s9503_s30 + $0x1] ss:$0 sm:$0xff] }
0x43a5   : > { %7935 = vmatprep.subr.bf16.mxu0 %v8244_v1 }
0x43ab   : > { %7926 = vmatmul.mubr.msk.bf16.vlgmr.msra.gmra.mxu0 %vm1363_vm3, %v6334_v6 }
0x43ac   : > { %7937 = vmatprep.mubr.msk.bf16.mxu0 %vm8245_vm0, %v8244_v1  ;;  %7936 = vmatpush3.bf16.msra.mxu0 %v6450_v39 }
0x43ad   : > { %7949 = vmatprep.subr.bf16.mxu0 %v8244_v1 }
0x4463   : > { %v6278_v19 = vpop.f32.mrf.mxu0 }
0x4464   : > { %v6284_v10 = vpack.c.bf16 %v6278_v19, %v6278_v19 }
0x4465   : > { %v7915_v12 = vpop.f32.mrf.mxu0 }
0x4466   : > { %7920 = vmatmul.mubr.msk.bf16.vlgmr.msra.gmra.mxu1 %vm1363_vm3, %v6284_v10  ;;  %v8070_v10 = vld [vmem:[%s9502_s29 + $0x28] sm:$0xff]   ;;  %v8071_v12 = vld [vmem:[%s9502_s29 + $0x20] sm:$0xff]  }
0x4467   : > { %v6281_v13 = vpop.f32.mrf.mxu0  ;;  %7931 = vmatprep.mubr.msk.bf16.mxu1 %vm8245_vm0, %v8244_v1 }
0x4468   : > { %v7137_v13 = vld [vmem:[%s9506_s0 + $0x1] ss:$0 sm:$0xff] }
0x4469   : > { %v7916_v14 = vpop.f32.mrf.mxu0 }
0x446b   : > { %v6377_v15 = vpop.f32.mrf.mxu0 }
0x446c   : > { %v6383_v17 = vmul.f32 0.35355338, %v6377_v15 }
0x446d   : > { %v7927_v18 = vpop.f32.mrf.mxu0 }
0x446e   : > { %v6384_v20 = vsel %vm1363_vm3, %v6383_v17, -inf }
0x446f   : > { %6385 = vmax.xlane.f32.xlu1 %v6384_v20  ;;  %v6380_v23 = vpop.f32.mrf.mxu0 }
0x4471   : > { %v7928_v24 = vpop.f32.mrf.mxu0 }
0x44f8   : > { %v6386_v28 = vpop.xlane.xlu1 %6385 }
0x44f9   : > { %v6387_v25 = vsub.f32 %v6383_v17, %v6386_v28  ;;  %v7150_v28 = vld [vmem:[%s9507_s9 + $0x1] ss:$0 sm:$0xff] }
0x44fb   : > { %v6388_v26 = vmul.f32 1.442695, %v6387_v25 }
0x44fd   : > { %8182 = vpow2.f32 %v6388_v26 }
0x450a   : > { %v8183_v27 = vpop.eup %8182 }
0x450b   : > { %v6390_v51 = vsel %vm1363_vm3, %v8183_v27, 0.0 }
0x450c   : > { %6391 = vadd.xlane.f32.xlu0 %v6390_v51 }
0x4522   : > { %6396 = vrot.lane.b32.xlu0 %v9201_v29, %s9477_s22 }
0x4526   : > { %v6326_v32 = vpop.f32.mrf.mxu1 }
0x4527   : > { %v6332_v34 = vadd.f32 %v6326_v32, %v6168_v31 }
0x4528   : > { %v7921_v35 = vpop.f32.mrf.mxu1 }
0x452a   : > { %v6329_v37 = vpop.f32.mrf.mxu1 }
0x452c   : > { %v7922_v11 = vpop.f32.mrf.mxu1 }
0x452d   : > { %v8072_v11 = vld [vmem:[%s9511_s21 + $0x8] sm:$0xff]  }
0x4595   : > { %v6392_v38 = vpop.xlane.xlu0 %6391 }
0x4596   : > { %8184 = vrcp.f32 %v6392_v38  ;;  %v8073_v38 = vld [vmem:[%s9511_s21] sm:$0xff]  }
0x4599   : > { %v6397_v41 = vpop.permute.xlu0 %6396 }
0x459a   : > { %v6402_v29 = vsel %vm1428_vm4, %v6397_v41, 0 }
0x459b   : > { %7930 = vmatpush3.bf16.msra.mxu1 %v6402_v29 }
0x459c   : > { %7941 = vmatprep.subr.bf16.mxu1 %v8244_v1 }
0x45a3   : > { %v8185_v43 = vpop.eup %8184 }
0x45a4   : > { %v6394_v21 = vmul.f32 %v8185_v43, %v8183_v27 }
0x45a6   : > { %v6395_v57 = vpack.c.bf16 %v6394_v21, %v6394_v21 }
0x45a8   : > { %7932 = vmatmul.mubr.msk.bf16.vlgmr.msra.gmra.mxu1 %vm1363_vm3, %v6395_v57  ;;  %v7158_v57 = vld [vmem:[%s9509_s17 + $0x1] ss:$0 sm:$0xff] }
0x45a9   : > { %7945 = vmatprep.mubr.msk.bf16.mxu1 %vm8245_vm0, %v8244_v1  ;;  %7942 = vmatpush3.bf16.msra.mxu1 %v8066_v2 }
0x45aa   : > { %7943 = vmatprep.subr.bf16.mxu1 %v8244_v1 }
0x45ad   : > { %7944 = vmatpush3.bf16.msra.mxu1 %v8067_v3 }
0x45ae   : > { %7961 = vmatprep.subr.bf16.mxu1 %v8244_v1 }
0x4668   : > { %v6438_v45 = vpop.f32.mrf.mxu1 }
0x4669   : > { %v6444_v44 = vpack.c.bf16 %v6438_v45, %v6438_v45 }
0x466a   : > { %v7933_v47 = vpop.f32.mrf.mxu1 }
0x466b   : > { %7938 = vmatmul.mubr.msk.bf16.vlgmr.msra.gmra.mxu0 %vm1363_vm3, %v6444_v44  ;;  %v7159_v44 = vld [vmem:[%s8451_s4 + $0x1] ss:$0 sm:$0xff] }
0x466c   : > { %v6441_v48 = vpop.f32.mrf.mxu1  ;;  %7957 = vmatprep.mubr.msk.bf16.mxu0 %vm8245_vm0, %v8244_v1 }
0x466e   : > { %v7934_v49 = vpop.f32.mrf.mxu1 }
0x472b   : > { %v6486_v50 = vpop.f32.mrf.mxu0 }
0x472c   : > { %v6492_v52 = vadd.f32 %v6486_v50, %v6332_v34  ;;  %v7160_v50 = vld [vmem:[%s9512_s3] ss:$0 sm:$0xff] }
0x472d   : > { %v7939_v53 = vpop.f32.mrf.mxu0 }
0x472e   : > { %v6501_v54 = vadd.f32 %v7127_v42, %v6492_v52 }
0x472f   : > { %v6489_v55 = vpop.f32.mrf.mxu0 }
0x4730   : > { %v6502_v56 = vadd.f32 %v6501_v54, %v9211_v40  ;;  %v8068_v40 = vld [vmem:[%s9502_s29 + $0x38] sm:$0xff]  }
0x4731   : > { %v7940_v59 = vpop.f32.mrf.mxu0  ;;  %7950 = vmatpush3.bf16.msra.mxu0 %v8068_v40 }
0x4732   : > { %v6507_v60 = vsel %vm1311_vm2, %v6502_v56, 0.0  ;;  %7951 = vmatprep.subr.bf16.mxu0 %v8244_v1 }
0x4733   : > { %6508 = vadd.xlane.f32.xlu1 %v6507_v60 }
0x4735   : > { %7952 = vmatpush3.bf16.msra.mxu0 %v8069_v4 }
0x4736   : > { %7953 = vmatprep.subr.bf16.mxu0 %v8244_v1 }
0x4739   : > { %7954 = vmatpush3.bf16.msra.mxu0 %v8070_v10 }
0x473a   : > { %7955 = vmatprep.subr.bf16.mxu0 %v8244_v1 }
0x473d   : > { %7956 = vmatpush3.bf16.msra.mxu0 %v8071_v12 }
0x47bc   : > { %v6509_v61 = vpop.xlane.xlu1 %6508 }
0x47bd   : > { %v6510_v58 = vmul.f32 0.03125, %v6509_v61 }
0x47bf   : > { %v6511_v62 = vsub.f32 %v6502_v56, %v6510_v58 }
0x47c1   : > { %v6512_v63 = vmul.f32 %v6511_v62, %v6511_v62 }
0x47c3   : > { %v6513_v0 = vsel %vm1311_vm2, %v6512_v63, 0.0 }
0x47c4   : > { %6514 = vadd.xlane.f32.xlu1 %v6513_v0 }
0x484d   : > { %v6515_v22 = vpop.xlane.xlu1 %6514 }
0x484e   : > { %v6516_v33 = vmul.f32 0.03125, %v6515_v22 }
0x4850   : > { %v6517_v46 = vadd.f32 1e-05, %v6516_v33 }
0x4852   : > { %8186 = vrsqrt.f32 %v6517_v46 }
0x485f   : > { %v8187_v16 = vpop.eup %8186 }
0x4860   : > { %v6519_v6 = vmul.f32 %v8187_v16, %v6511_v62 }
0x4862   : > { %v6526_v8 = vmul.f32 %v7130_v5, %v6519_v6 }
0x4864   : > { %v6533_v9 = vadd.f32 %v7131_v7, %v6526_v8 }
0x4866   : > { %v6539_v19 = vpack.c.bf16 %v6533_v9, %v6533_v9 }
0x4868   : > { %7946 = vmatmul.mubr.msk.bf16.vlgmr.msra.gmra.mxu1 %vm1311_vm2, %v6539_v19 }
0x4869   : > { %7965 = vmatprep.mubr.msk.bf16.mxu1 %vm8245_vm0, %v8244_v1  ;;  %7962 = vmatpush3.bf16.msra.mxu1 %v8072_v11 }
0x486a   : > { %7963 = vmatprep.subr.bf16.mxu1 %v8244_v1 }
0x486d   : > { %7964 = vmatpush3.bf16.msra.mxu1 %v8073_v38 }
0x4928   : > { %v6597_v14 = vpop.f32.mrf.mxu1 }
0x4929   : > { %v6598_v15 = vadd.f32 %v7137_v13, %v6597_v14 }
0x492a   : > { %v7947_v17 = vpop.f32.mrf.mxu1 }
0x492b   : > { %v6603_v18 = vmax.f32 %v6598_v15, 0.0 }
0x492c   : > { %v6600_v20 = vpop.f32.mrf.mxu1 }
0x492d   : > { %v6613_v23 = vpack.c.bf16 %v6603_v18, %v6603_v18 }
0x492e   : > { %v7948_v24 = vpop.f32.mrf.mxu1 }
0x492f   : > { %7958 = vmatmul.mubr.msk.bf16.vlgmr.msra.gmra.mxu0 %vm2146_vm5, %v6613_v23 }
0x49ef   : > { %v6683_v25 = vpop.f32.mrf.mxu0 }
0x49f0   : > { %v6684_v26 = vadd.f32 %v7150_v28, %v6683_v25 }
0x49f1   : > { %v7959_v27 = vpop.f32.mrf.mxu0 }
0x49f2   : > { %v6689_v51 = vadd.f32 %v6684_v26, %v6533_v9 }
0x49f3   : > { %v6686_v31 = vpop.f32.mrf.mxu0 }
0x49f4   : > { %v6694_v32 = vsel %vm1311_vm2, %v6689_v51, 0.0 }
0x49f5   : > { %6695 = vadd.xlane.f32.xlu1 %v6694_v32  ;;  %v7960_v34 = vpop.f32.mrf.mxu0 }
0x4a7e   : > { %v6696_v35 = vpop.xlane.xlu1 %6695 }
0x4a7f   : > { %v6697_v30 = vmul.f32 0.03125, %v6696_v35 }
0x4a81   : > { %v6698_v36 = vsub.f32 %v6689_v51, %v6697_v30 }
0x4a83   : > { %v6699_v37 = vmul.f32 %v6698_v36, %v6698_v36 }
0x4a85   : > { %v6700_v39 = vsel %vm1311_vm2, %v6699_v37, 0.0 }
0x4a86   : > { %6701 = vadd.xlane.f32.xlu1 %v6700_v39 }
0x4b0f   : > { %v6702_v41 = vpop.xlane.xlu1 %6701 }
0x4b10   : > { %v6703_v29 = vmul.f32 0.03125, %v6702_v41 }
0x4b12   : > { %v6704_v43 = vadd.f32 1e-05, %v6703_v29 }
0x4b14   : > { %8188 = vrsqrt.f32 %v6704_v43 }
0x4b21   : > { %v8189_v21 = vpop.eup %8188 }
0x4b22   : > { %v6706_v45 = vmul.f32 %v8189_v21, %v6698_v36 }
0x4b24   : > { %v6713_v47 = vmul.f32 %v7158_v57, %v6706_v45 }
0x4b26   : > { %v6720_v48 = vadd.f32 %v7159_v44, %v6713_v47 }
0x4b28   : > { %v6725_v49 = vpack.c.bf16 %v6720_v48, %v6720_v48 }
0x4b2a   : > { %7966 = vmatmul.mubr.msk.bf16.vlgmr.msra.gmra.mxu1 %vm1311_vm2, %v6725_v49 }
0x4bea   : > { %v6782_v42 = vpop.f32.mrf.mxu1 }
0x4beb   : > { %v6783_v52 = vadd.f32 %v7160_v50, %v6782_v42 }
0x4bec   : > { %v7967_v1 = vpop.f32.mrf.mxu1 }
0x4bed   : > { %v6788_v53 = vsel %vm1311_vm2, %v6783_v52, -inf }
0x4bee   : > { %6789 = vmax.xlane.f32.xlu1 %v6788_v53  ;;  %v6785_v54 = vpop.f32.mrf.mxu1 }
0x4bf0   : > { %v7968_v55 = vpop.f32.mrf.mxu1 }
0x4c77   : > { %v6790_v56 = vpop.xlane.xlu1 %6789 }
0x4c78   : > { %v6791_v59 = vsub.f32 %v6783_v52, %v6790_v56 }
0x4c7a   : > { %v6792_v60 = vmul.f32 1.442695, %v6791_v59 }
0x4c7c   : > { %8190 = vpow2.f32 %v6792_v60 }
0x4c89   : > { %v8191_v61 = vpop.eup %8190 }
0x4c8a   : > { %v6794_v58 = vsel %vm1311_vm2, %v8191_v61, 0.0 }
0x4c8b   : > { %6795 = vadd.xlane.f32.xlu1 %v6794_v58 }
0x4d14   : > { %v6796_v62 = vpop.xlane.xlu1 %6795 }
0x4d15   : > { %8192 = vrcp.f32 %v6796_v62 }
0x4d22   : > { %v8193_v63 = vpop.eup %8192 }
0x4d23   : > { %v6798_v0 = vmul.f32 %v8193_v63, %v8191_v61 }
0x4d25   : > { %6799 = vst.msk [vmem:[%s1222_s10] sm:$0xff] %vm1311_vm2, %v6798_v0 }
0x4d26 PF: > { %s9515_s11 = sld [smem:[#allocation42_spill]] }
0x4d2c   : > { %s91_s28 = sadd.s32 1, %s9515_s11  }
0x4d2d   : > { %p88_p4 = scmp.ge.s32.totalorder %s91_s28, 4  }
0x4d2f   :  { %90 = sbr.rel (!%p88_p4) target bundleno = 95 (0x5f), region = 285 }

</bundles_post_ra>
